<compile_context>
chip_gen: v6e
topology: v6e:2x2x1
jax: 0.10.0
libtpu: 0.0.40
codegen_flags: <defaults>
</compile_context>

<pallas_src>
import jax
import jax.numpy as jnp
from jax.experimental import pallas as pl
from jax.experimental.pallas import tpu as pltpu

D_IN = 32 * 32 * 3          # 3072
D_H1, D_H2, D_H3 = 512, 256, 128
D_OUT = 10
D_OUT_PAD = 128             # lane-dense fc4 output width (sliced back to 10 in wrapper)


def mlp_kernel(x_ref,
               w1_ref, b1_ref,
               w2_ref, b2_ref,
               w3_ref, b3_ref,
               w4_ref, b4_ref,
               o_ref):
    # One batch tile per grid step. x arrives f32 and is cast to bf16 in VMEM (the
    # cast is fused into the kernel instead of being a separate XLA pass over HBM).
    # Four bf16 MXU matmuls with f32 accumulation; bias add + ReLU on the VPU in f32.
    x = x_ref[...].astype(jnp.bfloat16)                                   # (TB, 3072)
    h = jnp.dot(x, w1_ref[...], preferred_element_type=jnp.float32) + b1_ref[...]
    h = jnp.maximum(h, 0.0).astype(jnp.bfloat16)
    h = jnp.dot(h, w2_ref[...], preferred_element_type=jnp.float32) + b2_ref[...]
    h = jnp.maximum(h, 0.0).astype(jnp.bfloat16)
    h = jnp.dot(h, w3_ref[...], preferred_element_type=jnp.float32) + b3_ref[...]
    h = jnp.maximum(h, 0.0).astype(jnp.bfloat16)
    out = jnp.dot(h, w4_ref[...], preferred_element_type=jnp.float32) + b4_ref[...]
    o_ref[...] = out.astype(o_ref.dtype)                                  # (TB, 128)


def neural_network_forward(x_nchw, params, *, tb=512):
    """x_nchw: (B, 3, 32, 32) float32. Returns logits (B, 10) float32.

    tb: batch tile (M of the matmuls). 512 amortizes per-grid-step overhead on
        v5e/v6e/v7x while keeping the f32 x tile + resident bf16 weights well
        under the 40 MiB VMEM budget (safe on v7x's 64 MiB VMEM). Small batches
        are clamped to a multiple of 16 (bf16 sublane packing), not padded.
    """
    B = x_nchw.shape[0]
    x_flat = x_nchw.reshape(B, D_IN)   # row-major flatten == torch x.view(-1, 3072)

    (w1, b1), (w2, b2), (w3, b3), (w4, b4) = params

    # bf16 weights (resident in VMEM); f32 biases (added onto f32 accumulators).
    w1, w2, w3 = (w.astype(jnp.bfloat16) for w in (w1, w2, w3))
    b1, b2, b3 = (b.reshape(1, -1).astype(jnp.float32) for b in (b1, b2, b3))
    # fc4 padded to 128 output lanes -> unmasked lane-dense output stores and a full
    # MXU column block; padded columns are exactly zero and sliced off below.
    w4p = jnp.zeros((D_H3, D_OUT_PAD), jnp.bfloat16).at[:, :D_OUT].set(
        w4.astype(jnp.bfloat16))
    b4p = jnp.zeros((1, D_OUT_PAD), jnp.float32).at[:, :D_OUT].set(
        b4.reshape(1, -1).astype(jnp.float32))

    # Batch tiling: NO jnp.pad (would be a full extra HBM read+write of x). Pallas
    # masks the ragged last block; out-of-range rows never reach HBM.
    tb = min(tb, max(16, ((B + 15) // 16) * 16))
    nb = pl.cdiv(B, tb)

    # Weights/biases: constant index_map -> fetched once, resident across batch tiles.
    def const(arr):
        return pl.BlockSpec(arr.shape, lambda i: (0, 0))

    flops = 2 * B * (D_IN * D_H1 + D_H1 * D_H2 + D_H2 * D_H3 + D_H3 * D_OUT_PAD)
    bytes_accessed = (
        4 * B * D_IN                                                        # f32 x in
        + 2 * (D_IN * D_H1 + D_H1 * D_H2 + D_H2 * D_H3 + D_H3 * D_OUT_PAD)  # bf16 W (once)
        + 4 * (D_H1 + D_H2 + D_H3 + D_OUT_PAD)                              # f32 biases
        + 4 * B * D_OUT_PAD)                                                # f32 logits out

    out = pl.pallas_call(
        mlp_kernel,
        out_shape=jax.ShapeDtypeStruct((B, D_OUT_PAD), jnp.float32),
        grid=(nb,),
        in_specs=[
            pl.BlockSpec((tb, D_IN), lambda i: (i, 0)),
            const(w1), const(b1),
            const(w2), const(b2),
            const(w3), const(b3),
            const(w4p), const(b4p),
        ],
        out_specs=pl.BlockSpec((tb, D_OUT_PAD), lambda i: (i, 0)),
        compiler_params=pltpu.CompilerParams(
            dimension_semantics=("parallel",),
            # ~12 MiB double-buffered f32 x tiles + ~7 MiB double-buffered bf16
            # weights + a few MiB activations/out at tb=512 -> ~25 MiB. 40 MiB
            # leaves headroom and stays well under v7x's 64 MiB physical VMEM
            # (v5e/v6e have 128 MiB).
            vmem_limit_bytes=40 << 20,
        ),
        cost_estimate=pl.CostEstimate(
            flops=flops, transcendentals=0, bytes_accessed=bytes_accessed),
    )(x_flat, w1, b1, w2, b2, w3, b3, w4p, b4p)

    return out[:, :D_OUT]


def init_params(key):
    """Deterministic init. Weights stored as (in_features, out_features), f32."""
    dims = [(D_IN, D_H1), (D_H1, D_H2), (D_H2, D_H3), (D_H3, D_OUT)]
    params = []
    for din, dout in dims:
        kw, kb, key = jax.random.split(key, 3)
        bound = 1.0 / jnp.sqrt(din)  # matches torch.nn.Linear default scale
        w = jax.random.uniform(kw, (din, dout), jnp.float32, -bound, bound)
        b = jax.random.uniform(kb, (1, dout), jnp.float32, -bound, bound)
        params.append((w, b))
    return params


def reference_forward_f32(x_nchw, params):
    x = x_nchw.reshape(x_nchw.shape[0], -1)
    (w1, b1), (w2, b2), (w3, b3), (w4, b4) = params
    h = jnp.maximum(x @ w1 + b1, 0.0)
    h = jnp.maximum(h @ w2 + b2, 0.0)
    h = jnp.maximum(h @ w3 + b3, 0.0)
    return h @ w4 + b4


def reference_forward_bf16(x_nchw, params):
    # Mirrors the kernel's numerics: bf16 operands, f32 accumulation.
    x = x_nchw.reshape(x_nchw.shape[0], -1).astype(jnp.bfloat16)
    (w1, b1), (w2, b2), (w3, b3), (w4, b4) = params
    w1, w2, w3, w4 = (w.astype(jnp.bfloat16) for w in (w1, w2, w3, w4))
    h = jnp.maximum(jnp.dot(x, w1, preferred_element_type=jnp.float32) + b1, 0.0)
    h = h.astype(jnp.bfloat16)
    h = jnp.maximum(jnp.dot(h, w2, preferred_element_type=jnp.float32) + b2, 0.0)
    h = h.astype(jnp.bfloat16)
    h = jnp.maximum(jnp.dot(h, w3, preferred_element_type=jnp.float32) + b3, 0.0)
    h = h.astype(jnp.bfloat16)
    return jnp.dot(h, w4, preferred_element_type=jnp.float32) + b4


if __name__ == "__main__":
    key = jax.random.PRNGKey(0)
    kx, kp = jax.random.split(key)
    B = 2
    x = jax.random.normal(kx, (B, 3, 32, 32), jnp.float32)
    params = init_params(kp)

    out = neural_network_forward(x, params)
    out = jax.block_until_ready(out)
    assert out.shape == (B, D_OUT)

    # Tight check against a reference with identical bf16/f32-acc numerics.
    ref_bf16 = reference_forward_bf16(x, params)
    assert jnp.allclose(out, ref_bf16, atol=1e-2, rtol=1e-2)

    # Loose check against the pure-f32 reference (bf16 weight/activation rounding).
    ref_f32 = reference_forward_f32(x, params)
    assert jnp.allclose(out, ref_f32, atol=5e-2, rtol=5e-2)

    print("KERNEL_OK")
</pallas_src>

<mosaic_0001>
module attributes {stable_mosaic.version = 11 : i64} {
  func.func @mlp_kernel(%arg0: i32, %arg1: memref<16x3072xf32, #tpu.memory_space<vmem>>, %arg2: memref<3072x512xbf16, #tpu.memory_space<vmem>>, %arg3: memref<1x512xf32, #tpu.memory_space<vmem>>, %arg4: memref<512x256xbf16, #tpu.memory_space<vmem>>, %arg5: memref<1x256xf32, #tpu.memory_space<vmem>>, %arg6: memref<256x128xbf16, #tpu.memory_space<vmem>>, %arg7: memref<1x128xf32, #tpu.memory_space<vmem>>, %arg8: memref<128x128xbf16, #tpu.memory_space<vmem>>, %arg9: memref<1x128xf32, #tpu.memory_space<vmem>>, %arg10: memref<16x128xf32, #tpu.memory_space<vmem>>) attributes {dimension_semantics = [#tpu.dimension_semantics<parallel>], iteration_bounds = array<i64: 1>, scalar_prefetch = 0 : i64, scratch_operands = 0 : i64, tpu.core_type = #tpu.core_type<tc>, window_params = [{transform_indices = @transform_0, window_bounds = array<i64: 16, 3072>}, {pipeline_mode = #tpu.pipeline_mode<synchronous>, transform_indices = @transform_1, window_bounds = array<i64: 3072, 512>}, {pipeline_mode = #tpu.pipeline_mode<synchronous>, transform_indices = @transform_2, window_bounds = array<i64: 1, 512>}, {pipeline_mode = #tpu.pipeline_mode<synchronous>, transform_indices = @transform_3, window_bounds = array<i64: 512, 256>}, {pipeline_mode = #tpu.pipeline_mode<synchronous>, transform_indices = @transform_4, window_bounds = array<i64: 1, 256>}, {pipeline_mode = #tpu.pipeline_mode<synchronous>, transform_indices = @transform_5, window_bounds = array<i64: 256, 128>}, {pipeline_mode = #tpu.pipeline_mode<synchronous>, transform_indices = @transform_6, window_bounds = array<i64: 1, 128>}, {pipeline_mode = #tpu.pipeline_mode<synchronous>, transform_indices = @transform_7, window_bounds = array<i64: 128, 128>}, {pipeline_mode = #tpu.pipeline_mode<synchronous>, transform_indices = @transform_8, window_bounds = array<i64: 1, 128>}, {transform_indices = @transform_9, window_bounds = array<i64: 16, 128>}]} {
    %c0 = arith.constant 0 : index
    %c0_0 = arith.constant 0 : index
    %0 = vector.load %arg1[%c0, %c0_0] : memref<16x3072xf32, #tpu.memory_space<vmem>>, vector<16x3072xf32>
    %1 = arith.truncf %0 : vector<16x3072xf32> to vector<16x3072xbf16>
    %c0_1 = arith.constant 0 : index
    %c0_2 = arith.constant 0 : index
    %2 = vector.load %arg2[%c0_1, %c0_2] : memref<3072x512xbf16, #tpu.memory_space<vmem>>, vector<3072x512xbf16>
    %cst = arith.constant dense<0.000000e+00> : vector<16x512xf32>
    %3 = tpu.matmul %1, %2, %cst {dimension_numbers = #tpu.dot_dimension_numbers<[1], [0], [0], [1], [0, 0, 1, 1], [], []>} : vector<16x3072xbf16>, vector<3072x512xbf16>, vector<16x512xf32> -> vector<16x512xf32>
    %c0_3 = arith.constant 0 : index
    %c0_4 = arith.constant 0 : index
    %4 = vector.load %arg3[%c0_3, %c0_4] : memref<1x512xf32, #tpu.memory_space<vmem>>, vector<1x512xf32>
    %5 = vector.broadcast %4 : vector<1x512xf32> to vector<16x512xf32>
    %6 = arith.addf %3, %5 : vector<16x512xf32>
    %cst_5 = arith.constant 0.000000e+00 : f32
    %7 = vector.broadcast %cst_5 : f32 to vector<16x512xf32>
    %8 = arith.maximumf %6, %7 : vector<16x512xf32>
    %9 = arith.truncf %8 : vector<16x512xf32> to vector<16x512xbf16>
    %c0_6 = arith.constant 0 : index
    %c0_7 = arith.constant 0 : index
    %10 = vector.load %arg4[%c0_6, %c0_7] : memref<512x256xbf16, #tpu.memory_space<vmem>>, vector<512x256xbf16>
    %cst_8 = arith.constant dense<0.000000e+00> : vector<16x256xf32>
    %11 = tpu.matmul %9, %10, %cst_8 {dimension_numbers = #tpu.dot_dimension_numbers<[1], [0], [0], [1], [0, 0, 1, 1], [], []>} : vector<16x512xbf16>, vector<512x256xbf16>, vector<16x256xf32> -> vector<16x256xf32>
    %c0_9 = arith.constant 0 : index
    %c0_10 = arith.constant 0 : index
    %12 = vector.load %arg5[%c0_9, %c0_10] : memref<1x256xf32, #tpu.memory_space<vmem>>, vector<1x256xf32>
    %13 = vector.broadcast %12 : vector<1x256xf32> to vector<16x256xf32>
    %14 = arith.addf %11, %13 : vector<16x256xf32>
    %cst_11 = arith.constant 0.000000e+00 : f32
    %15 = vector.broadcast %cst_11 : f32 to vector<16x256xf32>
    %16 = arith.maximumf %14, %15 : vector<16x256xf32>
    %17 = arith.truncf %16 : vector<16x256xf32> to vector<16x256xbf16>
    %c0_12 = arith.constant 0 : index
    %c0_13 = arith.constant 0 : index
    %18 = vector.load %arg6[%c0_12, %c0_13] : memref<256x128xbf16, #tpu.memory_space<vmem>>, vector<256x128xbf16>
    %cst_14 = arith.constant dense<0.000000e+00> : vector<16x128xf32>
    %19 = tpu.matmul %17, %18, %cst_14 {dimension_numbers = #tpu.dot_dimension_numbers<[1], [0], [0], [1], [0, 0, 1, 1], [], []>} : vector<16x256xbf16>, vector<256x128xbf16>, vector<16x128xf32> -> vector<16x128xf32>
    %c0_15 = arith.constant 0 : index
    %c0_16 = arith.constant 0 : index
    %20 = vector.load %arg7[%c0_15, %c0_16] : memref<1x128xf32, #tpu.memory_space<vmem>>, vector<1x128xf32>
    %21 = vector.broadcast %20 : vector<1x128xf32> to vector<16x128xf32>
    %22 = arith.addf %19, %21 : vector<16x128xf32>
    %cst_17 = arith.constant 0.000000e+00 : f32
    %23 = vector.broadcast %cst_17 : f32 to vector<16x128xf32>
    %24 = arith.maximumf %22, %23 : vector<16x128xf32>
    %25 = arith.truncf %24 : vector<16x128xf32> to vector<16x128xbf16>
    %c0_18 = arith.constant 0 : index
    %c0_19 = arith.constant 0 : index
    %26 = vector.load %arg8[%c0_18, %c0_19] : memref<128x128xbf16, #tpu.memory_space<vmem>>, vector<128x128xbf16>
    %cst_20 = arith.constant dense<0.000000e+00> : vector<16x128xf32>
    %27 = tpu.matmul %25, %26, %cst_20 {dimension_numbers = #tpu.dot_dimension_numbers<[1], [0], [0], [1], [0, 0, 1, 1], [], []>} : vector<16x128xbf16>, vector<128x128xbf16>, vector<16x128xf32> -> vector<16x128xf32>
    %c0_21 = arith.constant 0 : index
    %c0_22 = arith.constant 0 : index
    %28 = vector.load %arg9[%c0_21, %c0_22] : memref<1x128xf32, #tpu.memory_space<vmem>>, vector<1x128xf32>
    %29 = vector.broadcast %28 : vector<1x128xf32> to vector<16x128xf32>
    %30 = arith.addf %27, %29 : vector<16x128xf32>
    %c0_23 = arith.constant 0 : index
    %c0_24 = arith.constant 0 : index
    %31 = vector.load %arg10[%c0_23, %c0_24] : memref<16x128xf32, #tpu.memory_space<vmem>>, vector<16x128xf32>
    tpu.vector_store %arg10[%c0_23, %c0_24], %30 {strides = array<i32>} : memref<16x128xf32, #tpu.memory_space<vmem>>, vector<16x128xf32>,
    return
  }
  func.func @transform_0(%arg0: i32) -> (i32, i32) {
    %c0_i32 = arith.constant 0 : i32
    %c0_i32_0 = arith.constant 0 : i32
    return %arg0, %c0_i32 : i32, i32
  }
  func.func @transform_1(%arg0: i32) -> (i32, i32) {
    %c0_i32 = arith.constant 0 : i32
    %c0_i32_0 = arith.constant 0 : i32
    %c0_i32_1 = arith.constant 0 : i32
    return %c0_i32, %c0_i32_0 : i32, i32
  }
  func.func @transform_2(%arg0: i32) -> (i32, i32) {
    %c0_i32 = arith.constant 0 : i32
    %c0_i32_0 = arith.constant 0 : i32
    %c0_i32_1 = arith.constant 0 : i32
    return %c0_i32, %c0_i32_0 : i32, i32
  }
  func.func @transform_3(%arg0: i32) -> (i32, i32) {
    %c0_i32 = arith.constant 0 : i32
    %c0_i32_0 = arith.constant 0 : i32
    %c0_i32_1 = arith.constant 0 : i32
    return %c0_i32, %c0_i32_0 : i32, i32
  }
  func.func @transform_4(%arg0: i32) -> (i32, i32) {
    %c0_i32 = arith.constant 0 : i32
    %c0_i32_0 = arith.constant 0 : i32
    %c0_i32_1 = arith.constant 0 : i32
    return %c0_i32, %c0_i32_0 : i32, i32
  }
  func.func @transform_5(%arg0: i32) -> (i32, i32) {
    %c0_i32 = arith.constant 0 : i32
    %c0_i32_0 = arith.constant 0 : i32
    %c0_i32_1 = arith.constant 0 : i32
    return %c0_i32, %c0_i32_0 : i32, i32
  }
  func.func @transform_6(%arg0: i32) -> (i32, i32) {
    %c0_i32 = arith.constant 0 : i32
    %c0_i32_0 = arith.constant 0 : i32
    %c0_i32_1 = arith.constant 0 : i32
    return %c0_i32, %c0_i32_0 : i32, i32
  }
  func.func @transform_7(%arg0: i32) -> (i32, i32) {
    %c0_i32 = arith.constant 0 : i32
    %c0_i32_0 = arith.constant 0 : i32
    %c0_i32_1 = arith.constant 0 : i32
    return %c0_i32, %c0_i32_0 : i32, i32
  }
  func.func @transform_8(%arg0: i32) -> (i32, i32) {
    %c0_i32 = arith.constant 0 : i32
    %c0_i32_0 = arith.constant 0 : i32
    %c0_i32_1 = arith.constant 0 : i32
    return %c0_i32, %c0_i32_0 : i32, i32
  }
  func.func @transform_9(%arg0: i32) -> (i32, i32) {
    %c0_i32 = arith.constant 0 : i32
    %c0_i32_0 = arith.constant 0 : i32
    return %arg0, %c0_i32 : i32, i32
  }
}

</mosaic_0001>

<bundles_post_ra>
// kernel: tpu_custom_call.1
= control target key start
LH: loop header
LB: loop body
LE: loop exit
PB: predicated region body
PF: predicated region fallthrough
CT: control target
= control target key end

     0   :  { %14 = vsyncpa [#allocation3], 0  ;;  %s10241_s0 = inlined_call_operand.hbm [shape: f32[2,3072], index: 0, kind: input, shape index: {}]   ;;  %s10242_s1 = inlined_call_operand.hbm [shape: bf16[3072,512], index: 1, kind: input, shape index: {}]   ;;  %s10243_s2 = inlined_call_operand.hbm [shape: f32[1,512], index: 2, kind: input, shape index: {}]   ;;  %s10244_s3 = inlined_call_operand.hbm [shape: bf16[512,256], index: 3, kind: input, shape index: {}]   ;;  %s10245_s4 = inlined_call_operand.hbm [shape: f32[1,256], index: 4, kind: input, shape index: {}]   ;;  %s10246_s5 = inlined_call_operand.hbm [shape: bf16[256,128], index: 5, kind: input, shape index: {}]   ;;  %s10247_s6 = inlined_call_operand.hbm [shape: f32[1,128], index: 6, kind: input, shape index: {}]   ;;  %s10248_s7 = inlined_call_operand.hbm [shape: bf16[128,128], index: 7, kind: input, shape index: {}]   ;;  %s10249_s8 = inlined_call_operand.hbm [shape: f32[1,128], index: 8, kind: input, shape index: {}]   ;;  %s10250_s9 = inlined_call_operand.hbm [shape: f32[2,128], index: 9, kind: output, shape index: {}]  }
   0x1   :  { %15 = vsyncpa [#allocation6], 0 }
   0x2   :  { %16 = vsyncpa [#allocation9], 0 }
   0x3   :  { %17 = vsyncpa [#allocation12], 0 }
   0x4   :  { %18 = vsyncpa [#allocation15], 0 }
   0x5   :  { %19 = vsyncpa [#allocation4], 0 }
   0x6   :  { %24 = vsyncadd [#allocation3], 5376  ;;  %s9713_s30 = smov [#allocation5]  }
   0x7   :  { %s37_s10 = sshll.u32 %s9713_s30, 4  ;;  %s38_s10 = int_to_ptr.vmem [resolvable:$true] %s37_s10 }
   0x8   :  { %s9509_s11 = scalar_lea.vmem %s38_s10, 98304  ;;  %p9514_p1 = scmp.lt.s32.totalorder %s38_s10, %s38_s10 }
   0x9   :  { %p9510_p0 = scmp.ne.s32.totalorder %s38_s10, %s9509_s11  ;;  %p9515_p2 = scmp.lt.s32.totalorder %s9509_s11, %s9509_s11 }
   0xb   :  { %p9516_p3 = por %p9515_p2, %p9514_p1 }
   0xd   :  { %p9517_p4 = pnand %p9516_p3, %p9510_p0 }
   0xf   :  { %9520 = shalt.err (!%p9517_p4)
}
  0x10   :  { %s9714_s12 = smov 256   ;;  %s9715_s13 = smov 16  }
  0x11   :  { %43 = dma.hbm_to_vmem [thread:$0]  %s10242_s1, 98304, %s38_s10, [#allocation6], %s9714_s12, %s9714_s12, %s9715_s13  }
  0x12   :  { %s9716_s16 = smov [#allocation8]  }
  0x13   :  { %s59_s17 = sshll.u32 %s9716_s16, 4  ;;  %s60_s17 = int_to_ptr.vmem [resolvable:$true] %s59_s17 }
  0x14   :  { %s9529_s18 = scalar_lea.vmem %s60_s17, 8192  ;;  %p9534_p6 = scmp.lt.s32.totalorder %s60_s17, %s60_s17 }
  0x15   :  { %p9530_p5 = scmp.ne.s32.totalorder %s60_s17, %s9529_s18  ;;  %p9535_p7 = scmp.lt.s32.totalorder %s9529_s18, %s9529_s18 }
  0x17   :  { %p9536_p8 = por %p9535_p7, %p9534_p6 }
  0x19   :  { %p9537_p9 = pnand %p9536_p8, %p9530_p5 }
  0x1b   :  { %9540 = shalt.err (!%p9537_p9)
}
  0x1c   :  { %s9717_s19 = smov 128   ;;  %s9718_s20 = smov 8  }
  0x1d   :  { %65 = dma.hbm_to_vmem [thread:$0]  %s10244_s3, 8192, %s60_s17, [#allocation9], %s9717_s19, %s9717_s19, %s9718_s20  }
  0x1e   :  { %s9719_s23 = smov [#allocation11]  }
  0x1f   :  { %s81_s24 = sshll.u32 %s9719_s23, 4  ;;  %s82_s24 = int_to_ptr.vmem [resolvable:$true] %s81_s24 }
  0x20   :  { %s9549_s1 = scalar_lea.vmem %s82_s24, 2048  ;;  %p9554_p11 = scmp.lt.s32.totalorder %s82_s24, %s82_s24 }
  0x21   :  { %p9550_p10 = scmp.ne.s32.totalorder %s82_s24, %s9549_s1  ;;  %p9555_p12 = scmp.lt.s32.totalorder %s9549_s1, %s9549_s1 }
  0x23   :  { %p9556_p13 = por %p9555_p12, %p9554_p11 }
  0x25   :  { %p9557_p0 = pnand %p9556_p13, %p9550_p10 }
  0x27   :  { %9560 = shalt.err (!%p9557_p0)
}
  0x28   :  { %s9720_s25 = smov 64   ;;  %s9721_s26 = smov 4  }
  0x29   :  { %87 = dma.hbm_to_vmem [thread:$0]  %s10246_s5, 2048, %s82_s24, [#allocation12], %s9720_s25, %s9720_s25, %s9721_s26  }
  0x2a   :  { %s9722_s29 = smov [#allocation14]   ;;  %s9723_s3 = smov [#allocation2]  }
  0x2b   :  { %s103_s30 = sshll.u32 %s9722_s29, 4  ;;  %s25_s10 = sshll.u32 %s9723_s3, 4  ;;  %s104_s30 = int_to_ptr.vmem [resolvable:$true] %s103_s30  ;;  %s26_s10 = int_to_ptr.vmem [resolvable:$true] %s25_s10 }
  0x2c   :  { %s9569_s11 = scalar_lea.vmem %s104_s30, 1024  ;;  %p9574_p2 = scmp.lt.s32.totalorder %s104_s30, %s104_s30 }
  0x2d   :  { %p9570_p1 = scmp.ne.s32.totalorder %s104_s30, %s9569_s11  ;;  %p9575_p3 = scmp.lt.s32.totalorder %s9569_s11, %s9569_s11 }
  0x2f   :  { %p9576_p4 = por %p9575_p3, %p9574_p2 }
  0x31   :  { %p9577_p5 = pnand %p9576_p4, %p9570_p1 }
  0x33   :  { %9580 = shalt.err (!%p9577_p5)
}
  0x34   :  { %109 = dma.hbm_to_vmem [thread:$0]  %s10248_s7, 1024, %s104_s30, [#allocation15], %s9720_s25, %s9720_s25, %s9721_s26  }
  0x35   :  { %s9589_s14 = scalar_lea.vmem %s26_s10, 768  ;;  %s9593_s5 = scalar_lea.vmem %s26_s10, 6144 }
  0x36   :  { %p9590_p6 = scmp.ne.s32.totalorder %s26_s10, %s9589_s14  ;;  %p9594_p7 = scmp.lt.s32.totalorder %s26_s10, %s26_s10 }
  0x37   :  { %p9595_p8 = scmp.lt.s32.totalorder %s9593_s5, %s9589_s14 }
  0x39   :  { %p9596_p9 = por %p9595_p8, %p9594_p7 }
  0x3b   :  { %p9597_p10 = pnand %p9596_p9, %p9590_p6 }
  0x3d   :  { %9600 = shalt.err (!%p9597_p10)
}
  0x3e   :  { %s9724_s15 = smov 768   ;;  %s9725_s16 = smov 48  }
  0x3f   :  { %31 = dma.hbm_to_vmem [thread:$0]  %s10241_s0, 768, %s26_s10, [#allocation3], %s9724_s15, %s9724_s15, %s9725_s16  }
  0x40   :  { %s9726_s19 = smov [#allocation7]   ;;  %s9727_s21 = smov [#allocation10]  }
  0x41   :  { %s50_s20 = sshll.u32 %s9726_s19, 4  ;;  %s72_s7 = sshll.u32 %s9727_s21, 4  ;;  %s51_s20 = int_to_ptr.vmem [resolvable:$true] %s50_s20  ;;  %s73_s7 = int_to_ptr.vmem [resolvable:$true] %s72_s7 }
  0x42   :  { %s9609_s22 = scalar_lea.vmem %s51_s20, 64  ;;  %p9614_p12 = scmp.lt.s32.totalorder %s51_s20, %s51_s20 }
  0x43   :  { %p9610_p11 = scmp.ne.s32.totalorder %s51_s20, %s9609_s22  ;;  %p9615_p13 = scmp.lt.s32.totalorder %s9609_s22, %s9609_s22 }
  0x45   :  { %p9616_p0 = por %p9615_p13, %p9614_p12 }
  0x47   :  { %p9617_p1 = pnand %p9616_p0, %p9610_p11 }
  0x49   :  { %9620 = shalt.err (!%p9617_p1)
}
  0x4a   :  { %53 = dma.hbm_to_vmem [thread:$0]  %s10243_s2, 64, %s51_s20, [#allocation6]  }
  0x4b   :  { %s9629_s1 = scalar_lea.vmem %s73_s7, 32  ;;  %p9634_p3 = scmp.lt.s32.totalorder %s73_s7, %s73_s7 }
  0x4c   :  { %p9630_p2 = scmp.ne.s32.totalorder %s73_s7, %s9629_s1  ;;  %p9635_p4 = scmp.lt.s32.totalorder %s9629_s1, %s9629_s1 }
  0x4e   :  { %p9636_p5 = por %p9635_p4, %p9634_p3 }
  0x50   :  { %p9637_p6 = pnand %p9636_p5, %p9630_p2 }
  0x52   :  { %9640 = shalt.err (!%p9637_p6)
}
  0x53   :  { %75 = dma.hbm_to_vmem [thread:$0]  %s10245_s4, 32, %s73_s7, [#allocation9]  }
  0x54   :  { %s9728_s26 = smov [#allocation13]   ;;  %s9729_s28 = smov [#allocation16]  }
  0x55   :  { %s94_s27 = sshll.u32 %s9728_s26, 4  ;;  %s116_s29 = sshll.u32 %s9729_s28, 4  ;;  %s95_s27 = int_to_ptr.vmem [resolvable:$true] %s94_s27  ;;  %s117_s29 = int_to_ptr.vmem [resolvable:$true] %s116_s29 }
  0x56   :  { %s9649_s30 = scalar_lea.vmem %s95_s27, 16  ;;  %s9653_s2 = scalar_lea.vmem %s95_s27, 32 }
  0x57   :  { %p9650_p7 = scmp.ne.s32.totalorder %s95_s27, %s9649_s30  ;;  %p9654_p8 = scmp.lt.s32.totalorder %s95_s27, %s95_s27 }
  0x58   :  { %p9655_p9 = scmp.lt.s32.totalorder %s9653_s2, %s9649_s30 }
  0x5a   :  { %p9656_p10 = por %p9655_p9, %p9654_p8 }
  0x5c   :  { %p9657_p11 = pnand %p9656_p10, %p9650_p7 }
  0x5e   :  { %9660 = shalt.err (!%p9657_p11)
}
  0x5f   :  { %97 = dma.hbm_to_vmem [thread:$0]  %s10247_s6, 16, %s95_s27, [#allocation12]  }
  0x60   :  { %s9669_s11 = scalar_lea.vmem %s117_s29, 16  ;;  %s9673_s4 = scalar_lea.vmem %s117_s29, 32 }
  0x61   :  { %p9670_p12 = scmp.ne.s32.totalorder %s117_s29, %s9669_s11  ;;  %p9674_p13 = scmp.lt.s32.totalorder %s117_s29, %s117_s29 }
  0x62   :  { %p9675_p0 = scmp.lt.s32.totalorder %s9673_s4, %s9669_s11 }
  0x64   :  { %p9676_p1 = por %p9675_p0, %p9674_p13 }
  0x66   :  { %p9677_p2 = pnand %p9676_p1, %p9670_p12 }
  0x68   :  { %9680 = shalt.err (!%p9677_p2)
}
  0x69   :  { %119 = dma.hbm_to_vmem [thread:$0]  %s10249_s8, 16, %s117_s29, [#allocation15]  }
  0x6a   :  { %9701 = dma.done.wait [#allocation3], 6144  }
  0x6b   :  { %9702 = vsyncadd [#allocation3], 4294961152 }
  0x6c   :  { %9703 = dma.done.wait [#allocation6], 98368  }
  0x6d   :  { %9704 = vsyncadd [#allocation6], 4294868928 }
  0x6e   :  { %9705 = dma.done.wait [#allocation9], 8224  }
  0x6f   :  { %9706 = vsyncadd [#allocation9], 4294959072 }
  0x70   :  { %9707 = dma.done.wait [#allocation12], 2064  }
  0x71   :  { %9708 = vsyncadd [#allocation12], 4294965232 }
  0x72   :  { %9709 = dma.done.wait [#allocation15], 1040  }
  0x73   :  { %9710 = vsyncadd [#allocation15], 4294966256  ;;  %v8156_v0 = vld [vmem:[#allocation5 + $0xe4] ss:$16 sps:$4 sm:$0xff]   ;;  %v8160_v2 = vld [vmem:[#allocation5 + $0xe0] ss:$16 sps:$4 sm:$0xff]   ;;  %v251_v41 = vlaneseq }
  0x74   :  { %v8158_v1 = vld [vmem:[#allocation5 + $0x2e4] ss:$16 sps:$4 sm:$0xff]   ;;  %5378 = vmatprep.subr.bf16.mxu0 %v8156_v0  ;;  %v8161_v3 = vld [vmem:[#allocation5 + $0x2e0] ss:$16 sps:$4 sm:$0xff]   ;;  %v9730_v39 = vmov 1983009808  }
  0x75   :  { %5421 = vmatprep.subr.bf16.mxu1 %v8158_v1  ;;  %v8162_v4 = vld [vmem:[#allocation5 + $0xc4] ss:$16 sps:$4 sm:$0xff]   ;;  %5379 = vmatpush1.bf16.msra.mxu0 %v8160_v2  ;;  %v8166_v6 = vld [vmem:[#allocation5 + $0xc0] ss:$16 sps:$4 sm:$0xff]   ;;  %v249_v40 = vunpack.c.l.s4 %v9730_v39  ;;  %v9813_v48 = vshrl.u32 %v251_v41, 7  ;;  %vm9732_vm0 = vmmov 0  }
  0x76   :  { %5422 = vmatpush1.bf16.msra.mxu1 %v8161_v3  ;;  %v8164_v5 = vld [vmem:[#allocation5 + $0x2c4] ss:$16 sps:$4 sm:$0xff]   ;;  %5380 = vmatprep.subr.bf16.mxu0 %v8162_v4  ;;  %v8167_v7 = vld [vmem:[#allocation5 + $0x2c0] ss:$16 sps:$4 sm:$0xff]  }
  0x77   :  { %5423 = vmatprep.subr.bf16.mxu1 %v8164_v5  ;;  %v8168_v8 = vld [vmem:[#allocation5 + $0xa4] ss:$16 sps:$4 sm:$0xff]   ;;  %v8172_v10 = vld [vmem:[#allocation5 + $0xa0] ss:$16 sps:$4 sm:$0xff]   ;;  %v250_v47 = vunpack.c.0.s8 %v249_v40 }
  0x78   :  { %v8170_v9 = vld [vmem:[#allocation5 + $0x2a4] ss:$16 sps:$4 sm:$0xff]   ;;  %v8173_v11 = vld [vmem:[#allocation5 + $0x2a0] ss:$16 sps:$4 sm:$0xff]  }
  0x79   :  { %5381 = vmatpush1.bf16.msra.mxu0 %v8166_v6  ;;  %v8174_v12 = vld [vmem:[#allocation5 + $0x84] ss:$16 sps:$4 sm:$0xff]   ;;  %v8178_v14 = vld [vmem:[#allocation5 + $0x80] ss:$16 sps:$4 sm:$0xff]   ;;  %v9816_v55 = vsub.s32 %v250_v47, %v9813_v48 }
  0x7a   :  { %5424 = vmatpush1.bf16.msra.mxu1 %v8167_v7  ;;  %5382 = vmatprep.subr.bf16.mxu0 %v8168_v8  ;;  %v8176_v13 = vld [vmem:[#allocation5 + $0x284] ss:$16 sps:$4 sm:$0xff]   ;;  %v8179_v15 = vld [vmem:[#allocation5 + $0x280] ss:$16 sps:$4 sm:$0xff]  }
  0x7b   :  { %5425 = vmatprep.subr.bf16.mxu1 %v8170_v9  ;;  %v8180_v16 = vld [vmem:[#allocation5 + $0x64] ss:$16 sps:$4 sm:$0xff]   ;;  %v8184_v18 = vld [vmem:[#allocation5 + $0x60] ss:$16 sps:$4 sm:$0xff]  }
  0x7c   :  { %v8182_v17 = vld [vmem:[#allocation5 + $0x264] ss:$16 sps:$4 sm:$0xff]   ;;  %v8185_v19 = vld [vmem:[#allocation5 + $0x260] ss:$16 sps:$4 sm:$0xff]  }
  0x7d   :  { %5383 = vmatpush1.bf16.msra.mxu0 %v8172_v10  ;;  %v8186_v20 = vld [vmem:[#allocation5 + $0x44] ss:$16 sps:$4 sm:$0xff]   ;;  %v8190_v22 = vld [vmem:[#allocation5 + $0x40] ss:$16 sps:$4 sm:$0xff]  }
  0x7e   :  { %5426 = vmatpush1.bf16.msra.mxu1 %v8173_v11  ;;  %5384 = vmatprep.subr.bf16.mxu0 %v8174_v12  ;;  %v8188_v21 = vld [vmem:[#allocation5 + $0x244] ss:$16 sps:$4 sm:$0xff]   ;;  %v8191_v23 = vld [vmem:[#allocation5 + $0x240] ss:$16 sps:$4 sm:$0xff]  }
  0x7f   :  { %5427 = vmatprep.subr.bf16.mxu1 %v8176_v13  ;;  %v8192_v24 = vld [vmem:[#allocation5 + $0x24] ss:$16 sps:$4 sm:$0xff]   ;;  %v8196_v26 = vld [vmem:[#allocation5 + $0x20] ss:$16 sps:$4 sm:$0xff]  }
  0x80   :  { %v8194_v25 = vld [vmem:[#allocation5 + $0x224] ss:$16 sps:$4 sm:$0xff]   ;;  %v8197_v27 = vld [vmem:[#allocation5 + $0x220] ss:$16 sps:$4 sm:$0xff]  }
  0x81   :  { %5385 = vmatpush1.bf16.msra.mxu0 %v8178_v14  ;;  %v8198_v28 = vld [vmem:[#allocation5 + $0x4] ss:$16 sps:$4 sm:$0xff]   ;;  %v8202_v30 = vld [vmem:[#allocation5] ss:$16 sps:$4 sm:$0xff]  }
  0x82   :  { %5428 = vmatpush1.bf16.msra.mxu1 %v8179_v15  ;;  %5386 = vmatprep.subr.bf16.mxu0 %v8180_v16  ;;  %v8200_v29 = vld [vmem:[#allocation5 + $0x204] ss:$16 sps:$4 sm:$0xff]   ;;  %v8203_v31 = vld [vmem:[#allocation5 + $0x200] ss:$16 sps:$4 sm:$0xff]  }
  0x83   :  { %5429 = vmatprep.subr.bf16.mxu1 %v8182_v17  ;;  %v8204_v32 = vld [vmem:[#allocation5 + $0x1e4] ss:$16 sps:$4 sm:$0xff]   ;;  %v8208_v34 = vld [vmem:[#allocation5 + $0x1e0] ss:$16 sps:$4 sm:$0xff]  }
  0x84   :  { %v8206_v33 = vld [vmem:[#allocation5 + $0x3e4] ss:$16 sps:$4 sm:$0xff]   ;;  %v8209_v35 = vld [vmem:[#allocation5 + $0x3e0] ss:$16 sps:$4 sm:$0xff]  }
  0x85   :  { %5387 = vmatpush1.bf16.msra.mxu0 %v8184_v18  ;;  %v8210_v36 = vld [vmem:[#allocation5 + $0x1c4] ss:$16 sps:$4 sm:$0xff]   ;;  %v8214_v38 = vld [vmem:[#allocation5 + $0x1c0] ss:$16 sps:$4 sm:$0xff]  }
  0x86   :  { %5430 = vmatpush1.bf16.msra.mxu1 %v8185_v19  ;;  %5388 = vmatprep.subr.bf16.mxu0 %v8186_v20  ;;  %v8212_v37 = vld [vmem:[#allocation5 + $0x3c4] ss:$16 sps:$4 sm:$0xff]   ;;  %v8215_v42 = vld [vmem:[#allocation5 + $0x3c0] ss:$16 sps:$4 sm:$0xff]  }
  0x87   :  { %5431 = vmatprep.subr.bf16.mxu1 %v8188_v21  ;;  %v8216_v43 = vld [vmem:[#allocation5 + $0x1a4] ss:$16 sps:$4 sm:$0xff]   ;;  %v8220_v45 = vld [vmem:[#allocation5 + $0x1a0] ss:$16 sps:$4 sm:$0xff]  }
  0x88   :  { %v8218_v44 = vld [vmem:[#allocation5 + $0x3a4] ss:$16 sps:$4 sm:$0xff]   ;;  %v8221_v46 = vld [vmem:[#allocation5 + $0x3a0] ss:$16 sps:$4 sm:$0xff]  }
  0x89   :  { %5389 = vmatpush1.bf16.msra.mxu0 %v8190_v22  ;;  %v8222_v49 = vld [vmem:[#allocation5 + $0x184] ss:$16 sps:$4 sm:$0xff]   ;;  %v8226_v51 = vld [vmem:[#allocation5 + $0x180] ss:$16 sps:$4 sm:$0xff]  }
  0x8a   :  { %5432 = vmatpush1.bf16.msra.mxu1 %v8191_v23  ;;  %5390 = vmatprep.subr.bf16.mxu0 %v8192_v24  ;;  %v8224_v50 = vld [vmem:[#allocation5 + $0x384] ss:$16 sps:$4 sm:$0xff]   ;;  %v8227_v52 = vld [vmem:[#allocation5 + $0x380] ss:$16 sps:$4 sm:$0xff]  }
  0x8b   :  { %5433 = vmatprep.subr.bf16.mxu1 %v8194_v25  ;;  %v8228_v53 = vld [vmem:[#allocation5 + $0x164] ss:$16 sps:$4 sm:$0xff]   ;;  %v8252_v56 = vld [vmem:[#allocation2] ss:$48 sps:$4 sm:$0xff]  }
  0x8c   :  { %v8230_v54 = vld [vmem:[#allocation5 + $0x364] ss:$16 sps:$4 sm:$0xff]   ;;  %v8254_v57 = vld [vmem:[#allocation2 + $0x60] ss:$48 sps:$4 sm:$0xff]   ;;  %v254_v63 = vrot.slane %v8252_v56, %v9816_v55 }
  0x8d   :  { %5391 = vmatpush1.bf16.msra.mxu0 %v8196_v26  ;;  %v8232_v58 = vld [vmem:[#allocation5 + $0x160] ss:$16 sps:$4 sm:$0xff]   ;;  %v8260_v62 = vld [vmem:[#allocation2 + $0x4] ss:$48 sps:$4 sm:$0xff]   ;;  %v268_v0 = vrot.slane %v8254_v57, %v9816_v55 }
  0x8e   :  { %5434 = vmatpush1.bf16.msra.mxu1 %v8197_v27  ;;  %5392 = vmatprep.subr.bf16.mxu0 %v8198_v28  ;;  %v8233_v59 = vld [vmem:[#allocation5 + $0x360] ss:$16 sps:$4 sm:$0xff]   ;;  %v8261_v1 = vld [vmem:[#allocation2 + $0x64] ss:$48 sps:$4 sm:$0xff]   ;;  %v261_v7 = vrot.slane %v8260_v62, %v9816_v55 }
  0x8f   :  { %5435 = vmatprep.subr.bf16.mxu1 %v8200_v29  ;;  %v8256_v60 = vld [vmem:[#allocation2 + $0xc0] ss:$48 sps:$4 sm:$0xff]   ;;  %v8262_v2 = vld [vmem:[#allocation2 + $0xc4] ss:$48 sps:$4 sm:$0xff]   ;;  %v277_v9 = vcombine.high %v254_v63, %v268_v0  ;;  %v275_v10 = vrot.slane %v8261_v1, %v9816_v55  ;;  %v276_v28 = vcombine.low %v254_v63, %v268_v0 }
  0x90   :  { %v8258_v61 = vld [vmem:[#allocation2 + $0x120] ss:$48 sps:$4 sm:$0xff]   ;;  %v8263_v3 = vld [vmem:[#allocation2 + $0x124] ss:$48 sps:$4 sm:$0xff]   ;;  %v470_v5 = vrot.slane %v8256_v60, %v9816_v55  ;;  %v477_v11 = vrot.slane %v8262_v2, %v9816_v55 }
  0x91   :  { %5393 = vmatpush1.bf16.msra.mxu0 %v8202_v30  ;;  %v8234_v4 = vld [vmem:[#allocation5 + $0x144] ss:$16 sps:$4 sm:$0xff]   ;;  %v484_v6 = vrot.slane %v8258_v61, %v9816_v55  ;;  %v491_v13 = vrot.slane %v8263_v3, %v9816_v55  ;;  %v8238_v14 = vld [vmem:[#allocation5 + $0x140] ss:$16 sps:$4 sm:$0xff]   ;;  %v279_v16 = vcombine.high %v261_v7, %v275_v10  ;;  %v278_v30 = vcombine.low %v261_v7, %v275_v10  ;;  %v8362_v7 = vld [vmem:[#allocation2 + $0x68] ss:$48 sps:$4 sm:$0xff]  }
  0x92   :  { %5436 = vmatpush1.bf16.msra.mxu1 %v8203_v31  ;;  %5394 = vmatprep.subr.bf16.mxu0 %v8204_v32  ;;  %v8236_v8 = vld [vmem:[#allocation5 + $0x344] ss:$16 sps:$4 sm:$0xff]   ;;  %v8239_v15 = vld [vmem:[#allocation5 + $0x340] ss:$16 sps:$4 sm:$0xff]   ;;  %v8364_v10 = vld [vmem:[#allocation2 + $0xc8] ss:$48 sps:$4 sm:$0xff]  }
  0x93   :  { %5437 = vmatprep.subr.bf16.mxu1 %v8206_v33  ;;  %v493_v12 = vcombine.high %v470_v5, %v484_v6  ;;  %v8240_v17 = vld [vmem:[#allocation5 + $0x124] ss:$16 sps:$4 sm:$0xff]   ;;  %v495_v19 = vcombine.high %v477_v11, %v491_v13  ;;  %v8244_v22 = vld [vmem:[#allocation5 + $0x120] ss:$16 sps:$4 sm:$0xff]   ;;  %v492_v29 = vcombine.low %v470_v5, %v484_v6  ;;  %v494_v31 = vcombine.low %v477_v11, %v491_v13  ;;  %v8360_v6 = vld [vmem:[#allocation2 + $0x8] ss:$48 sps:$4 sm:$0xff]  }
  0x94   :  { %v8242_v20 = vld [vmem:[#allocation5 + $0x324] ss:$16 sps:$4 sm:$0xff]   ;;  %v8245_v23 = vld [vmem:[#allocation5 + $0x320] ss:$16 sps:$4 sm:$0xff]   ;;  %v8366_v11 = vld [vmem:[#allocation2 + $0x128] ss:$48 sps:$4 sm:$0xff]   ;;  %v9839_v13 = vrot.slane %v8360_v6, %v9816_v55 }
  0x95   :  { %5395 = vmatpush2.bf16.msra.mxu0 %v8208_v34  ;;  %v9826_v18 = vpack.c.bf16 %v493_v12, %v277_v9  ;;  %v9829_v21 = vpack.c.bf16 %v495_v19, %v279_v16  ;;  %v8246_v24 = vld [vmem:[#allocation5 + $0x104] ss:$16 sps:$4 sm:$0xff]   ;;  %v8250_v26 = vld [vmem:[#allocation5 + $0x100] ss:$16 sps:$4 sm:$0xff]   ;;  %v9832_v34 = vpack.c.bf16 %v492_v29, %v276_v28  ;;  %v8368_v12 = vld [vmem:[#allocation2 + $0xc] ss:$48 sps:$4 sm:$0xff]  }
  0x96   :  { %5438 = vmatpush2.bf16.msra.mxu1 %v8209_v35  ;;  %5396 = vmatprep.subr.bf16.mxu0 %v8210_v36  ;;  %v8248_v25 = vld [vmem:[#allocation5 + $0x304] ss:$16 sps:$4 sm:$0xff]   ;;  %v8251_v27 = vld [vmem:[#allocation5 + $0x300] ss:$16 sps:$4 sm:$0xff]   ;;  %v9834_v35 = vpack.c.bf16 %v494_v31, %v278_v30  ;;  %v8370_v16 = vld [vmem:[#allocation2 + $0xcc] ss:$48 sps:$4 sm:$0xff]  }
  0x97   :  { %5439 = vmatprep.subr.bf16.mxu1 %v8212_v37  ;;  %5410 = vmatprep.mubr.bf16.mxu0 %v9826_v18  ;;  %v8266_v32 = vld [vmem:[#allocation5 + $0x4e4] ss:$16 sps:$4 sm:$0xff]   ;;  %v8264_v36 = vld [vmem:[#allocation5 + $0x4e0] ss:$16 sps:$4 sm:$0xff]  }
  0x98   :  { %5453 = vmatprep.mubr.bf16.mxu1 %v9829_v21  ;;  %v8269_v33 = vld [vmem:[#allocation5 + $0x6e4] ss:$16 sps:$4 sm:$0xff]   ;;  %v8267_v37 = vld [vmem:[#allocation5 + $0x6e0] ss:$16 sps:$4 sm:$0xff]  }
  0x99   :  { %5397 = vmatpush2.bf16.msra.mxu0 %v8214_v38  ;;  %v8272_v38 = vld [vmem:[#allocation5 + $0x4c4] ss:$16 sps:$4 sm:$0xff]   ;;  %v8270_v40 = vld [vmem:[#allocation5 + $0x4c0] ss:$16 sps:$4 sm:$0xff]  }
  0x9a   :  { %5440 = vmatpush2.bf16.msra.mxu1 %v8215_v42  ;;  %5398 = vmatprep.subr.bf16.mxu0 %v8216_v43  ;;  %v8275_v39 = vld [vmem:[#allocation5 + $0x6c4] ss:$16 sps:$4 sm:$0xff]   ;;  %v8273_v41 = vld [vmem:[#allocation5 + $0x6c0] ss:$16 sps:$4 sm:$0xff]  }
  0x9b   :  { %5441 = vmatprep.subr.bf16.mxu1 %v8218_v44  ;;  %v8278_v42 = vld [vmem:[#allocation5 + $0x4a4] ss:$16 sps:$4 sm:$0xff]   ;;  %v8276_v44 = vld [vmem:[#allocation5 + $0x4a0] ss:$16 sps:$4 sm:$0xff]  }
  0x9c   :  { %v8281_v43 = vld [vmem:[#allocation5 + $0x6a4] ss:$16 sps:$4 sm:$0xff]   ;;  %v8300_v62 = vld [vmem:[#allocation5 + $0x420] ss:$16 sps:$4 sm:$0xff]  }
  0x9d   :  { %5399 = vmatpush2.bf16.msra.mxu0 %v8220_v45  ;;  %v8279_v45 = vld [vmem:[#allocation5 + $0x6a0] ss:$16 sps:$4 sm:$0xff]   ;;  %v8287_v47 = vld [vmem:[#allocation5 + $0x684] ss:$16 sps:$4 sm:$0xff]  }
  0x9e   :  { %5442 = vmatpush2.bf16.msra.mxu1 %v8221_v46  ;;  %5400 = vmatprep.subr.bf16.mxu0 %v8222_v49  ;;  %v8284_v46 = vld [vmem:[#allocation5 + $0x484] ss:$16 sps:$4 sm:$0xff]   ;;  %v8282_v49 = vld [vmem:[#allocation5 + $0x480] ss:$16 sps:$4 sm:$0xff]  }
  0x9f   :  { %5443 = vmatprep.subr.bf16.mxu1 %v8224_v50  ;;  %v8285_v50 = vld [vmem:[#allocation5 + $0x680] ss:$16 sps:$4 sm:$0xff]   ;;  %v8296_v56 = vld [vmem:[#allocation5 + $0x444] ss:$16 sps:$4 sm:$0xff]  }
  0xa0   :  { %v8299_v57 = vld [vmem:[#allocation5 + $0x644] ss:$16 sps:$4 sm:$0xff]   ;;  %v8303_v63 = vld [vmem:[#allocation5 + $0x620] ss:$16 sps:$4 sm:$0xff]  }
  0xa1   :  { %5401 = vmatpush2.bf16.msra.mxu0 %v8226_v51  ;;  %v8290_v51 = vld [vmem:[#allocation5 + $0x464] ss:$16 sps:$4 sm:$0xff]   ;;  %v8306_v2 = vld [vmem:[#allocation5 + $0x400] ss:$16 sps:$4 sm:$0xff]  }
  0xa2   :  { %5444 = vmatpush2.bf16.msra.mxu1 %v8227_v52  ;;  %5402 = vmatprep.subr.bf16.mxu0 %v8228_v53  ;;  %v8293_v52 = vld [vmem:[#allocation5 + $0x664] ss:$16 sps:$4 sm:$0xff]   ;;  %v8288_v53 = vld [vmem:[#allocation5 + $0x460] ss:$16 sps:$4 sm:$0xff]  }
  0xa3   :  { %5445 = vmatprep.subr.bf16.mxu1 %v8230_v54  ;;  %v8291_v54 = vld [vmem:[#allocation5 + $0x660] ss:$16 sps:$4 sm:$0xff]   ;;  %v8302_v60 = vld [vmem:[#allocation5 + $0x424] ss:$16 sps:$4 sm:$0xff]  }
  0xa4   :  { %v8305_v61 = vld [vmem:[#allocation5 + $0x624] ss:$16 sps:$4 sm:$0xff]   ;;  %v8309_v3 = vld [vmem:[#allocation5 + $0x600] ss:$16 sps:$4 sm:$0xff]  }
  0xa5   :  { %5403 = vmatpush2.bf16.msra.mxu0 %v8232_v58  ;;  %v8294_v58 = vld [vmem:[#allocation5 + $0x440] ss:$16 sps:$4 sm:$0xff]   ;;  %v8308_v0 = vld [vmem:[#allocation5 + $0x404] ss:$16 sps:$4 sm:$0xff]  }
  0xa6   :  { %5446 = vmatpush2.bf16.msra.mxu1 %v8233_v59  ;;  %5404 = vmatprep.subr.bf16.mxu0 %v8234_v4  ;;  %v8297_v59 = vld [vmem:[#allocation5 + $0x640] ss:$16 sps:$4 sm:$0xff]   ;;  %v8311_v1 = vld [vmem:[#allocation5 + $0x604] ss:$16 sps:$4 sm:$0xff]  }
  0xa7   :  { %5447 = vmatprep.subr.bf16.mxu1 %v8236_v8  ;;  %v8314_v4 = vld [vmem:[#allocation5 + $0x5e4] ss:$16 sps:$4 sm:$0xff]   ;;  %v8312_v8 = vld [vmem:[#allocation5 + $0x5e0] ss:$16 sps:$4 sm:$0xff]  }
  0xa8   :  { %v8317_v5 = vld [vmem:[#allocation5 + $0x7e4] ss:$16 sps:$4 sm:$0xff]   ;;  %v8315_v9 = vld [vmem:[#allocation5 + $0x7e0] ss:$16 sps:$4 sm:$0xff]  }
  0xa9   :  { %5405 = vmatpush2.bf16.msra.mxu0 %v8238_v14  ;;  %v9842_v14 = vrot.slane %v8362_v7, %v9816_v55  ;;  %v8320_v19 = vld [vmem:[#allocation5 + $0x5c4] ss:$16 sps:$4 sm:$0xff]   ;;  %v8318_v30 = vld [vmem:[#allocation5 + $0x5c0] ss:$16 sps:$4 sm:$0xff]  }
  0xaa   :  { %5448 = vmatpush2.bf16.msra.mxu1 %v8239_v15  ;;  %5406 = vmatprep.subr.bf16.mxu0 %v8240_v17  ;;  %v8369_v15 = vld [vmem:[#allocation2 + $0x6c] ss:$48 sps:$4 sm:$0xff]   ;;  %v8321_v31 = vld [vmem:[#allocation5 + $0x7c0] ss:$16 sps:$4 sm:$0xff]  }
  0xab   :  { %5449 = vmatprep.subr.bf16.mxu1 %v8242_v20  ;;  %v8371_v17 = vld [vmem:[#allocation2 + $0x12c] ss:$48 sps:$4 sm:$0xff]   ;;  %v9845_v20 = vrot.slane %v8364_v10, %v9816_v55  ;;  %v8380_v10 = vld [vmem:[#allocation5 + $0x8c4] ss:$16 sps:$4 sm:$0xff]  }
  0xac   :  { %v9864_v29 = vrot.slane %v8371_v17, %v9816_v55  ;;  %v8387_v17 = vld [vmem:[#allocation5 + $0xaa0] ss:$16 sps:$4 sm:$0xff]  }
  0xad   :  { %5407 = vmatpush2.bf16.msra.mxu0 %v8244_v22  ;;  %v9848_v22 = vrot.slane %v8366_v11, %v9816_v55  ;;  %v8383_v11 = vld [vmem:[#allocation5 + $0xac4] ss:$16 sps:$4 sm:$0xff]  }
  0xae   :  { %5450 = vmatpush2.bf16.msra.mxu1 %v8245_v23  ;;  %5408 = vmatprep.subr.bf16.mxu0 %v8246_v24  ;;  %v9851_v23 = vrot.slane %v8368_v12, %v9816_v55  ;;  %v8323_v24 = vld [vmem:[#allocation5 + $0x7c4] ss:$16 sps:$4 sm:$0xff]   ;;  %v8378_v12 = vld [vmem:[#allocation5 + $0x8c0] ss:$16 sps:$4 sm:$0xff]  }
  0xaf   :  { %5451 = vmatprep.subr.bf16.mxu1 %v8248_v25  ;;  %v313_v25 = vcombine.high %v9839_v13, %v9842_v14  ;;  %v529_v28 = vcombine.high %v9845_v20, %v9848_v22 }
  0xb1   :  { %5409 = vmatpush2.bf16.msra.mxu0 %v8250_v26  ;;  %v9856_v26 = vrot.slane %v8369_v15, %v9816_v55  ;;  %v8389_v15 = vld [vmem:[#allocation5 + $0xaa4] ss:$16 sps:$4 sm:$0xff]  }
  0xb2   :  { %5452 = vmatpush2.bf16.msra.mxu1 %v8251_v27  ;;  %5464 = vmatprep.subr.bf16.mxu0 %v8266_v32  ;;  %v9859_v27 = vrot.slane %v8370_v16, %v9816_v55  ;;  %v8384_v16 = vld [vmem:[#allocation5 + $0x8a0] ss:$16 sps:$4 sm:$0xff]  }
  0xb3   :  { %5507 = vmatprep.subr.bf16.mxu1 %v8269_v33  ;;  %v315_v32 = vcombine.high %v9851_v23, %v9856_v26  ;;  %v8326_v33 = vld [vmem:[#allocation5 + $0x5a4] ss:$16 sps:$4 sm:$0xff]  }
  0xb4   :  { %5411 = vmatmul.mubr.bf16.vlgmr.msra.gmra.mxu0 %v9832_v34 }
  0xb5   :  { %5454 = vmatmul.mubr.bf16.vlgmr.msra.gmra.mxu1 %v9834_v35  ;;  %5465 = vmatpush1.bf16.msra.mxu0 %v8264_v36  ;;  %v9868_v36 = vpack.c.bf16 %v529_v28, %v313_v25  ;;  %v8401_v25 = vld [vmem:[#allocation5 + $0xa64] ss:$16 sps:$4 sm:$0xff]   ;;  %v8396_v28 = vld [vmem:[#allocation5 + $0x860] ss:$16 sps:$4 sm:$0xff]  }
  0xb6   :  { %5508 = vmatpush1.bf16.msra.mxu1 %v8267_v37  ;;  %5466 = vmatprep.subr.bf16.mxu0 %v8272_v38  ;;  %v531_v37 = vcombine.high %v9859_v27, %v9864_v29  ;;  %v8329_v38 = vld [vmem:[#allocation5 + $0x7a4] ss:$16 sps:$4 sm:$0xff]  }
  0xb7   :  { %5509 = vmatprep.subr.bf16.mxu1 %v8275_v39  ;;  %5496 = vmatprep.mubr.bf16.mxu0 %v9868_v36 }
  0xb8   :  { %v9873_v39 = vpack.c.bf16 %v531_v37, %v315_v32  ;;  %v8476_v32 = vld [vmem:[#allocation2 + $0x14] ss:$48 sps:$4 sm:$0xff]  }
  0xb9   :  { %5467 = vmatpush1.bf16.msra.mxu0 %v8270_v40  ;;  %v8324_v40 = vld [vmem:[#allocation5 + $0x5a0] ss:$16 sps:$4 sm:$0xff]  }
  0xba   :  { %5510 = vmatpush1.bf16.msra.mxu1 %v8273_v41  ;;  %5468 = vmatprep.subr.bf16.mxu0 %v8278_v42  ;;  %v8327_v41 = vld [vmem:[#allocation5 + $0x7a0] ss:$16 sps:$4 sm:$0xff]   ;;  %v8332_v42 = vld [vmem:[#allocation5 + $0x584] ss:$16 sps:$4 sm:$0xff]  }
  0xbb   :  { %5511 = vmatprep.subr.bf16.mxu1 %v8281_v43  ;;  %v8335_v43 = vld [vmem:[#allocation5 + $0x784] ss:$16 sps:$4 sm:$0xff]   ;;  %5539 = vmatprep.mubr.bf16.mxu1 %v9873_v39 }
  0xbd   :  { %5469 = vmatpush1.bf16.msra.mxu0 %v8276_v44  ;;  %v8330_v44 = vld [vmem:[#allocation5 + $0x580] ss:$16 sps:$4 sm:$0xff]  }
  0xbe   :  { %5512 = vmatpush1.bf16.msra.mxu1 %v8279_v45  ;;  %5470 = vmatprep.subr.bf16.mxu0 %v8284_v46  ;;  %v8333_v45 = vld [vmem:[#allocation5 + $0x780] ss:$16 sps:$4 sm:$0xff]   ;;  %v8338_v46 = vld [vmem:[#allocation5 + $0x564] ss:$16 sps:$4 sm:$0xff]  }
  0xbf   :  { %5513 = vmatprep.subr.bf16.mxu1 %v8287_v47  ;;  %v8341_v47 = vld [vmem:[#allocation5 + $0x764] ss:$16 sps:$4 sm:$0xff]  }
  0xc1   :  { %5471 = vmatpush1.bf16.msra.mxu0 %v8282_v49  ;;  %v8336_v49 = vld [vmem:[#allocation5 + $0x560] ss:$16 sps:$4 sm:$0xff]  }
  0xc2   :  { %5514 = vmatpush1.bf16.msra.mxu1 %v8285_v50  ;;  %5472 = vmatprep.subr.bf16.mxu0 %v8290_v51  ;;  %v8339_v50 = vld [vmem:[#allocation5 + $0x760] ss:$16 sps:$4 sm:$0xff]   ;;  %v8344_v51 = vld [vmem:[#allocation5 + $0x544] ss:$16 sps:$4 sm:$0xff]  }
  0xc3   :  { %5515 = vmatprep.subr.bf16.mxu1 %v8293_v52  ;;  %v8347_v52 = vld [vmem:[#allocation5 + $0x744] ss:$16 sps:$4 sm:$0xff]  }
  0xc5   :  { %5473 = vmatpush1.bf16.msra.mxu0 %v8288_v53  ;;  %v8342_v53 = vld [vmem:[#allocation5 + $0x540] ss:$16 sps:$4 sm:$0xff]  }
  0xc6   :  { %5516 = vmatpush1.bf16.msra.mxu1 %v8291_v54  ;;  %5474 = vmatprep.subr.bf16.mxu0 %v8296_v56  ;;  %v8345_v54 = vld [vmem:[#allocation5 + $0x740] ss:$16 sps:$4 sm:$0xff]   ;;  %v8350_v56 = vld [vmem:[#allocation5 + $0x524] ss:$16 sps:$4 sm:$0xff]  }
  0xc7   :  { %5517 = vmatprep.subr.bf16.mxu1 %v8299_v57  ;;  %v8353_v57 = vld [vmem:[#allocation5 + $0x724] ss:$16 sps:$4 sm:$0xff]  }
  0xc9   :  { %5475 = vmatpush1.bf16.msra.mxu0 %v8294_v58  ;;  %v8348_v58 = vld [vmem:[#allocation5 + $0x520] ss:$16 sps:$4 sm:$0xff]  }
  0xca   :  { %5518 = vmatpush1.bf16.msra.mxu1 %v8297_v59  ;;  %5476 = vmatprep.subr.bf16.mxu0 %v8302_v60  ;;  %v8351_v59 = vld [vmem:[#allocation5 + $0x720] ss:$16 sps:$4 sm:$0xff]   ;;  %v8356_v60 = vld [vmem:[#allocation5 + $0x504] ss:$16 sps:$4 sm:$0xff]  }
  0xcb   :  { %5519 = vmatprep.subr.bf16.mxu1 %v8305_v61  ;;  %v8359_v61 = vld [vmem:[#allocation5 + $0x704] ss:$16 sps:$4 sm:$0xff]  }
  0xcd   :  { %5477 = vmatpush1.bf16.msra.mxu0 %v8300_v62  ;;  %v8354_v62 = vld [vmem:[#allocation5 + $0x500] ss:$16 sps:$4 sm:$0xff]  }
  0xce   :  { %5520 = vmatpush1.bf16.msra.mxu1 %v8303_v63  ;;  %5478 = vmatprep.subr.bf16.mxu0 %v8308_v0  ;;  %v8357_v63 = vld [vmem:[#allocation5 + $0x700] ss:$16 sps:$4 sm:$0xff]   ;;  %v312_v0 = vcombine.low %v9839_v13, %v9842_v14  ;;  %v8386_v14 = vld [vmem:[#allocation5 + $0x8a4] ss:$16 sps:$4 sm:$0xff]  }
  0xcf   :  { %5521 = vmatprep.subr.bf16.mxu1 %v8311_v1  ;;  %v528_v1 = vcombine.low %v9845_v20, %v9848_v22  ;;  %v8381_v13 = vld [vmem:[#allocation5 + $0xac0] ss:$16 sps:$4 sm:$0xff]   ;;  %v8395_v20 = vld [vmem:[#allocation5 + $0xa84] ss:$16 sps:$4 sm:$0xff]  }
  0xd0   :  { %v8390_v22 = vld [vmem:[#allocation5 + $0x880] ss:$16 sps:$4 sm:$0xff]  }
  0xd1   :  { %5479 = vmatpush1.bf16.msra.mxu0 %v8306_v2  ;;  %v314_v2 = vcombine.low %v9851_v23, %v9856_v26  ;;  %v9884_v6 = vpack.c.bf16 %v528_v1, %v312_v0  ;;  %v8393_v23 = vld [vmem:[#allocation5 + $0xa80] ss:$16 sps:$4 sm:$0xff]   ;;  %v8416_v0 = vld [vmem:[#allocation5 + $0x804] ss:$16 sps:$4 sm:$0xff]  }
  0xd2   :  { %5522 = vmatpush1.bf16.msra.mxu1 %v8309_v3  ;;  %5480 = vmatprep.subr.bf16.mxu0 %v8314_v4  ;;  %v530_v3 = vcombine.low %v9859_v27, %v9864_v29  ;;  %v8374_v4 = vld [vmem:[#allocation5 + $0x8e4] ss:$16 sps:$4 sm:$0xff]   ;;  %v8468_v26 = vld [vmem:[#allocation2 + $0x10] ss:$48 sps:$4 sm:$0xff]  }
  0xd3   :  { %5523 = vmatprep.subr.bf16.mxu1 %v8317_v5  ;;  %v8377_v5 = vld [vmem:[#allocation5 + $0xae4] ss:$16 sps:$4 sm:$0xff]   ;;  %v8470_v27 = vld [vmem:[#allocation2 + $0x70] ss:$48 sps:$4 sm:$0xff]  }
  0xd4   :  { %v9886_v7 = vpack.c.bf16 %v530_v3, %v314_v2  ;;  %v8399_v29 = vld [vmem:[#allocation5 + $0xa60] ss:$16 sps:$4 sm:$0xff]   ;;  %v9894_v37 = vrot.slane %v8470_v27, %v9816_v55  ;;  %v8419_v1 = vld [vmem:[#allocation5 + $0xa04] ss:$16 sps:$4 sm:$0xff]  }
  0xd5   :  { %5481 = vmatpush2.bf16.msra.mxu0 %v8312_v8  ;;  %v8372_v8 = vld [vmem:[#allocation5 + $0x8e0] ss:$16 sps:$4 sm:$0xff]  }
  0xd6   :  { %5524 = vmatpush2.bf16.msra.mxu1 %v8315_v9  ;;  %5482 = vmatprep.subr.bf16.mxu0 %v8320_v19  ;;  %v8375_v9 = vld [vmem:[#allocation5 + $0xae0] ss:$16 sps:$4 sm:$0xff]   ;;  %v8392_v19 = vld [vmem:[#allocation5 + $0x884] ss:$16 sps:$4 sm:$0xff]  }
  0xd7   :  { %5525 = vmatprep.subr.bf16.mxu1 %v8323_v24  ;;  %v8398_v24 = vld [vmem:[#allocation5 + $0x864] ss:$16 sps:$4 sm:$0xff]   ;;  %v8414_v2 = vld [vmem:[#allocation5 + $0x800] ss:$16 sps:$4 sm:$0xff]  }
  0xd8   :  { %v8417_v3 = vld [vmem:[#allocation5 + $0xa00] ss:$16 sps:$4 sm:$0xff]  }
  0xd9   :  { %5483 = vmatpush2.bf16.msra.mxu0 %v8318_v30  ;;  %v8472_v30 = vld [vmem:[#allocation2 + $0xd0] ss:$48 sps:$4 sm:$0xff]  }
  0xda   :  { %5526 = vmatpush2.bf16.msra.mxu1 %v8321_v31  ;;  %5484 = vmatprep.subr.bf16.mxu0 %v8326_v33  ;;  %v8474_v31 = vld [vmem:[#allocation2 + $0x130] ss:$48 sps:$4 sm:$0xff]   ;;  %v9891_v33 = vrot.slane %v8468_v26, %v9816_v55 }
  0xdb   :  { %5527 = vmatprep.subr.bf16.mxu1 %v8329_v38  ;;  %v8477_v38 = vld [vmem:[#allocation2 + $0x74] ss:$48 sps:$4 sm:$0xff]   ;;  %v8444_v26 = vld [vmem:[#allocation5 + $0x960] ss:$16 sps:$4 sm:$0xff]  }
  0xdc   :  { %v8447_v27 = vld [vmem:[#allocation5 + $0xb60] ss:$16 sps:$4 sm:$0xff]  }
  0xdd   :  { %5485 = vmatpush2.bf16.msra.mxu0 %v8324_v40  ;;  %v8478_v40 = vld [vmem:[#allocation2 + $0xd4] ss:$48 sps:$4 sm:$0xff]  }
  0xde   :  { %5528 = vmatpush2.bf16.msra.mxu1 %v8327_v41  ;;  %5486 = vmatprep.subr.bf16.mxu0 %v8332_v42  ;;  %v8479_v41 = vld [vmem:[#allocation2 + $0x134] ss:$48 sps:$4 sm:$0xff]  }
  0xdf   :  { %5529 = vmatprep.subr.bf16.mxu1 %v8335_v43  ;;  %v8404_v42 = vld [vmem:[#allocation5 + $0x844] ss:$16 sps:$4 sm:$0xff]   ;;  %v9897_v43 = vrot.slane %v8472_v30, %v9816_v55  ;;  %v8450_v30 = vld [vmem:[#allocation5 + $0x940] ss:$16 sps:$4 sm:$0xff]  }
  0xe1   :  { %5487 = vmatpush2.bf16.msra.mxu0 %v8330_v44  ;;  %v9900_v44 = vrot.slane %v8474_v31, %v9816_v55  ;;  %v8453_v31 = vld [vmem:[#allocation5 + $0xb40] ss:$16 sps:$4 sm:$0xff]  }
  0xe2   :  { %5530 = vmatpush2.bf16.msra.mxu1 %v8333_v45  ;;  %5488 = vmatprep.subr.bf16.mxu0 %v8338_v46  ;;  %v9903_v45 = vrot.slane %v8476_v32, %v9816_v55  ;;  %v8407_v46 = vld [vmem:[#allocation5 + $0xa44] ss:$16 sps:$4 sm:$0xff]  }
  0xe3   :  { %5531 = vmatprep.subr.bf16.mxu1 %v8341_v47  ;;  %v349_v47 = vcombine.high %v9891_v33, %v9894_v37  ;;  %v8458_v32 = vld [vmem:[#allocation5 + $0x924] ss:$16 sps:$4 sm:$0xff]  }
  0xe5   :  { %5489 = vmatpush2.bf16.msra.mxu0 %v8336_v49  ;;  %v9908_v49 = vrot.slane %v8477_v38, %v9816_v55  ;;  %v8461_v38 = vld [vmem:[#allocation5 + $0xb24] ss:$16 sps:$4 sm:$0xff]  }
  0xe6   :  { %5532 = vmatpush2.bf16.msra.mxu1 %v8339_v50  ;;  %5490 = vmatprep.subr.bf16.mxu0 %v8344_v51  ;;  %v9911_v50 = vrot.slane %v8478_v40, %v9816_v55  ;;  %v565_v51 = vcombine.high %v9897_v43, %v9900_v44  ;;  %v8456_v40 = vld [vmem:[#allocation5 + $0x920] ss:$16 sps:$4 sm:$0xff]  }
  0xe7   :  { %5533 = vmatprep.subr.bf16.mxu1 %v8347_v52  ;;  %v9916_v52 = vrot.slane %v8479_v41, %v9816_v55  ;;  %v8459_v41 = vld [vmem:[#allocation5 + $0xb20] ss:$16 sps:$4 sm:$0xff]  }
  0xe9   :  { %5491 = vmatpush2.bf16.msra.mxu0 %v8342_v53  ;;  %v8402_v53 = vld [vmem:[#allocation5 + $0x840] ss:$16 sps:$4 sm:$0xff]  }
  0xea   :  { %5534 = vmatpush2.bf16.msra.mxu1 %v8345_v54  ;;  %5492 = vmatprep.subr.bf16.mxu0 %v8350_v56  ;;  %v8405_v54 = vld [vmem:[#allocation5 + $0xa40] ss:$16 sps:$4 sm:$0xff]   ;;  %v351_v56 = vcombine.high %v9903_v45, %v9908_v49 }
  0xeb   :  { %5535 = vmatprep.subr.bf16.mxu1 %v8353_v57  ;;  %v8410_v57 = vld [vmem:[#allocation5 + $0x824] ss:$16 sps:$4 sm:$0xff]  }
  0xed   :  { %5493 = vmatpush2.bf16.msra.mxu0 %v8348_v58  ;;  %v9920_v58 = vpack.c.bf16 %v565_v51, %v349_v47  ;;  %v8462_v47 = vld [vmem:[#allocation5 + $0x900] ss:$16 sps:$4 sm:$0xff]  }
  0xee   :  { %5536 = vmatpush2.bf16.msra.mxu1 %v8351_v59  ;;  %5494 = vmatprep.subr.bf16.mxu0 %v8356_v60  ;;  %v567_v59 = vcombine.high %v9911_v50, %v9916_v52  ;;  %v8413_v60 = vld [vmem:[#allocation5 + $0xa24] ss:$16 sps:$4 sm:$0xff]   ;;  %v8465_v51 = vld [vmem:[#allocation5 + $0xb00] ss:$16 sps:$4 sm:$0xff]  }
  0xef   :  { %5537 = vmatprep.subr.bf16.mxu1 %v8359_v61 }
  0xf0   :  { %v9925_v61 = vpack.c.bf16 %v567_v59, %v351_v56  ;;  %v350_v56 = vcombine.low %v9903_v45, %v9908_v49  ;;  %v8482_v59 = vld [vmem:[#allocation5 + $0xce4] ss:$16 sps:$4 sm:$0xff]   ;;  %v8585_v49 = vld [vmem:[#allocation2 + $0x7c] ss:$48 sps:$4 sm:$0xff]  }
  0xf1   :  { %5495 = vmatpush2.bf16.msra.mxu0 %v8354_v62  ;;  %v8408_v62 = vld [vmem:[#allocation5 + $0x820] ss:$16 sps:$4 sm:$0xff]  }
  0xf2   :  { %5538 = vmatpush2.bf16.msra.mxu1 %v8357_v63  ;;  %5550 = vmatprep.subr.bf16.mxu0 %v8374_v4  ;;  %v8411_v63 = vld [vmem:[#allocation5 + $0xa20] ss:$16 sps:$4 sm:$0xff]   ;;  %v8422_v4 = vld [vmem:[#allocation5 + $0x9e4] ss:$16 sps:$4 sm:$0xff]  }
  0xf3   :  { %5593 = vmatprep.subr.bf16.mxu1 %v8377_v5  ;;  %v8425_v5 = vld [vmem:[#allocation5 + $0xbe4] ss:$16 sps:$4 sm:$0xff]  }
  0xf4   :  { %5497 = vmatmul.mubr.bf16.vlgmr.msra.gmra.mxu0 %v9884_v6 }
  0xf5   :  { %5540 = vmatmul.mubr.bf16.vlgmr.msra.gmra.mxu1 %v9886_v7  ;;  %5551 = vmatpush1.bf16.msra.mxu0 %v8372_v8  ;;  %v8420_v8 = vld [vmem:[#allocation5 + $0x9e0] ss:$16 sps:$4 sm:$0xff]  }
  0xf6   :  { %5594 = vmatpush1.bf16.msra.mxu1 %v8375_v9  ;;  %5552 = vmatprep.subr.bf16.mxu0 %v8380_v10  ;;  %v8423_v9 = vld [vmem:[#allocation5 + $0xbe0] ss:$16 sps:$4 sm:$0xff]   ;;  %v8428_v10 = vld [vmem:[#allocation5 + $0x9c4] ss:$16 sps:$4 sm:$0xff]  }
  0xf7   :  { %5595 = vmatprep.subr.bf16.mxu1 %v8383_v11  ;;  %5582 = vmatprep.mubr.bf16.mxu0 %v9920_v58  ;;  %v8431_v11 = vld [vmem:[#allocation5 + $0xbc4] ss:$16 sps:$4 sm:$0xff]  }
  0xf8   :  { %5625 = vmatprep.mubr.bf16.mxu1 %v9925_v61 }
  0xf9   :  { %5553 = vmatpush1.bf16.msra.mxu0 %v8378_v12  ;;  %v8426_v12 = vld [vmem:[#allocation5 + $0x9c0] ss:$16 sps:$4 sm:$0xff]  }
  0xfa   :  { %5596 = vmatpush1.bf16.msra.mxu1 %v8381_v13  ;;  %5554 = vmatprep.subr.bf16.mxu0 %v8386_v14  ;;  %v8429_v13 = vld [vmem:[#allocation5 + $0xbc0] ss:$16 sps:$4 sm:$0xff]   ;;  %v8434_v14 = vld [vmem:[#allocation5 + $0x9a4] ss:$16 sps:$4 sm:$0xff]  }
  0xfb   :  { %5597 = vmatprep.subr.bf16.mxu1 %v8389_v15  ;;  %v8437_v15 = vld [vmem:[#allocation5 + $0xba4] ss:$16 sps:$4 sm:$0xff]  }
  0xfd   :  { %5555 = vmatpush1.bf16.msra.mxu0 %v8384_v16  ;;  %v8432_v16 = vld [vmem:[#allocation5 + $0x9a0] ss:$16 sps:$4 sm:$0xff]  }
  0xfe   :  { %5598 = vmatpush1.bf16.msra.mxu1 %v8387_v17  ;;  %5556 = vmatprep.subr.bf16.mxu0 %v8392_v19  ;;  %v8435_v17 = vld [vmem:[#allocation5 + $0xba0] ss:$16 sps:$4 sm:$0xff]   ;;  %v8440_v19 = vld [vmem:[#allocation5 + $0x984] ss:$16 sps:$4 sm:$0xff]  }
  0xff   :  { %5599 = vmatprep.subr.bf16.mxu1 %v8395_v20  ;;  %v8443_v20 = vld [vmem:[#allocation5 + $0xb84] ss:$16 sps:$4 sm:$0xff]  }
 0x101   :  { %5557 = vmatpush1.bf16.msra.mxu0 %v8390_v22  ;;  %v8438_v22 = vld [vmem:[#allocation5 + $0x980] ss:$16 sps:$4 sm:$0xff]  }
 0x102   :  { %5600 = vmatpush1.bf16.msra.mxu1 %v8393_v23  ;;  %5558 = vmatprep.subr.bf16.mxu0 %v8398_v24  ;;  %v8441_v23 = vld [vmem:[#allocation5 + $0xb80] ss:$16 sps:$4 sm:$0xff]   ;;  %v8446_v24 = vld [vmem:[#allocation5 + $0x964] ss:$16 sps:$4 sm:$0xff]  }
 0x103   :  { %5601 = vmatprep.subr.bf16.mxu1 %v8401_v25  ;;  %v8449_v25 = vld [vmem:[#allocation5 + $0xb64] ss:$16 sps:$4 sm:$0xff]  }
 0x105   :  { %5559 = vmatpush1.bf16.msra.mxu0 %v8396_v28  ;;  %v8452_v28 = vld [vmem:[#allocation5 + $0x944] ss:$16 sps:$4 sm:$0xff]  }
 0x106   :  { %5602 = vmatpush1.bf16.msra.mxu1 %v8399_v29  ;;  %5560 = vmatprep.subr.bf16.mxu0 %v8404_v42  ;;  %v8455_v29 = vld [vmem:[#allocation5 + $0xb44] ss:$16 sps:$4 sm:$0xff]  }
 0x107   :  { %5603 = vmatprep.subr.bf16.mxu1 %v8407_v46  ;;  %v8464_v42 = vld [vmem:[#allocation5 + $0x904] ss:$16 sps:$4 sm:$0xff]  }
 0x108   :  { %v8467_v46 = vld [vmem:[#allocation5 + $0xb04] ss:$16 sps:$4 sm:$0xff]  }
 0x109   :  { %5561 = vmatpush1.bf16.msra.mxu0 %v8402_v53  ;;  %v348_v53 = vcombine.low %v9891_v33, %v9894_v37  ;;  %v8582_v33 = vld [vmem:[#allocation2 + $0x138] ss:$48 sps:$4 sm:$0xff]   ;;  %v8584_v37 = vld [vmem:[#allocation2 + $0x1c] ss:$48 sps:$4 sm:$0xff]  }
 0x10a   :  { %5604 = vmatpush1.bf16.msra.mxu1 %v8405_v54  ;;  %5562 = vmatprep.subr.bf16.mxu0 %v8410_v57  ;;  %v564_v54 = vcombine.low %v9897_v43, %v9900_v44  ;;  %v566_v57 = vcombine.low %v9911_v50, %v9916_v52  ;;  %v8586_v50 = vld [vmem:[#allocation2 + $0xdc] ss:$48 sps:$4 sm:$0xff]  }
 0x10b   :  { %5605 = vmatprep.subr.bf16.mxu1 %v8413_v60  ;;  %v8485_v60 = vld [vmem:[#allocation5 + $0xee4] ss:$16 sps:$4 sm:$0xff]   ;;  %v8587_v52 = vld [vmem:[#allocation2 + $0x13c] ss:$48 sps:$4 sm:$0xff]  }
 0x10c   :  { %v9938_v43 = vpack.c.bf16 %v566_v57, %v350_v56  ;;  %v8516_v56 = vld [vmem:[#allocation5 + $0xc20] ss:$16 sps:$4 sm:$0xff]  }
 0x10d   :  { %5563 = vmatpush1.bf16.msra.mxu0 %v8408_v62  ;;  %v8576_v62 = vld [vmem:[#allocation2 + $0x18] ss:$48 sps:$4 sm:$0xff]   ;;  %v8519_v57 = vld [vmem:[#allocation5 + $0xe20] ss:$16 sps:$4 sm:$0xff]  }
 0x10e   :  { %5606 = vmatpush1.bf16.msra.mxu1 %v8411_v63  ;;  %5564 = vmatprep.subr.bf16.mxu0 %v8416_v0  ;;  %v8578_v63 = vld [vmem:[#allocation2 + $0x78] ss:$48 sps:$4 sm:$0xff]   ;;  %v8480_v0 = vld [vmem:[#allocation5 + $0xce0] ss:$16 sps:$4 sm:$0xff]   ;;  %v9941_v44 = vrot.slane %v8576_v62, %v9816_v55 }
 0x10f   :  { %5607 = vmatprep.subr.bf16.mxu1 %v8419_v1  ;;  %v8580_v1 = vld [vmem:[#allocation2 + $0xd8] ss:$48 sps:$4 sm:$0xff]   ;;  %v9944_v45 = vrot.slane %v8578_v63, %v9816_v55  ;;  %v8522_v62 = vld [vmem:[#allocation5 + $0xc00] ss:$16 sps:$4 sm:$0xff]  }
 0x110   :  { %v8525_v63 = vld [vmem:[#allocation5 + $0xe00] ss:$16 sps:$4 sm:$0xff]  }
 0x111   :  { %5565 = vmatpush1.bf16.msra.mxu0 %v8414_v2  ;;  %v9936_v2 = vpack.c.bf16 %v564_v54, %v348_v53  ;;  %v8518_v53 = vld [vmem:[#allocation5 + $0xc24] ss:$16 sps:$4 sm:$0xff]  }
 0x112   :  { %5608 = vmatpush1.bf16.msra.mxu1 %v8417_v3  ;;  %5566 = vmatprep.subr.bf16.mxu0 %v8422_v4  ;;  %v8483_v3 = vld [vmem:[#allocation5 + $0xee0] ss:$16 sps:$4 sm:$0xff]   ;;  %v9947_v4 = vrot.slane %v8580_v1, %v9816_v55  ;;  %v8521_v54 = vld [vmem:[#allocation5 + $0xe24] ss:$16 sps:$4 sm:$0xff]  }
 0x113   :  { %5609 = vmatprep.subr.bf16.mxu1 %v8425_v5  ;;  %v9950_v5 = vrot.slane %v8582_v33, %v9816_v55  ;;  %v8533_v1 = vld [vmem:[#allocation5 + $0xfe4] ss:$16 sps:$4 sm:$0xff]   ;;  %v8528_v33 = vld [vmem:[#allocation5 + $0xde0] ss:$16 sps:$4 sm:$0xff]  }
 0x115   :  { %5567 = vmatpush2.bf16.msra.mxu0 %v8420_v8  ;;  %v9953_v8 = vrot.slane %v8584_v37, %v9816_v55  ;;  %v8531_v37 = vld [vmem:[#allocation5 + $0xfe0] ss:$16 sps:$4 sm:$0xff]  }
 0x116   :  { %5610 = vmatpush2.bf16.msra.mxu1 %v8423_v9  ;;  %5568 = vmatprep.subr.bf16.mxu0 %v8428_v10  ;;  %v8488_v9 = vld [vmem:[#allocation5 + $0xcc4] ss:$16 sps:$4 sm:$0xff]  }
 0x117   :  { %5611 = vmatprep.subr.bf16.mxu1 %v8431_v11  ;;  %v8491_v10 = vld [vmem:[#allocation5 + $0xec4] ss:$16 sps:$4 sm:$0xff]   ;;  %v385_v11 = vcombine.high %v9941_v44, %v9944_v45 }
 0x119   :  { %5569 = vmatpush2.bf16.msra.mxu0 %v8426_v12  ;;  %v9958_v12 = vrot.slane %v8585_v49, %v9816_v55  ;;  %v8536_v49 = vld [vmem:[#allocation5 + $0xdc4] ss:$16 sps:$4 sm:$0xff]  }
 0x11a   :  { %5612 = vmatpush2.bf16.msra.mxu1 %v8429_v13  ;;  %5570 = vmatprep.subr.bf16.mxu0 %v8434_v14  ;;  %v9961_v13 = vrot.slane %v8586_v50, %v9816_v55  ;;  %v601_v14 = vcombine.high %v9947_v4, %v9950_v5  ;;  %v8539_v50 = vld [vmem:[#allocation5 + $0xfc4] ss:$16 sps:$4 sm:$0xff]  }
 0x11b   :  { %5613 = vmatprep.subr.bf16.mxu1 %v8437_v15  ;;  %v9966_v15 = vrot.slane %v8587_v52, %v9816_v55  ;;  %v8534_v52 = vld [vmem:[#allocation5 + $0xdc0] ss:$16 sps:$4 sm:$0xff]  }
 0x11d   :  { %5571 = vmatpush2.bf16.msra.mxu0 %v8432_v16  ;;  %v8486_v16 = vld [vmem:[#allocation5 + $0xcc0] ss:$16 sps:$4 sm:$0xff]  }
 0x11e   :  { %5614 = vmatpush2.bf16.msra.mxu1 %v8435_v17  ;;  %5572 = vmatprep.subr.bf16.mxu0 %v8440_v19  ;;  %v387_v17 = vcombine.high %v9953_v8, %v9958_v12  ;;  %v8489_v19 = vld [vmem:[#allocation5 + $0xec0] ss:$16 sps:$4 sm:$0xff]  }
 0x11f   :  { %5615 = vmatprep.subr.bf16.mxu1 %v8443_v20  ;;  %v9972_v20 = vpack.c.bf16 %v601_v14, %v385_v11  ;;  %v8540_v11 = vld [vmem:[#allocation5 + $0xda0] ss:$16 sps:$4 sm:$0xff]  }
 0x120   :  { %v8543_v14 = vld [vmem:[#allocation5 + $0xfa0] ss:$16 sps:$4 sm:$0xff]  }
 0x121   :  { %5573 = vmatpush2.bf16.msra.mxu0 %v8438_v22  ;;  %v603_v22 = vcombine.high %v9961_v13, %v9966_v15 }
 0x122   :  { %5616 = vmatpush2.bf16.msra.mxu1 %v8441_v23  ;;  %5574 = vmatprep.subr.bf16.mxu0 %v8446_v24  ;;  %v8494_v23 = vld [vmem:[#allocation5 + $0xca4] ss:$16 sps:$4 sm:$0xff]  }
 0x123   :  { %5617 = vmatprep.subr.bf16.mxu1 %v8449_v25  ;;  %v8497_v24 = vld [vmem:[#allocation5 + $0xea4] ss:$16 sps:$4 sm:$0xff]   ;;  %v9977_v25 = vpack.c.bf16 %v603_v22, %v387_v17  ;;  %v8549_v22 = vld [vmem:[#allocation5 + $0xf80] ss:$16 sps:$4 sm:$0xff]  }
 0x124   :  { %v8551_v17 = vld [vmem:[#allocation5 + $0xf84] ss:$16 sps:$4 sm:$0xff]  }
 0x125   :  { %5575 = vmatpush2.bf16.msra.mxu0 %v8444_v26  ;;  %v8492_v26 = vld [vmem:[#allocation5 + $0xca0] ss:$16 sps:$4 sm:$0xff]  }
 0x126   :  { %5618 = vmatpush2.bf16.msra.mxu1 %v8447_v27  ;;  %5576 = vmatprep.subr.bf16.mxu0 %v8452_v28  ;;  %v8495_v27 = vld [vmem:[#allocation5 + $0xea0] ss:$16 sps:$4 sm:$0xff]   ;;  %v8500_v28 = vld [vmem:[#allocation5 + $0xc84] ss:$16 sps:$4 sm:$0xff]  }
 0x127   :  { %5619 = vmatprep.subr.bf16.mxu1 %v8455_v29  ;;  %v8503_v29 = vld [vmem:[#allocation5 + $0xe84] ss:$16 sps:$4 sm:$0xff]  }
 0x129   :  { %5577 = vmatpush2.bf16.msra.mxu0 %v8450_v30  ;;  %v8498_v30 = vld [vmem:[#allocation5 + $0xc80] ss:$16 sps:$4 sm:$0xff]  }
 0x12a   :  { %5620 = vmatpush2.bf16.msra.mxu1 %v8453_v31  ;;  %5578 = vmatprep.subr.bf16.mxu0 %v8458_v32  ;;  %v8501_v31 = vld [vmem:[#allocation5 + $0xe80] ss:$16 sps:$4 sm:$0xff]   ;;  %v8506_v32 = vld [vmem:[#allocation5 + $0xc64] ss:$16 sps:$4 sm:$0xff]  }
 0x12b   :  { %5621 = vmatprep.subr.bf16.mxu1 %v8461_v38  ;;  %v8509_v38 = vld [vmem:[#allocation5 + $0xe64] ss:$16 sps:$4 sm:$0xff]  }
 0x12d   :  { %5579 = vmatpush2.bf16.msra.mxu0 %v8456_v40  ;;  %v8504_v40 = vld [vmem:[#allocation5 + $0xc60] ss:$16 sps:$4 sm:$0xff]  }
 0x12e   :  { %5622 = vmatpush2.bf16.msra.mxu1 %v8459_v41  ;;  %5580 = vmatprep.subr.bf16.mxu0 %v8464_v42  ;;  %v8507_v41 = vld [vmem:[#allocation5 + $0xe60] ss:$16 sps:$4 sm:$0xff]   ;;  %v8512_v42 = vld [vmem:[#allocation5 + $0xc44] ss:$16 sps:$4 sm:$0xff]  }
 0x12f   :  { %5623 = vmatprep.subr.bf16.mxu1 %v8467_v46  ;;  %v8515_v46 = vld [vmem:[#allocation5 + $0xe44] ss:$16 sps:$4 sm:$0xff]  }
 0x131   :  { %5581 = vmatpush2.bf16.msra.mxu0 %v8462_v47  ;;  %v8510_v47 = vld [vmem:[#allocation5 + $0xc40] ss:$16 sps:$4 sm:$0xff]  }
 0x132   :  { %5624 = vmatpush2.bf16.msra.mxu1 %v8465_v51  ;;  %5636 = vmatprep.subr.bf16.mxu0 %v8482_v59  ;;  %v8513_v51 = vld [vmem:[#allocation5 + $0xe40] ss:$16 sps:$4 sm:$0xff]   ;;  %v8524_v59 = vld [vmem:[#allocation5 + $0xc04] ss:$16 sps:$4 sm:$0xff]  }
 0x133   :  { %5679 = vmatprep.subr.bf16.mxu1 %v8485_v60  ;;  %v8527_v60 = vld [vmem:[#allocation5 + $0xe04] ss:$16 sps:$4 sm:$0xff]  }
 0x134   :  { %5583 = vmatmul.mubr.bf16.vlgmr.msra.gmra.mxu0 %v9936_v2 }
 0x135   :  { %5626 = vmatmul.mubr.bf16.vlgmr.msra.gmra.mxu1 %v9938_v43  ;;  %5637 = vmatpush1.bf16.msra.mxu0 %v8480_v0  ;;  %v8530_v0 = vld [vmem:[#allocation5 + $0xde4] ss:$16 sps:$4 sm:$0xff]  }
 0x136   :  { %5680 = vmatpush1.bf16.msra.mxu1 %v8483_v3  ;;  %5638 = vmatprep.subr.bf16.mxu0 %v8488_v9  ;;  %v8537_v3 = vld [vmem:[#allocation5 + $0xfc0] ss:$16 sps:$4 sm:$0xff]   ;;  %v8542_v9 = vld [vmem:[#allocation5 + $0xda4] ss:$16 sps:$4 sm:$0xff]  }
 0x137   :  { %5681 = vmatprep.subr.bf16.mxu1 %v8491_v10  ;;  %5668 = vmatprep.mubr.bf16.mxu0 %v9972_v20  ;;  %v8545_v10 = vld [vmem:[#allocation5 + $0xfa4] ss:$16 sps:$4 sm:$0xff]  }
 0x138   :  { %5711 = vmatprep.mubr.bf16.mxu1 %v9977_v25 }
 0x139   :  { %5639 = vmatpush1.bf16.msra.mxu0 %v8486_v16  ;;  %v8548_v16 = vld [vmem:[#allocation5 + $0xd84] ss:$16 sps:$4 sm:$0xff]  }
 0x13a   :  { %5682 = vmatpush1.bf16.msra.mxu1 %v8489_v19  ;;  %5640 = vmatprep.subr.bf16.mxu0 %v8494_v23  ;;  %v8546_v19 = vld [vmem:[#allocation5 + $0xd80] ss:$16 sps:$4 sm:$0xff]   ;;  %v8554_v23 = vld [vmem:[#allocation5 + $0xd64] ss:$16 sps:$4 sm:$0xff]  }
 0x13b   :  { %5683 = vmatprep.subr.bf16.mxu1 %v8497_v24  ;;  %v8557_v24 = vld [vmem:[#allocation5 + $0xf64] ss:$16 sps:$4 sm:$0xff]  }
 0x13d   :  { %5641 = vmatpush1.bf16.msra.mxu0 %v8492_v26  ;;  %v8552_v26 = vld [vmem:[#allocation5 + $0xd60] ss:$16 sps:$4 sm:$0xff]  }
 0x13e   :  { %5684 = vmatpush1.bf16.msra.mxu1 %v8495_v27  ;;  %5642 = vmatprep.subr.bf16.mxu0 %v8500_v28  ;;  %v8555_v27 = vld [vmem:[#allocation5 + $0xf60] ss:$16 sps:$4 sm:$0xff]   ;;  %v8560_v28 = vld [vmem:[#allocation5 + $0xd44] ss:$16 sps:$4 sm:$0xff]  }
 0x13f   :  { %5685 = vmatprep.subr.bf16.mxu1 %v8503_v29  ;;  %v8563_v29 = vld [vmem:[#allocation5 + $0xf44] ss:$16 sps:$4 sm:$0xff]  }
 0x141   :  { %5643 = vmatpush1.bf16.msra.mxu0 %v8498_v30  ;;  %v8558_v30 = vld [vmem:[#allocation5 + $0xd40] ss:$16 sps:$4 sm:$0xff]  }
 0x142   :  { %5686 = vmatpush1.bf16.msra.mxu1 %v8501_v31  ;;  %5644 = vmatprep.subr.bf16.mxu0 %v8506_v32  ;;  %v8561_v31 = vld [vmem:[#allocation5 + $0xf40] ss:$16 sps:$4 sm:$0xff]  }
 0x143   :  { %5687 = vmatprep.subr.bf16.mxu1 %v8509_v38  ;;  %v8684_v32 = vld [vmem:[#allocation2 + $0x20] ss:$48 sps:$4 sm:$0xff]   ;;  %v8566_v38 = vld [vmem:[#allocation5 + $0xd24] ss:$16 sps:$4 sm:$0xff]  }
 0x145   :  { %5645 = vmatpush1.bf16.msra.mxu0 %v8504_v40  ;;  %v8569_v40 = vld [vmem:[#allocation5 + $0xf24] ss:$16 sps:$4 sm:$0xff]  }
 0x146   :  { %5688 = vmatpush1.bf16.msra.mxu1 %v8507_v41  ;;  %5646 = vmatprep.subr.bf16.mxu0 %v8512_v42  ;;  %v8686_v41 = vld [vmem:[#allocation2 + $0x80] ss:$48 sps:$4 sm:$0xff]  }
 0x147   :  { %5689 = vmatprep.subr.bf16.mxu1 %v8515_v46  ;;  %v8688_v42 = vld [vmem:[#allocation2 + $0xe0] ss:$48 sps:$4 sm:$0xff]  }
 0x148   :  { %v8690_v46 = vld [vmem:[#allocation2 + $0x140] ss:$48 sps:$4 sm:$0xff]  }
 0x149   :  { %5647 = vmatpush1.bf16.msra.mxu0 %v8510_v47  ;;  %v8692_v47 = vld [vmem:[#allocation2 + $0x24] ss:$48 sps:$4 sm:$0xff]  }
 0x14a   :  { %5690 = vmatpush1.bf16.msra.mxu1 %v8513_v51  ;;  %5648 = vmatprep.subr.bf16.mxu0 %v8518_v53  ;;  %v8693_v51 = vld [vmem:[#allocation2 + $0x84] ss:$48 sps:$4 sm:$0xff]  }
 0x14b   :  { %5691 = vmatprep.subr.bf16.mxu1 %v8521_v54  ;;  %v8694_v53 = vld [vmem:[#allocation2 + $0xe4] ss:$48 sps:$4 sm:$0xff]  }
 0x14c   :  { %v8695_v54 = vld [vmem:[#allocation2 + $0x144] ss:$48 sps:$4 sm:$0xff]  }
 0x14d   :  { %5649 = vmatpush1.bf16.msra.mxu0 %v8516_v56  ;;  %v8564_v56 = vld [vmem:[#allocation5 + $0xd20] ss:$16 sps:$4 sm:$0xff]  }
 0x14e   :  { %5692 = vmatpush1.bf16.msra.mxu1 %v8519_v57  ;;  %5650 = vmatprep.subr.bf16.mxu0 %v8524_v59  ;;  %v8567_v57 = vld [vmem:[#allocation5 + $0xf20] ss:$16 sps:$4 sm:$0xff]   ;;  %v9981_v59 = vrot.slane %v8684_v32, %v9816_v55 }
 0x14f   :  { %5693 = vmatprep.subr.bf16.mxu1 %v8527_v60  ;;  %v8572_v60 = vld [vmem:[#allocation5 + $0xd04] ss:$16 sps:$4 sm:$0xff]  }
 0x151   :  { %5651 = vmatpush1.bf16.msra.mxu0 %v8522_v62  ;;  %v8575_v62 = vld [vmem:[#allocation5 + $0xf04] ss:$16 sps:$4 sm:$0xff]  }
 0x152   :  { %5694 = vmatpush1.bf16.msra.mxu1 %v8525_v63  ;;  %5652 = vmatprep.subr.bf16.mxu0 %v8530_v0  ;;  %v9984_v63 = vrot.slane %v8686_v41, %v9816_v55  ;;  %v9987_v0 = vrot.slane %v8688_v42, %v9816_v55  ;;  %v8602_v42 = vld [vmem:[#allocation5 + $0x10a4] ss:$16 sps:$4 sm:$0xff]  }
 0x153   :  { %5695 = vmatprep.subr.bf16.mxu1 %v8533_v1  ;;  %v9990_v1 = vrot.slane %v8690_v46, %v9816_v55  ;;  %v8605_v46 = vld [vmem:[#allocation5 + $0x12a4] ss:$16 sps:$4 sm:$0xff]  }
 0x155   :  { %5653 = vmatpush2.bf16.msra.mxu0 %v8528_v33  ;;  %v8570_v33 = vld [vmem:[#allocation5 + $0xd00] ss:$16 sps:$4 sm:$0xff]  }
 0x156   :  { %5696 = vmatpush2.bf16.msra.mxu1 %v8531_v37  ;;  %5654 = vmatprep.subr.bf16.mxu0 %v8536_v49  ;;  %v9993_v37 = vrot.slane %v8692_v47, %v9816_v55  ;;  %v9996_v49 = vrot.slane %v8693_v51, %v9816_v55 }
 0x157   :  { %5697 = vmatprep.subr.bf16.mxu1 %v8539_v50  ;;  %v9999_v50 = vrot.slane %v8694_v53, %v9816_v55  ;;  %v8600_v53 = vld [vmem:[#allocation5 + $0x10a0] ss:$16 sps:$4 sm:$0xff]  }
 0x159   :  { %5655 = vmatpush2.bf16.msra.mxu0 %v8534_v52  ;;  %v10002_v52 = vrot.slane %v8695_v54, %v9816_v55 }
 0x15a   :  { %5698 = vmatpush2.bf16.msra.mxu1 %v8537_v3  ;;  %5656 = vmatprep.subr.bf16.mxu0 %v8542_v9  ;;  %v8573_v3 = vld [vmem:[#allocation5 + $0xf00] ss:$16 sps:$4 sm:$0xff]   ;;  %v384_v9 = vcombine.low %v9941_v44, %v9944_v45  ;;  %v421_v44 = vcombine.high %v9981_v59, %v9984_v63  ;;  %v637_v45 = vcombine.high %v9987_v0, %v9990_v1 }
 0x15b   :  { %5699 = vmatprep.subr.bf16.mxu1 %v8545_v10  ;;  %v600_v10 = vcombine.low %v9947_v4, %v9950_v5  ;;  %v423_v4 = vcombine.high %v9993_v37, %v9996_v49  ;;  %v639_v5 = vcombine.high %v9999_v50, %v10002_v52 }
 0x15d   :  { %5657 = vmatpush2.bf16.msra.mxu0 %v8540_v11  ;;  %v386_v11 = vcombine.low %v9953_v8, %v9958_v12  ;;  %v10021_v8 = vpack.c.bf16 %v600_v10, %v384_v9  ;;  %v8609_v9 = vld [vmem:[#allocation5 + $0x1280] ss:$16 sps:$4 sm:$0xff]   ;;  %v8614_v10 = vld [vmem:[#allocation5 + $0x1064] ss:$16 sps:$4 sm:$0xff]  }
 0x15e   :  { %5700 = vmatpush2.bf16.msra.mxu1 %v8543_v14  ;;  %5658 = vmatprep.subr.bf16.mxu0 %v8548_v16  ;;  %v602_v14 = vcombine.low %v9961_v13, %v9966_v15  ;;  %v1516_v16 = vld [vmem:[#allocation7] sm:$0xf] }
 0x15f   :  { %5701 = vmatprep.subr.bf16.mxu1 %v8551_v17  ;;  %v1520_v17 = vsub.s32 0, %v9813_v48  ;;  %v8588_v13 = vld [vmem:[#allocation5 + $0x10e0] ss:$16 sps:$4 sm:$0xff]  }
 0x160   :  { %v10023_v12 = vpack.c.bf16 %v602_v14, %v386_v11  ;;  %v8617_v11 = vld [vmem:[#allocation5 + $0x1264] ss:$16 sps:$4 sm:$0xff]   ;;  %v8612_v14 = vld [vmem:[#allocation5 + $0x1060] ss:$16 sps:$4 sm:$0xff]  }
 0x161   :  { %5659 = vmatpush2.bf16.msra.mxu0 %v8546_v19  ;;  %v8590_v19 = vld [vmem:[#allocation5 + $0x10e4] ss:$16 sps:$4 sm:$0xff]   ;;  %v1521_v15 = vrot.slane %v1516_v16, %v1520_v17  ;;  %v8615_v16 = vld [vmem:[#allocation5 + $0x1260] ss:$16 sps:$4 sm:$0xff]  }
 0x162   :  { %5702 = vmatpush2.bf16.msra.mxu1 %v8549_v22  ;;  %5660 = vmatprep.subr.bf16.mxu0 %v8554_v23  ;;  %v8593_v22 = vld [vmem:[#allocation5 + $0x12e4] ss:$16 sps:$4 sm:$0xff]   ;;  %v8591_v23 = vld [vmem:[#allocation5 + $0x12e0] ss:$16 sps:$4 sm:$0xff]  }
 0x163   :  { %5703 = vmatprep.subr.bf16.mxu1 %v8557_v24  ;;  %v8596_v24 = vld [vmem:[#allocation5 + $0x10c4] ss:$16 sps:$4 sm:$0xff]  }
 0x165   :  { %5661 = vmatpush2.bf16.msra.mxu0 %v8552_v26  ;;  %v8599_v26 = vld [vmem:[#allocation5 + $0x12c4] ss:$16 sps:$4 sm:$0xff]  }
 0x166   :  { %5704 = vmatpush2.bf16.msra.mxu1 %v8555_v27  ;;  %5662 = vmatprep.subr.bf16.mxu0 %v8560_v28  ;;  %v10027_v27 = vpack.c.bf16 %v637_v45, %v421_v44  ;;  %v10029_v28 = vpack.c.bf16 %v639_v5, %v423_v4  ;;  %v8618_v44 = vld [vmem:[#allocation5 + $0x1040] ss:$16 sps:$4 sm:$0xff]   ;;  %v8626_v4 = vld [vmem:[#allocation5 + $0x1024] ss:$16 sps:$4 sm:$0xff]  }
 0x167   :  { %5705 = vmatprep.subr.bf16.mxu1 %v8563_v29  ;;  %v8621_v45 = vld [vmem:[#allocation5 + $0x1240] ss:$16 sps:$4 sm:$0xff]   ;;  %v8629_v5 = vld [vmem:[#allocation5 + $0x1224] ss:$16 sps:$4 sm:$0xff]  }
 0x169   :  { %5663 = vmatpush2.bf16.msra.mxu0 %v8558_v30 }
 0x16a   :  { %5706 = vmatpush2.bf16.msra.mxu1 %v8561_v31  ;;  %5664 = vmatprep.subr.bf16.mxu0 %v8566_v38  ;;  %v8594_v31 = vld [vmem:[#allocation5 + $0x10c0] ss:$16 sps:$4 sm:$0xff]  }
 0x16b   :  { %5707 = vmatprep.subr.bf16.mxu1 %v8569_v40  ;;  %v8597_v38 = vld [vmem:[#allocation5 + $0x12c0] ss:$16 sps:$4 sm:$0xff]  }
 0x16d   :  { %5665 = vmatpush2.bf16.msra.mxu0 %v8564_v56  ;;  %v8603_v56 = vld [vmem:[#allocation5 + $0x12a0] ss:$16 sps:$4 sm:$0xff]  }
 0x16e   :  { %5708 = vmatpush2.bf16.msra.mxu1 %v8567_v57  ;;  %5666 = vmatprep.subr.bf16.mxu0 %v8572_v60  ;;  %v8608_v60 = vld [vmem:[#allocation5 + $0x1084] ss:$16 sps:$4 sm:$0xff]  }
 0x16f   :  { %5709 = vmatprep.subr.bf16.mxu1 %v8575_v62  ;;  %v8611_v62 = vld [vmem:[#allocation5 + $0x1284] ss:$16 sps:$4 sm:$0xff]  }
 0x171   :  { %5667 = vmatpush2.bf16.msra.mxu0 %v8570_v33 }
 0x172   :  { %5710 = vmatpush2.bf16.msra.mxu1 %v8573_v3  ;;  %5722 = vmatprep.subr.bf16.mxu0 %v8590_v19  ;;  %v8606_v3 = vld [vmem:[#allocation5 + $0x1080] ss:$16 sps:$4 sm:$0xff]   ;;  %v8620_v19 = vld [vmem:[#allocation5 + $0x1044] ss:$16 sps:$4 sm:$0xff]  }
 0x173   :  { %5765 = vmatprep.subr.bf16.mxu1 %v8593_v22  ;;  %v8623_v22 = vld [vmem:[#allocation5 + $0x1244] ss:$16 sps:$4 sm:$0xff]  }
 0x174   :  { %v5412_v29 = vpop.f32.mrf.mxu0  ;;  %5669 = vmatmul.mubr.bf16.vlgmr.msra.gmra.mxu0 %v10021_v8 }
 0x175   :  { %v5455_v30 = vpop.f32.mrf.mxu1  ;;  %5712 = vmatmul.mubr.bf16.vlgmr.msra.gmra.mxu1 %v10023_v12  ;;  %v5413_v32 = vadd.f32 %v5412_v29, %v1521_v15  ;;  %5723 = vmatpush1.bf16.msra.mxu0 %v8588_v13  ;;  %v8624_v13 = vld [vmem:[#allocation5 + $0x1020] ss:$16 sps:$4 sm:$0xff]  }
 0x176   :  { %5766 = vmatpush1.bf16.msra.mxu1 %v8591_v23  ;;  %v10033_v40 = vpop.f32.mrf.mxu0  ;;  %5724 = vmatprep.subr.bf16.mxu0 %v8596_v24  ;;  %v8632_v23 = vld [vmem:[#allocation5 + $0x1004] ss:$16 sps:$4 sm:$0xff]   ;;  %v8633_v29 = vld [vmem:[#allocation5 + $0x1200] ss:$16 sps:$4 sm:$0xff]  }
 0x177   :  { %v10035_v41 = vpop.f32.mrf.mxu1  ;;  %5767 = vmatprep.subr.bf16.mxu1 %v8599_v26  ;;  %v10037_v47 = vadd.f32 %v5455_v30, %v5413_v32  ;;  %5754 = vmatprep.mubr.bf16.mxu0 %v10027_v27  ;;  %v8635_v24 = vld [vmem:[#allocation5 + $0x1204] ss:$16 sps:$4 sm:$0xff]   ;;  %v8630_v26 = vld [vmem:[#allocation5 + $0x1000] ss:$16 sps:$4 sm:$0xff]  }
 0x178   :  { %5797 = vmatprep.mubr.bf16.mxu1 %v10029_v28  ;;  %v5416_v51 = vpop.f32.mrf.mxu0  ;;  %v8638_v30 = vld [vmem:[#allocation5 + $0x11e4] ss:$16 sps:$4 sm:$0xff]   ;;  %v8636_v32 = vld [vmem:[#allocation5 + $0x11e0] ss:$16 sps:$4 sm:$0xff]  }
 0x179   :  { %v5417_v54 = vadd.f32 %v5416_v51, %v1521_v15  ;;  %5725 = vmatpush1.bf16.msra.mxu0 %v8594_v31  ;;  %v5459_v57 = vpop.f32.mrf.mxu1  ;;  %v8627_v15 = vld [vmem:[#allocation5 + $0x1220] ss:$16 sps:$4 sm:$0xff]   ;;  %v8641_v31 = vld [vmem:[#allocation5 + $0x13e4] ss:$16 sps:$4 sm:$0xff]  }
 0x17a   :  { %5768 = vmatpush1.bf16.msra.mxu1 %v8597_v38  ;;  %5726 = vmatprep.subr.bf16.mxu0 %v8602_v42  ;;  %v8639_v38 = vld [vmem:[#allocation5 + $0x13e0] ss:$16 sps:$4 sm:$0xff]   ;;  %v8644_v42 = vld [vmem:[#allocation5 + $0x11c4] ss:$16 sps:$4 sm:$0xff]  }
 0x17b   :  { %5769 = vmatprep.subr.bf16.mxu1 %v8605_v46  ;;  %v10041_v33 = vadd.f32 %v5459_v57, %v5417_v54  ;;  %v8647_v46 = vld [vmem:[#allocation5 + $0x13c4] ss:$16 sps:$4 sm:$0xff]   ;;  %v8642_v51 = vld [vmem:[#allocation5 + $0x11c0] ss:$16 sps:$4 sm:$0xff]  }
 0x17c   :  { %v8650_v54 = vld [vmem:[#allocation5 + $0x11a4] ss:$16 sps:$4 sm:$0xff]   ;;  %v8648_v57 = vld [vmem:[#allocation5 + $0x11a0] ss:$16 sps:$4 sm:$0xff]  }
 0x17d   :  { %5727 = vmatpush1.bf16.msra.mxu0 %v8600_v53  ;;  %v8645_v53 = vld [vmem:[#allocation5 + $0x13c0] ss:$16 sps:$4 sm:$0xff]  }
 0x17e   :  { %5770 = vmatpush1.bf16.msra.mxu1 %v8603_v56  ;;  %5728 = vmatprep.subr.bf16.mxu0 %v8608_v60  ;;  %v8653_v56 = vld [vmem:[#allocation5 + $0x13a4] ss:$16 sps:$4 sm:$0xff]   ;;  %v8651_v60 = vld [vmem:[#allocation5 + $0x13a0] ss:$16 sps:$4 sm:$0xff]  }
 0x17f   :  { %5771 = vmatprep.subr.bf16.mxu1 %v8611_v62  ;;  %v8656_v62 = vld [vmem:[#allocation5 + $0x1184] ss:$16 sps:$4 sm:$0xff]  }
 0x181   :  { %5729 = vmatpush1.bf16.msra.mxu0 %v8606_v3  ;;  %v8659_v3 = vld [vmem:[#allocation5 + $0x1384] ss:$16 sps:$4 sm:$0xff]  }
 0x182   :  { %5772 = vmatpush1.bf16.msra.mxu1 %v8609_v9  ;;  %5730 = vmatprep.subr.bf16.mxu0 %v8614_v10  ;;  %v8654_v9 = vld [vmem:[#allocation5 + $0x1180] ss:$16 sps:$4 sm:$0xff]  }
 0x183   :  { %5773 = vmatprep.subr.bf16.mxu1 %v8617_v11  ;;  %v8657_v10 = vld [vmem:[#allocation5 + $0x1380] ss:$16 sps:$4 sm:$0xff]   ;;  %v8662_v11 = vld [vmem:[#allocation5 + $0x1164] ss:$16 sps:$4 sm:$0xff]  }
 0x185   :  { %5731 = vmatpush1.bf16.msra.mxu0 %v8612_v14  ;;  %v8665_v14 = vld [vmem:[#allocation5 + $0x1364] ss:$16 sps:$4 sm:$0xff]  }
 0x186   :  { %5774 = vmatpush1.bf16.msra.mxu1 %v8615_v16  ;;  %5732 = vmatprep.subr.bf16.mxu0 %v8620_v19  ;;  %v8660_v16 = vld [vmem:[#allocation5 + $0x1160] ss:$16 sps:$4 sm:$0xff]  }
 0x187   :  { %5775 = vmatprep.subr.bf16.mxu1 %v8623_v22  ;;  %v8663_v19 = vld [vmem:[#allocation5 + $0x1360] ss:$16 sps:$4 sm:$0xff]   ;;  %v8668_v22 = vld [vmem:[#allocation5 + $0x1144] ss:$16 sps:$4 sm:$0xff]  }
 0x189   :  { %5733 = vmatpush1.bf16.msra.mxu0 %v8618_v44  ;;  %v8671_v44 = vld [vmem:[#allocation5 + $0x1344] ss:$16 sps:$4 sm:$0xff]  }
 0x18a   :  { %5776 = vmatpush1.bf16.msra.mxu1 %v8621_v45  ;;  %5734 = vmatprep.subr.bf16.mxu0 %v8626_v4  ;;  %v8666_v45 = vld [vmem:[#allocation5 + $0x1140] ss:$16 sps:$4 sm:$0xff]  }
 0x18b   :  { %5777 = vmatprep.subr.bf16.mxu1 %v8629_v5  ;;  %v8669_v4 = vld [vmem:[#allocation5 + $0x1340] ss:$16 sps:$4 sm:$0xff]   ;;  %v8792_v5 = vld [vmem:[#allocation2 + $0x28] ss:$48 sps:$4 sm:$0xff]  }
 0x18d   :  { %5735 = vmatpush1.bf16.msra.mxu0 %v8624_v13  ;;  %v8674_v13 = vld [vmem:[#allocation5 + $0x1124] ss:$16 sps:$4 sm:$0xff]  }
 0x18e   :  { %5778 = vmatpush1.bf16.msra.mxu1 %v8627_v15  ;;  %5736 = vmatprep.subr.bf16.mxu0 %v8632_v23  ;;  %v8677_v15 = vld [vmem:[#allocation5 + $0x1324] ss:$16 sps:$4 sm:$0xff]   ;;  %v8794_v23 = vld [vmem:[#allocation2 + $0x88] ss:$48 sps:$4 sm:$0xff]  }
 0x18f   :  { %5779 = vmatprep.subr.bf16.mxu1 %v8635_v24  ;;  %v8796_v24 = vld [vmem:[#allocation2 + $0xe8] ss:$48 sps:$4 sm:$0xff]  }
 0x191   :  { %5737 = vmatpush1.bf16.msra.mxu0 %v8630_v26  ;;  %v8798_v26 = vld [vmem:[#allocation2 + $0x148] ss:$48 sps:$4 sm:$0xff]  }
 0x192   :  { %5780 = vmatpush1.bf16.msra.mxu1 %v8633_v29  ;;  %5738 = vmatprep.subr.bf16.mxu0 %v8638_v30  ;;  %v8800_v29 = vld [vmem:[#allocation2 + $0x2c] ss:$48 sps:$4 sm:$0xff]  }
 0x193   :  { %5781 = vmatprep.subr.bf16.mxu1 %v8641_v31  ;;  %v8801_v30 = vld [vmem:[#allocation2 + $0x8c] ss:$48 sps:$4 sm:$0xff]  }
 0x194   :  { %v8802_v31 = vld [vmem:[#allocation2 + $0xec] ss:$48 sps:$4 sm:$0xff]  }
 0x195   :  { %5739 = vmatpush2.bf16.msra.mxu0 %v8636_v32  ;;  %v8803_v32 = vld [vmem:[#allocation2 + $0x14c] ss:$48 sps:$4 sm:$0xff]  }
 0x196   :  { %5782 = vmatpush2.bf16.msra.mxu1 %v8639_v38  ;;  %5740 = vmatprep.subr.bf16.mxu0 %v8644_v42  ;;  %v8672_v38 = vld [vmem:[#allocation5 + $0x1120] ss:$16 sps:$4 sm:$0xff]  }
 0x197   :  { %5783 = vmatprep.subr.bf16.mxu1 %v8647_v46  ;;  %v8675_v42 = vld [vmem:[#allocation5 + $0x1320] ss:$16 sps:$4 sm:$0xff]   ;;  %v10044_v46 = vrot.slane %v8792_v5, %v9816_v55  ;;  %v8704_v5 = vld [vmem:[#allocation5 + $0x14c4] ss:$16 sps:$4 sm:$0xff]  }
 0x199   :  { %5741 = vmatpush2.bf16.msra.mxu0 %v8642_v51  ;;  %v8680_v51 = vld [vmem:[#allocation5 + $0x1104] ss:$16 sps:$4 sm:$0xff]  }
 0x19a   :  { %5784 = vmatpush2.bf16.msra.mxu1 %v8645_v53  ;;  %5742 = vmatprep.subr.bf16.mxu0 %v8650_v54  ;;  %v8683_v53 = vld [vmem:[#allocation5 + $0x1304] ss:$16 sps:$4 sm:$0xff]   ;;  %v10047_v54 = vrot.slane %v8794_v23, %v9816_v55 }
 0x19b   :  { %5785 = vmatprep.subr.bf16.mxu1 %v8653_v56  ;;  %v10050_v56 = vrot.slane %v8796_v24, %v9816_v55 }
 0x19d   :  { %5743 = vmatpush2.bf16.msra.mxu0 %v8648_v57  ;;  %v10053_v57 = vrot.slane %v8798_v26, %v9816_v55 }
 0x19e   :  { %5786 = vmatpush2.bf16.msra.mxu1 %v8651_v60  ;;  %5744 = vmatprep.subr.bf16.mxu0 %v8656_v62  ;;  %v10056_v60 = vrot.slane %v8800_v29, %v9816_v55  ;;  %v10059_v62 = vrot.slane %v8801_v30, %v9816_v55  ;;  %v8702_v29 = vld [vmem:[#allocation5 + $0x14c0] ss:$16 sps:$4 sm:$0xff]  }
 0x19f   :  { %5787 = vmatprep.subr.bf16.mxu1 %v8659_v3  ;;  %v10062_v3 = vrot.slane %v8802_v31, %v9816_v55  ;;  %v8705_v31 = vld [vmem:[#allocation5 + $0x16c0] ss:$16 sps:$4 sm:$0xff]  }
 0x1a1   :  { %5745 = vmatpush2.bf16.msra.mxu0 %v8654_v9  ;;  %v10065_v9 = vrot.slane %v8803_v32, %v9816_v55  ;;  %v8698_v55 = vld [vmem:[#allocation5 + $0x14e4] ss:$16 sps:$4 sm:$0xff]  }
 0x1a2   :  { %5788 = vmatpush2.bf16.msra.mxu1 %v8657_v10  ;;  %5746 = vmatprep.subr.bf16.mxu0 %v8662_v11  ;;  %v8678_v10 = vld [vmem:[#allocation5 + $0x1100] ss:$16 sps:$4 sm:$0xff]   ;;  %v420_v11 = vcombine.low %v9981_v59, %v9984_v63  ;;  %v673_v59 = vcombine.high %v10050_v56, %v10053_v57  ;;  %v459_v63 = vcombine.high %v10056_v60, %v10059_v62 }
 0x1a3   :  { %5789 = vmatprep.subr.bf16.mxu1 %v8665_v14  ;;  %v636_v14 = vcombine.low %v9987_v0, %v9990_v1  ;;  %v675_v0 = vcombine.high %v10062_v3, %v10065_v9 }
 0x1a5   :  { %5747 = vmatpush2.bf16.msra.mxu0 %v8660_v16  ;;  %v422_v16 = vcombine.low %v9993_v37, %v9996_v49  ;;  %v10083_v1 = vpack.c.bf16 %v636_v14, %v420_v11  ;;  %v8696_v49 = vld [vmem:[#allocation5 + $0x14e0] ss:$16 sps:$4 sm:$0xff]   ;;  %v10093_v23 = vpack.c.bf16 %v675_v0, %v459_v63  ;;  %v8725_v63 = vld [vmem:[#allocation5 + $0x1664] ss:$16 sps:$4 sm:$0xff]  }
 0x1a6   :  { %5790 = vmatpush2.bf16.msra.mxu1 %v8663_v19  ;;  %5748 = vmatprep.subr.bf16.mxu0 %v8668_v22  ;;  %v638_v19 = vcombine.low %v9999_v50, %v10002_v52  ;;  %v8681_v22 = vld [vmem:[#allocation5 + $0x1300] ss:$16 sps:$4 sm:$0xff]   ;;  %v10087_v52 = vpop.f32.mrf.mxu0 }
 0x1a7   :  { %5791 = vmatprep.subr.bf16.mxu1 %v8671_v44  ;;  %v8701_v44 = vld [vmem:[#allocation5 + $0x16e4] ss:$16 sps:$4 sm:$0xff]   ;;  %v8699_v50 = vld [vmem:[#allocation5 + $0x16e0] ss:$16 sps:$4 sm:$0xff]  }
 0x1a8   :  { %v10085_v37 = vpack.c.bf16 %v638_v19, %v422_v16  ;;  %v8708_v11 = vld [vmem:[#allocation5 + $0x14a0] ss:$16 sps:$4 sm:$0xff]   ;;  %v8716_v19 = vld [vmem:[#allocation5 + $0x1484] ss:$16 sps:$4 sm:$0xff]  }
 0x1a9   :  { %5749 = vmatpush2.bf16.msra.mxu0 %v8666_v45  ;;  %v457_v45 = vcombine.high %v10044_v46, %v10047_v54  ;;  %v8711_v14 = vld [vmem:[#allocation5 + $0x16a0] ss:$16 sps:$4 sm:$0xff]  }
 0x1aa   :  { %5792 = vmatpush2.bf16.msra.mxu1 %v8669_v4  ;;  %5750 = vmatprep.subr.bf16.mxu0 %v8674_v13  ;;  %v10089_v4 = vpop.f32.mrf.mxu1  ;;  %v8707_v13 = vld [vmem:[#allocation5 + $0x16c4] ss:$16 sps:$4 sm:$0xff]   ;;  %v8720_v0 = vld [vmem:[#allocation5 + $0x1460] ss:$16 sps:$4 sm:$0xff]  }
 0x1ab   :  { %5793 = vmatprep.subr.bf16.mxu1 %v8677_v15  ;;  %v10091_v15 = vpack.c.bf16 %v673_v59, %v457_v45  ;;  %v8717_v45 = vld [vmem:[#allocation5 + $0x1680] ss:$16 sps:$4 sm:$0xff]   ;;  %v8722_v59 = vld [vmem:[#allocation5 + $0x1464] ss:$16 sps:$4 sm:$0xff]  }
 0x1ad   :  { %5751 = vmatpush2.bf16.msra.mxu0 %v8672_v38 }
 0x1ae   :  { %5794 = vmatpush2.bf16.msra.mxu1 %v8675_v42  ;;  %5752 = vmatprep.subr.bf16.mxu0 %v8680_v51  ;;  %v8710_v42 = vld [vmem:[#allocation5 + $0x14a4] ss:$16 sps:$4 sm:$0xff]  }
 0x1af   :  { %5795 = vmatprep.subr.bf16.mxu1 %v8683_v53  ;;  %v8713_v51 = vld [vmem:[#allocation5 + $0x16a4] ss:$16 sps:$4 sm:$0xff]  }
 0x1b1   :  { %5753 = vmatpush2.bf16.msra.mxu0 %v8678_v10 }
 0x1b2   :  { %5796 = vmatpush2.bf16.msra.mxu1 %v8681_v22  ;;  %5808 = vmatprep.subr.bf16.mxu0 %v8698_v55  ;;  %v8719_v22 = vld [vmem:[#allocation5 + $0x1684] ss:$16 sps:$4 sm:$0xff]  }
 0x1b3   :  { %5851 = vmatprep.subr.bf16.mxu1 %v8701_v44  ;;  %v8714_v44 = vld [vmem:[#allocation5 + $0x1480] ss:$16 sps:$4 sm:$0xff]  }
 0x1b4   :  { %v5498_v24 = vpop.f32.mrf.mxu0  ;;  %5755 = vmatmul.mubr.bf16.vlgmr.msra.gmra.mxu0 %v10083_v1 }
 0x1b5   :  { %v5541_v26 = vpop.f32.mrf.mxu1  ;;  %5798 = vmatmul.mubr.bf16.vlgmr.msra.gmra.mxu1 %v10085_v37  ;;  %v5499_v30 = vadd.f32 %v5498_v24, %v10037_v47  ;;  %5809 = vmatpush1.bf16.msra.mxu0 %v8696_v49  ;;  %v8728_v49 = vld [vmem:[#allocation5 + $0x1444] ss:$16 sps:$4 sm:$0xff]  }
 0x1b6   :  { %5852 = vmatpush1.bf16.msra.mxu1 %v8699_v50  ;;  %v10098_v32 = vpop.f32.mrf.mxu0  ;;  %5810 = vmatprep.subr.bf16.mxu0 %v8704_v5  ;;  %v8731_v50 = vld [vmem:[#allocation5 + $0x1644] ss:$16 sps:$4 sm:$0xff]   ;;  %v8726_v5 = vld [vmem:[#allocation5 + $0x1440] ss:$16 sps:$4 sm:$0xff]  }
 0x1b7   :  { %v10100_v38 = vpop.f32.mrf.mxu1  ;;  %5853 = vmatprep.subr.bf16.mxu1 %v8707_v13  ;;  %v10102_v53 = vadd.f32 %v5541_v26, %v5499_v30  ;;  %5840 = vmatprep.mubr.bf16.mxu0 %v10091_v15  ;;  %v8729_v13 = vld [vmem:[#allocation5 + $0x1640] ss:$16 sps:$4 sm:$0xff]   ;;  %v8734_v24 = vld [vmem:[#allocation5 + $0x1424] ss:$16 sps:$4 sm:$0xff]  }
 0x1b8   :  { %5883 = vmatprep.mubr.bf16.mxu1 %v10093_v23  ;;  %v5502_v10 = vpop.f32.mrf.mxu0  ;;  %v8737_v26 = vld [vmem:[#allocation5 + $0x1624] ss:$16 sps:$4 sm:$0xff]   ;;  %v8735_v30 = vld [vmem:[#allocation5 + $0x1620] ss:$16 sps:$4 sm:$0xff]  }
 0x1b9   :  { %v5503_v47 = vadd.f32 %v5502_v10, %v10041_v33  ;;  %5811 = vmatpush1.bf16.msra.mxu0 %v8702_v29  ;;  %v5545_v16 = vpop.f32.mrf.mxu1  ;;  %v8723_v33 = vld [vmem:[#allocation5 + $0x1660] ss:$16 sps:$4 sm:$0xff]  }
 0x1ba   :  { %5854 = vmatpush1.bf16.msra.mxu1 %v8705_v31  ;;  %5812 = vmatprep.subr.bf16.mxu0 %v8710_v42  ;;  %v8732_v29 = vld [vmem:[#allocation5 + $0x1420] ss:$16 sps:$4 sm:$0xff]   ;;  %v8740_v31 = vld [vmem:[#allocation5 + $0x1404] ss:$16 sps:$4 sm:$0xff]  }
 0x1bb   :  { %5855 = vmatprep.subr.bf16.mxu1 %v8713_v51  ;;  %v10107_v55 = vadd.f32 %v5545_v16, %v5503_v47  ;;  %v8743_v42 = vld [vmem:[#allocation5 + $0x1604] ss:$16 sps:$4 sm:$0xff]   ;;  %v8738_v51 = vld [vmem:[#allocation5 + $0x1400] ss:$16 sps:$4 sm:$0xff]  }
 0x1bc   :  { %v8741_v10 = vld [vmem:[#allocation5 + $0x1600] ss:$16 sps:$4 sm:$0xff]   ;;  %v8749_v47 = vld [vmem:[#allocation5 + $0x17e4] ss:$16 sps:$4 sm:$0xff]  }
 0x1bd   :  { %5813 = vmatpush1.bf16.msra.mxu0 %v8708_v11  ;;  %v8746_v11 = vld [vmem:[#allocation5 + $0x15e4] ss:$16 sps:$4 sm:$0xff]   ;;  %v8747_v16 = vld [vmem:[#allocation5 + $0x17e0] ss:$16 sps:$4 sm:$0xff]  }
 0x1be   :  { %5856 = vmatpush1.bf16.msra.mxu1 %v8711_v14  ;;  %5814 = vmatprep.subr.bf16.mxu0 %v8716_v19  ;;  %v8744_v14 = vld [vmem:[#allocation5 + $0x15e0] ss:$16 sps:$4 sm:$0xff]   ;;  %v8752_v19 = vld [vmem:[#allocation5 + $0x15c4] ss:$16 sps:$4 sm:$0xff]  }
 0x1bf   :  { %5857 = vmatprep.subr.bf16.mxu1 %v8719_v22  ;;  %v8755_v22 = vld [vmem:[#allocation5 + $0x17c4] ss:$16 sps:$4 sm:$0xff]  }
 0x1c1   :  { %5815 = vmatpush1.bf16.msra.mxu0 %v8714_v44  ;;  %v8750_v44 = vld [vmem:[#allocation5 + $0x15c0] ss:$16 sps:$4 sm:$0xff]  }
 0x1c2   :  { %5858 = vmatpush1.bf16.msra.mxu1 %v8717_v45  ;;  %5816 = vmatprep.subr.bf16.mxu0 %v8722_v59  ;;  %v8753_v45 = vld [vmem:[#allocation5 + $0x17c0] ss:$16 sps:$4 sm:$0xff]   ;;  %v8758_v59 = vld [vmem:[#allocation5 + $0x15a4] ss:$16 sps:$4 sm:$0xff]  }
 0x1c3   :  { %5859 = vmatprep.subr.bf16.mxu1 %v8725_v63  ;;  %v8761_v63 = vld [vmem:[#allocation5 + $0x17a4] ss:$16 sps:$4 sm:$0xff]  }
 0x1c5   :  { %5817 = vmatpush1.bf16.msra.mxu0 %v8720_v0  ;;  %v8756_v0 = vld [vmem:[#allocation5 + $0x15a0] ss:$16 sps:$4 sm:$0xff]  }
 0x1c6   :  { %5860 = vmatpush1.bf16.msra.mxu1 %v8723_v33  ;;  %5818 = vmatprep.subr.bf16.mxu0 %v8728_v49  ;;  %v8759_v33 = vld [vmem:[#allocation5 + $0x17a0] ss:$16 sps:$4 sm:$0xff]   ;;  %v8764_v49 = vld [vmem:[#allocation5 + $0x1584] ss:$16 sps:$4 sm:$0xff]  }
 0x1c7   :  { %5861 = vmatprep.subr.bf16.mxu1 %v8731_v50  ;;  %v8767_v50 = vld [vmem:[#allocation5 + $0x1784] ss:$16 sps:$4 sm:$0xff]  }
 0x1c9   :  { %5819 = vmatpush1.bf16.msra.mxu0 %v8726_v5  ;;  %v8762_v5 = vld [vmem:[#allocation5 + $0x1580] ss:$16 sps:$4 sm:$0xff]  }
 0x1ca   :  { %5862 = vmatpush1.bf16.msra.mxu1 %v8729_v13  ;;  %5820 = vmatprep.subr.bf16.mxu0 %v8734_v24  ;;  %v8765_v13 = vld [vmem:[#allocation5 + $0x1780] ss:$16 sps:$4 sm:$0xff]   ;;  %v8770_v24 = vld [vmem:[#allocation5 + $0x1564] ss:$16 sps:$4 sm:$0xff]  }
 0x1cb   :  { %5863 = vmatprep.subr.bf16.mxu1 %v8737_v26  ;;  %v8773_v26 = vld [vmem:[#allocation5 + $0x1764] ss:$16 sps:$4 sm:$0xff]  }
 0x1cd   :  { %5821 = vmatpush1.bf16.msra.mxu0 %v8732_v29  ;;  %v8768_v29 = vld [vmem:[#allocation5 + $0x1560] ss:$16 sps:$4 sm:$0xff]  }
 0x1ce   :  { %5864 = vmatpush1.bf16.msra.mxu1 %v8735_v30  ;;  %5822 = vmatprep.subr.bf16.mxu0 %v8740_v31  ;;  %v8771_v30 = vld [vmem:[#allocation5 + $0x1760] ss:$16 sps:$4 sm:$0xff]   ;;  %v8776_v31 = vld [vmem:[#allocation5 + $0x1544] ss:$16 sps:$4 sm:$0xff]  }
 0x1cf   :  { %5865 = vmatprep.subr.bf16.mxu1 %v8743_v42  ;;  %v8779_v42 = vld [vmem:[#allocation5 + $0x1744] ss:$16 sps:$4 sm:$0xff]  }
 0x1d1   :  { %5823 = vmatpush1.bf16.msra.mxu0 %v8738_v51  ;;  %v8774_v51 = vld [vmem:[#allocation5 + $0x1540] ss:$16 sps:$4 sm:$0xff]  }
 0x1d2   :  { %5866 = vmatpush1.bf16.msra.mxu1 %v8741_v10  ;;  %5824 = vmatprep.subr.bf16.mxu0 %v8746_v11  ;;  %v8777_v10 = vld [vmem:[#allocation5 + $0x1740] ss:$16 sps:$4 sm:$0xff]   ;;  %v8782_v11 = vld [vmem:[#allocation5 + $0x1524] ss:$16 sps:$4 sm:$0xff]  }
 0x1d3   :  { %5867 = vmatprep.subr.bf16.mxu1 %v8749_v47  ;;  %v8785_v47 = vld [vmem:[#allocation5 + $0x1724] ss:$16 sps:$4 sm:$0xff]  }
 0x1d5   :  { %5825 = vmatpush2.bf16.msra.mxu0 %v8744_v14  ;;  %v8780_v14 = vld [vmem:[#allocation5 + $0x1520] ss:$16 sps:$4 sm:$0xff]  }
 0x1d6   :  { %5868 = vmatpush2.bf16.msra.mxu1 %v8747_v16  ;;  %5826 = vmatprep.subr.bf16.mxu0 %v8752_v19  ;;  %v8783_v16 = vld [vmem:[#allocation5 + $0x1720] ss:$16 sps:$4 sm:$0xff]   ;;  %v8788_v19 = vld [vmem:[#allocation5 + $0x1504] ss:$16 sps:$4 sm:$0xff]  }
 0x1d7   :  { %5869 = vmatprep.subr.bf16.mxu1 %v8755_v22  ;;  %v8791_v22 = vld [vmem:[#allocation5 + $0x1704] ss:$16 sps:$4 sm:$0xff]  }
 0x1d9   :  { %5827 = vmatpush2.bf16.msra.mxu0 %v8750_v44  ;;  %v456_v44 = vcombine.low %v10044_v46, %v10047_v54 }
 0x1da   :  { %5870 = vmatpush2.bf16.msra.mxu1 %v8753_v45  ;;  %5828 = vmatprep.subr.bf16.mxu0 %v8758_v59  ;;  %v672_v45 = vcombine.low %v10050_v56, %v10053_v57  ;;  %v458_v59 = vcombine.low %v10056_v60, %v10059_v62  ;;  %v10121_v56 = vpop.f32.mrf.mxu0  ;;  %v10123_v57 = vpop.f32.mrf.mxu1  ;;  %v8812_v60 = vld [vmem:[#allocation5 + $0xcc] ss:$16 sps:$4 sm:$0xff]  }
 0x1db   :  { %5871 = vmatprep.subr.bf16.mxu1 %v8761_v63  ;;  %v674_v63 = vcombine.low %v10062_v3, %v10065_v9  ;;  %v8815_v62 = vld [vmem:[#allocation5 + $0x2cc] ss:$16 sps:$4 sm:$0xff]   ;;  %v8810_v3 = vld [vmem:[#allocation5 + $0xc8] ss:$16 sps:$4 sm:$0xff]  }
 0x1dc   :  { %v10117_v46 = vpack.c.bf16 %v672_v45, %v456_v44  ;;  %v8813_v9 = vld [vmem:[#allocation5 + $0x2c8] ss:$16 sps:$4 sm:$0xff]  }
 0x1dd   :  { %5829 = vmatpush2.bf16.msra.mxu0 %v8756_v0  ;;  %v8786_v0 = vld [vmem:[#allocation5 + $0x1500] ss:$16 sps:$4 sm:$0xff]   ;;  %v10119_v54 = vpack.c.bf16 %v674_v63, %v458_v59  ;;  %v8822_v45 = vld [vmem:[#allocation5 + $0x88] ss:$16 sps:$4 sm:$0xff]  }
 0x1de   :  { %5872 = vmatpush2.bf16.msra.mxu1 %v8759_v33  ;;  %5830 = vmatprep.subr.bf16.mxu0 %v8764_v49  ;;  %v8789_v33 = vld [vmem:[#allocation5 + $0x1700] ss:$16 sps:$4 sm:$0xff]   ;;  %v8806_v49 = vld [vmem:[#allocation5 + $0xec] ss:$16 sps:$4 sm:$0xff]   ;;  %v8825_v59 = vld [vmem:[#allocation5 + $0x288] ss:$16 sps:$4 sm:$0xff]  }
 0x1df   :  { %5873 = vmatprep.subr.bf16.mxu1 %v8767_v50  ;;  %v8809_v50 = vld [vmem:[#allocation5 + $0x2ec] ss:$16 sps:$4 sm:$0xff]   ;;  %v8831_v63 = vld [vmem:[#allocation5 + $0x268] ss:$16 sps:$4 sm:$0xff]  }
 0x1e1   :  { %5831 = vmatpush2.bf16.msra.mxu0 %v8762_v5  ;;  %v8804_v5 = vld [vmem:[#allocation5 + $0xe8] ss:$16 sps:$4 sm:$0xff]  }
 0x1e2   :  { %5874 = vmatpush2.bf16.msra.mxu1 %v8765_v13  ;;  %5832 = vmatprep.subr.bf16.mxu0 %v8770_v24  ;;  %v8807_v13 = vld [vmem:[#allocation5 + $0x2e8] ss:$16 sps:$4 sm:$0xff]  }
 0x1e3   :  { %5875 = vmatprep.subr.bf16.mxu1 %v8773_v26 }
 0x1e5   :  { %5833 = vmatpush2.bf16.msra.mxu0 %v8768_v29 }
 0x1e6   :  { %5876 = vmatpush2.bf16.msra.mxu1 %v8771_v30  ;;  %5834 = vmatprep.subr.bf16.mxu0 %v8776_v31 }
 0x1e7   :  { %5877 = vmatprep.subr.bf16.mxu1 %v8779_v42  ;;  %v8818_v42 = vld [vmem:[#allocation5 + $0xac] ss:$16 sps:$4 sm:$0xff]  }
 0x1e9   :  { %5835 = vmatpush2.bf16.msra.mxu0 %v8774_v51  ;;  %v8821_v51 = vld [vmem:[#allocation5 + $0x2ac] ss:$16 sps:$4 sm:$0xff]  }
 0x1ea   :  { %5878 = vmatpush2.bf16.msra.mxu1 %v8777_v10  ;;  %5836 = vmatprep.subr.bf16.mxu0 %v8782_v11  ;;  %v8816_v11 = vld [vmem:[#allocation5 + $0xa8] ss:$16 sps:$4 sm:$0xff]  }
 0x1eb   :  { %5879 = vmatprep.subr.bf16.mxu1 %v8785_v47  ;;  %v8819_v47 = vld [vmem:[#allocation5 + $0x2a8] ss:$16 sps:$4 sm:$0xff]  }
 0x1ed   :  { %5837 = vmatpush2.bf16.msra.mxu0 %v8780_v14 }
 0x1ee   :  { %5880 = vmatpush2.bf16.msra.mxu1 %v8783_v16  ;;  %5838 = vmatprep.subr.bf16.mxu0 %v8788_v19  ;;  %v8824_v19 = vld [vmem:[#allocation5 + $0x8c] ss:$16 sps:$4 sm:$0xff]  }
 0x1ef   :  { %5881 = vmatprep.subr.bf16.mxu1 %v8791_v22  ;;  %v8827_v22 = vld [vmem:[#allocation5 + $0x28c] ss:$16 sps:$4 sm:$0xff]  }
 0x1f1   :  { %5839 = vmatpush2.bf16.msra.mxu0 %v8786_v0  ;;  %v8836_v0 = vld [vmem:[#allocation5 + $0x4c] ss:$16 sps:$4 sm:$0xff]  }
 0x1f2   :  { %5882 = vmatpush2.bf16.msra.mxu1 %v8789_v33  ;;  %5894 = vmatprep.subr.bf16.mxu0 %v8806_v49  ;;  %v8839_v33 = vld [vmem:[#allocation5 + $0x24c] ss:$16 sps:$4 sm:$0xff]   ;;  %v8834_v49 = vld [vmem:[#allocation5 + $0x48] ss:$16 sps:$4 sm:$0xff]  }
 0x1f3   :  { %5937 = vmatprep.subr.bf16.mxu1 %v8809_v50  ;;  %v8837_v50 = vld [vmem:[#allocation5 + $0x248] ss:$16 sps:$4 sm:$0xff]  }
 0x1f4   :  { %v5584_v24 = vpop.f32.mrf.mxu0  ;;  %5841 = vmatmul.mubr.bf16.vlgmr.msra.gmra.mxu0 %v10117_v46 }
 0x1f5   :  { %v5627_v26 = vpop.f32.mrf.mxu1  ;;  %5884 = vmatmul.mubr.bf16.vlgmr.msra.gmra.mxu1 %v10119_v54  ;;  %v5585_v29 = vadd.f32 %v5584_v24, %v10102_v53  ;;  %5895 = vmatpush1.bf16.msra.mxu0 %v8804_v5  ;;  %v8842_v5 = vld [vmem:[#allocation5 + $0x2c] ss:$16 sps:$4 sm:$0xff]   ;;  %v8846_v24 = vld [vmem:[#allocation5 + $0x8] ss:$16 sps:$4 sm:$0xff]  }
 0x1f6   :  { %5938 = vmatpush1.bf16.msra.mxu1 %v8807_v13  ;;  %v10128_v30 = vpop.f32.mrf.mxu0  ;;  %5896 = vmatprep.subr.bf16.mxu0 %v8812_v60  ;;  %v8845_v13 = vld [vmem:[#allocation5 + $0x22c] ss:$16 sps:$4 sm:$0xff]   ;;  %v8840_v60 = vld [vmem:[#allocation5 + $0x28] ss:$16 sps:$4 sm:$0xff]  }
 0x1f7   :  { %v10130_v31 = vpop.f32.mrf.mxu1  ;;  %5939 = vmatprep.subr.bf16.mxu1 %v8815_v62  ;;  %v10132_v10 = vadd.f32 %v5627_v26, %v5585_v29  ;;  %5926 = vmatprep.mubr.bf16.mxu0 %v9826_v18  ;;  %v8830_v18 = vld [vmem:[#allocation5 + $0x6c] ss:$16 sps:$4 sm:$0xff]   ;;  %v8843_v62 = vld [vmem:[#allocation5 + $0x228] ss:$16 sps:$4 sm:$0xff]  }
 0x1f8   :  { %5969 = vmatprep.mubr.bf16.mxu1 %v9829_v21  ;;  %v5588_v14 = vpop.f32.mrf.mxu0  ;;  %v8833_v21 = vld [vmem:[#allocation5 + $0x26c] ss:$16 sps:$4 sm:$0xff]   ;;  %v8849_v26 = vld [vmem:[#allocation5 + $0x208] ss:$16 sps:$4 sm:$0xff]  }
 0x1f9   :  { %v5589_v53 = vadd.f32 %v5588_v14, %v10107_v55  ;;  %5897 = vmatpush1.bf16.msra.mxu0 %v8810_v3  ;;  %v5631_v16 = vpop.f32.mrf.mxu1  ;;  %v8828_v55 = vld [vmem:[#allocation5 + $0x68] ss:$16 sps:$4 sm:$0xff]   ;;  %v8848_v3 = vld [vmem:[#allocation5 + $0xc] ss:$16 sps:$4 sm:$0xff]  }
 0x1fa   :  { %5940 = vmatpush1.bf16.msra.mxu1 %v8813_v9  ;;  %5898 = vmatprep.subr.bf16.mxu0 %v8818_v42  ;;  %v8851_v9 = vld [vmem:[#allocation5 + $0x20c] ss:$16 sps:$4 sm:$0xff]  }
 0x1fb   :  { %5941 = vmatprep.subr.bf16.mxu1 %v8821_v51  ;;  %v10137_v44 = vadd.f32 %v5631_v16, %v5589_v53  ;;  %v8854_v29 = vld [vmem:[#allocation5 + $0x1ec] ss:$16 sps:$4 sm:$0xff]   ;;  %v8852_v51 = vld [vmem:[#allocation5 + $0x1e8] ss:$16 sps:$4 sm:$0xff]  }
 0x1fc   :  { %v8857_v42 = vld [vmem:[#allocation5 + $0x3ec] ss:$16 sps:$4 sm:$0xff]   ;;  %v8858_v53 = vld [vmem:[#allocation5 + $0x1c8] ss:$16 sps:$4 sm:$0xff]  }
 0x1fd   :  { %5899 = vmatpush1.bf16.msra.mxu0 %v8816_v11  ;;  %v8855_v11 = vld [vmem:[#allocation5 + $0x3e8] ss:$16 sps:$4 sm:$0xff]   ;;  %v8863_v14 = vld [vmem:[#allocation5 + $0x3cc] ss:$16 sps:$4 sm:$0xff]  }
 0x1fe   :  { %5942 = vmatpush1.bf16.msra.mxu1 %v8819_v47  ;;  %5900 = vmatprep.subr.bf16.mxu0 %v8824_v19  ;;  %v8860_v47 = vld [vmem:[#allocation5 + $0x1cc] ss:$16 sps:$4 sm:$0xff]   ;;  %v8861_v16 = vld [vmem:[#allocation5 + $0x3c8] ss:$16 sps:$4 sm:$0xff]  }
 0x1ff   :  { %5943 = vmatprep.subr.bf16.mxu1 %v8827_v22  ;;  %v8866_v19 = vld [vmem:[#allocation5 + $0x1ac] ss:$16 sps:$4 sm:$0xff]  }
 0x200   :  { %v8869_v22 = vld [vmem:[#allocation5 + $0x3ac] ss:$16 sps:$4 sm:$0xff]  }
 0x201   :  { %5901 = vmatpush1.bf16.msra.mxu0 %v8822_v45  ;;  %v8864_v45 = vld [vmem:[#allocation5 + $0x1a8] ss:$16 sps:$4 sm:$0xff]  }
 0x202   :  { %5944 = vmatpush1.bf16.msra.mxu1 %v8825_v59  ;;  %5902 = vmatprep.subr.bf16.mxu0 %v8830_v18  ;;  %v8867_v59 = vld [vmem:[#allocation5 + $0x3a8] ss:$16 sps:$4 sm:$0xff]   ;;  %v8872_v18 = vld [vmem:[#allocation5 + $0x18c] ss:$16 sps:$4 sm:$0xff]  }
 0x203   :  { %5945 = vmatprep.subr.bf16.mxu1 %v8833_v21  ;;  %v8875_v21 = vld [vmem:[#allocation5 + $0x38c] ss:$16 sps:$4 sm:$0xff]  }
 0x205   :  { %5903 = vmatpush1.bf16.msra.mxu0 %v8828_v55  ;;  %v8870_v55 = vld [vmem:[#allocation5 + $0x188] ss:$16 sps:$4 sm:$0xff]  }
 0x206   :  { %5946 = vmatpush1.bf16.msra.mxu1 %v8831_v63  ;;  %5904 = vmatprep.subr.bf16.mxu0 %v8836_v0  ;;  %v8873_v63 = vld [vmem:[#allocation5 + $0x388] ss:$16 sps:$4 sm:$0xff]   ;;  %v8878_v0 = vld [vmem:[#allocation5 + $0x16c] ss:$16 sps:$4 sm:$0xff]  }
 0x207   :  { %5947 = vmatprep.subr.bf16.mxu1 %v8839_v33  ;;  %v8881_v33 = vld [vmem:[#allocation5 + $0x36c] ss:$16 sps:$4 sm:$0xff]  }
 0x209   :  { %5905 = vmatpush1.bf16.msra.mxu0 %v8834_v49  ;;  %v8876_v49 = vld [vmem:[#allocation5 + $0x168] ss:$16 sps:$4 sm:$0xff]  }
 0x20a   :  { %5948 = vmatpush1.bf16.msra.mxu1 %v8837_v50  ;;  %5906 = vmatprep.subr.bf16.mxu0 %v8842_v5  ;;  %v8879_v50 = vld [vmem:[#allocation5 + $0x368] ss:$16 sps:$4 sm:$0xff]   ;;  %v8884_v5 = vld [vmem:[#allocation5 + $0x14c] ss:$16 sps:$4 sm:$0xff]  }
 0x20b   :  { %5949 = vmatprep.subr.bf16.mxu1 %v8845_v13  ;;  %v8887_v13 = vld [vmem:[#allocation5 + $0x34c] ss:$16 sps:$4 sm:$0xff]  }
 0x20d   :  { %5907 = vmatpush1.bf16.msra.mxu0 %v8840_v60  ;;  %v8882_v60 = vld [vmem:[#allocation5 + $0x148] ss:$16 sps:$4 sm:$0xff]  }
 0x20e   :  { %5950 = vmatpush1.bf16.msra.mxu1 %v8843_v62  ;;  %5908 = vmatprep.subr.bf16.mxu0 %v8848_v3  ;;  %v8885_v62 = vld [vmem:[#allocation5 + $0x348] ss:$16 sps:$4 sm:$0xff]   ;;  %v8890_v3 = vld [vmem:[#allocation5 + $0x12c] ss:$16 sps:$4 sm:$0xff]  }
 0x20f   :  { %5951 = vmatprep.subr.bf16.mxu1 %v8851_v9  ;;  %v8893_v9 = vld [vmem:[#allocation5 + $0x32c] ss:$16 sps:$4 sm:$0xff]  }
 0x211   :  { %5909 = vmatpush1.bf16.msra.mxu0 %v8846_v24  ;;  %v8888_v24 = vld [vmem:[#allocation5 + $0x128] ss:$16 sps:$4 sm:$0xff]  }
 0x212   :  { %5952 = vmatpush1.bf16.msra.mxu1 %v8849_v26  ;;  %5910 = vmatprep.subr.bf16.mxu0 %v8854_v29  ;;  %v8891_v26 = vld [vmem:[#allocation5 + $0x328] ss:$16 sps:$4 sm:$0xff]   ;;  %v8896_v29 = vld [vmem:[#allocation5 + $0x10c] ss:$16 sps:$4 sm:$0xff]  }
 0x213   :  { %5953 = vmatprep.subr.bf16.mxu1 %v8857_v42  ;;  %v8899_v42 = vld [vmem:[#allocation5 + $0x30c] ss:$16 sps:$4 sm:$0xff]  }
 0x215   :  { %5911 = vmatpush2.bf16.msra.mxu0 %v8852_v51  ;;  %v8894_v51 = vld [vmem:[#allocation5 + $0x108] ss:$16 sps:$4 sm:$0xff]  }
 0x216   :  { %5954 = vmatpush2.bf16.msra.mxu1 %v8855_v11  ;;  %5912 = vmatprep.subr.bf16.mxu0 %v8860_v47  ;;  %v8897_v11 = vld [vmem:[#allocation5 + $0x308] ss:$16 sps:$4 sm:$0xff]   ;;  %v8902_v47 = vld [vmem:[#allocation5 + $0x4ec] ss:$16 sps:$4 sm:$0xff]  }
 0x217   :  { %5955 = vmatprep.subr.bf16.mxu1 %v8863_v14  ;;  %v8905_v14 = vld [vmem:[#allocation5 + $0x6ec] ss:$16 sps:$4 sm:$0xff]  }
 0x219   :  { %5913 = vmatpush2.bf16.msra.mxu0 %v8858_v53  ;;  %v8900_v53 = vld [vmem:[#allocation5 + $0x4e8] ss:$16 sps:$4 sm:$0xff]  }
 0x21a   :  { %5956 = vmatpush2.bf16.msra.mxu1 %v8861_v16  ;;  %5914 = vmatprep.subr.bf16.mxu0 %v8866_v19  ;;  %v8903_v16 = vld [vmem:[#allocation5 + $0x6e8] ss:$16 sps:$4 sm:$0xff]   ;;  %v10139_v19 = vpop.f32.mrf.mxu0 }
 0x21b   :  { %5957 = vmatprep.subr.bf16.mxu1 %v8869_v22  ;;  %v10141_v22 = vpop.f32.mrf.mxu1 }
 0x21d   :  { %5915 = vmatpush2.bf16.msra.mxu0 %v8864_v45  ;;  %v8908_v45 = vld [vmem:[#allocation5 + $0x4cc] ss:$16 sps:$4 sm:$0xff]  }
 0x21e   :  { %5958 = vmatpush2.bf16.msra.mxu1 %v8867_v59  ;;  %5916 = vmatprep.subr.bf16.mxu0 %v8872_v18  ;;  %v8911_v59 = vld [vmem:[#allocation5 + $0x6cc] ss:$16 sps:$4 sm:$0xff]   ;;  %v8906_v18 = vld [vmem:[#allocation5 + $0x4c8] ss:$16 sps:$4 sm:$0xff]  }
 0x21f   :  { %5959 = vmatprep.subr.bf16.mxu1 %v8875_v21  ;;  %v8909_v21 = vld [vmem:[#allocation5 + $0x6c8] ss:$16 sps:$4 sm:$0xff]  }
 0x221   :  { %5917 = vmatpush2.bf16.msra.mxu0 %v8870_v55 }
 0x222   :  { %5960 = vmatpush2.bf16.msra.mxu1 %v8873_v63  ;;  %5918 = vmatprep.subr.bf16.mxu0 %v8878_v0 }
 0x223   :  { %5961 = vmatprep.subr.bf16.mxu1 %v8881_v33 }
 0x225   :  { %5919 = vmatpush2.bf16.msra.mxu0 %v8876_v49 }
 0x226   :  { %5962 = vmatpush2.bf16.msra.mxu1 %v8879_v50  ;;  %5920 = vmatprep.subr.bf16.mxu0 %v8884_v5  ;;  %v8914_v50 = vld [vmem:[#allocation5 + $0x4ac] ss:$16 sps:$4 sm:$0xff]  }
 0x227   :  { %5963 = vmatprep.subr.bf16.mxu1 %v8887_v13  ;;  %v8917_v5 = vld [vmem:[#allocation5 + $0x6ac] ss:$16 sps:$4 sm:$0xff]  }
 0x229   :  { %5921 = vmatpush2.bf16.msra.mxu0 %v8882_v60  ;;  %v8912_v60 = vld [vmem:[#allocation5 + $0x4a8] ss:$16 sps:$4 sm:$0xff]  }
 0x22a   :  { %5964 = vmatpush2.bf16.msra.mxu1 %v8885_v62  ;;  %5922 = vmatprep.subr.bf16.mxu0 %v8890_v3  ;;  %v8915_v62 = vld [vmem:[#allocation5 + $0x6a8] ss:$16 sps:$4 sm:$0xff]   ;;  %v8920_v3 = vld [vmem:[#allocation5 + $0x48c] ss:$16 sps:$4 sm:$0xff]  }
 0x22b   :  { %5965 = vmatprep.subr.bf16.mxu1 %v8893_v9  ;;  %v8923_v9 = vld [vmem:[#allocation5 + $0x68c] ss:$16 sps:$4 sm:$0xff]  }
 0x22d   :  { %5923 = vmatpush2.bf16.msra.mxu0 %v8888_v24 }
 0x22e   :  { %5966 = vmatpush2.bf16.msra.mxu1 %v8891_v26  ;;  %5924 = vmatprep.subr.bf16.mxu0 %v8896_v29  ;;  %v8918_v26 = vld [vmem:[#allocation5 + $0x488] ss:$16 sps:$4 sm:$0xff]  }
 0x22f   :  { %5967 = vmatprep.subr.bf16.mxu1 %v8899_v42  ;;  %v8921_v29 = vld [vmem:[#allocation5 + $0x688] ss:$16 sps:$4 sm:$0xff]  }
 0x230   :  { %v8927_v42 = vld [vmem:[#allocation5 + $0x668] ss:$16 sps:$4 sm:$0xff]  }
 0x231   :  { %5925 = vmatpush2.bf16.msra.mxu0 %v8894_v51  ;;  %v8932_v51 = vld [vmem:[#allocation5 + $0x44c] ss:$16 sps:$4 sm:$0xff]  }
 0x232   :  { %5968 = vmatpush2.bf16.msra.mxu1 %v8897_v11  ;;  %5980 = vmatprep.subr.bf16.mxu0 %v8902_v47  ;;  %v8935_v11 = vld [vmem:[#allocation5 + $0x64c] ss:$16 sps:$4 sm:$0xff]   ;;  %v8930_v47 = vld [vmem:[#allocation5 + $0x448] ss:$16 sps:$4 sm:$0xff]  }
 0x233   :  { %6023 = vmatprep.subr.bf16.mxu1 %v8905_v14  ;;  %v8933_v14 = vld [vmem:[#allocation5 + $0x648] ss:$16 sps:$4 sm:$0xff]  }
 0x234   :  { %v5670_v55 = vpop.f32.mrf.mxu0  ;;  %5927 = vmatmul.mubr.bf16.vlgmr.msra.gmra.mxu0 %v9832_v34 }
 0x235   :  { %v5713_v63 = vpop.f32.mrf.mxu1  ;;  %5970 = vmatmul.mubr.bf16.vlgmr.msra.gmra.mxu1 %v9834_v35  ;;  %v5671_v0 = vadd.f32 %v5670_v55, %v10132_v10  ;;  %5981 = vmatpush1.bf16.msra.mxu0 %v8900_v53  ;;  %v8938_v53 = vld [vmem:[#allocation5 + $0x42c] ss:$16 sps:$4 sm:$0xff]   ;;  %v8942_v55 = vld [vmem:[#allocation5 + $0x408] ss:$16 sps:$4 sm:$0xff]  }
 0x236   :  { %6024 = vmatpush1.bf16.msra.mxu1 %v8903_v16  ;;  %v10146_v33 = vpop.f32.mrf.mxu0  ;;  %5982 = vmatprep.subr.bf16.mxu0 %v8908_v45  ;;  %v8941_v16 = vld [vmem:[#allocation5 + $0x62c] ss:$16 sps:$4 sm:$0xff]   ;;  %v8936_v45 = vld [vmem:[#allocation5 + $0x428] ss:$16 sps:$4 sm:$0xff]  }
 0x237   :  { %v10148_v49 = vpop.f32.mrf.mxu1  ;;  %6025 = vmatprep.subr.bf16.mxu1 %v8911_v59  ;;  %v10150_v13 = vadd.f32 %v5713_v63, %v5671_v0  ;;  %6012 = vmatprep.mubr.bf16.mxu0 %v9868_v36  ;;  %v8926_v36 = vld [vmem:[#allocation5 + $0x46c] ss:$16 sps:$4 sm:$0xff]   ;;  %v8939_v59 = vld [vmem:[#allocation5 + $0x628] ss:$16 sps:$4 sm:$0xff]  }
 0x238   :  { %6055 = vmatprep.mubr.bf16.mxu1 %v9873_v39  ;;  %v5674_v34 = vpop.f32.mrf.mxu0  ;;  %v8929_v39 = vld [vmem:[#allocation5 + $0x66c] ss:$16 sps:$4 sm:$0xff]   ;;  %v8945_v63 = vld [vmem:[#allocation5 + $0x608] ss:$16 sps:$4 sm:$0xff]  }
 0x239   :  { %v5675_v35 = vadd.f32 %v5674_v34, %v10137_v44  ;;  %5983 = vmatpush1.bf16.msra.mxu0 %v8906_v18  ;;  %v5717_v10 = vpop.f32.mrf.mxu1  ;;  %v8924_v44 = vld [vmem:[#allocation5 + $0x468] ss:$16 sps:$4 sm:$0xff]   ;;  %v8944_v18 = vld [vmem:[#allocation5 + $0x40c] ss:$16 sps:$4 sm:$0xff]  }
 0x23a   :  { %6026 = vmatpush1.bf16.msra.mxu1 %v8909_v21  ;;  %5984 = vmatprep.subr.bf16.mxu0 %v8914_v50  ;;  %v8947_v21 = vld [vmem:[#allocation5 + $0x60c] ss:$16 sps:$4 sm:$0xff]  }
 0x23b   :  { %6027 = vmatprep.subr.bf16.mxu1 %v8917_v5  ;;  %v10155_v24 = vadd.f32 %v5717_v10, %v5675_v35  ;;  %v8950_v0 = vld [vmem:[#allocation5 + $0x5ec] ss:$16 sps:$4 sm:$0xff]   ;;  %v8948_v5 = vld [vmem:[#allocation5 + $0x5e8] ss:$16 sps:$4 sm:$0xff]  }
 0x23c   :  { %v8953_v50 = vld [vmem:[#allocation5 + $0x7ec] ss:$16 sps:$4 sm:$0xff]   ;;  %v8954_v35 = vld [vmem:[#allocation5 + $0x5c8] ss:$16 sps:$4 sm:$0xff]  }
 0x23d   :  { %5985 = vmatpush1.bf16.msra.mxu0 %v8912_v60  ;;  %v8951_v60 = vld [vmem:[#allocation5 + $0x7e8] ss:$16 sps:$4 sm:$0xff]   ;;  %v8959_v34 = vld [vmem:[#allocation5 + $0x7cc] ss:$16 sps:$4 sm:$0xff]  }
 0x23e   :  { %6028 = vmatpush1.bf16.msra.mxu1 %v8915_v62  ;;  %5986 = vmatprep.subr.bf16.mxu0 %v8920_v3  ;;  %v8956_v62 = vld [vmem:[#allocation5 + $0x5cc] ss:$16 sps:$4 sm:$0xff]   ;;  %v8957_v10 = vld [vmem:[#allocation5 + $0x7c8] ss:$16 sps:$4 sm:$0xff]  }
 0x23f   :  { %6029 = vmatprep.subr.bf16.mxu1 %v8923_v9  ;;  %v8962_v3 = vld [vmem:[#allocation5 + $0x5ac] ss:$16 sps:$4 sm:$0xff]  }
 0x240   :  { %v8965_v9 = vld [vmem:[#allocation5 + $0x7ac] ss:$16 sps:$4 sm:$0xff]  }
 0x241   :  { %5987 = vmatpush1.bf16.msra.mxu0 %v8918_v26  ;;  %v8960_v26 = vld [vmem:[#allocation5 + $0x5a8] ss:$16 sps:$4 sm:$0xff]  }
 0x242   :  { %6030 = vmatpush1.bf16.msra.mxu1 %v8921_v29  ;;  %5988 = vmatprep.subr.bf16.mxu0 %v8926_v36  ;;  %v8963_v29 = vld [vmem:[#allocation5 + $0x7a8] ss:$16 sps:$4 sm:$0xff]   ;;  %v8968_v36 = vld [vmem:[#allocation5 + $0x58c] ss:$16 sps:$4 sm:$0xff]  }
 0x243   :  { %6031 = vmatprep.subr.bf16.mxu1 %v8929_v39  ;;  %v8971_v39 = vld [vmem:[#allocation5 + $0x78c] ss:$16 sps:$4 sm:$0xff]  }
 0x245   :  { %5989 = vmatpush1.bf16.msra.mxu0 %v8924_v44  ;;  %v8966_v44 = vld [vmem:[#allocation5 + $0x588] ss:$16 sps:$4 sm:$0xff]  }
 0x246   :  { %6032 = vmatpush1.bf16.msra.mxu1 %v8927_v42  ;;  %5990 = vmatprep.subr.bf16.mxu0 %v8932_v51  ;;  %v8969_v42 = vld [vmem:[#allocation5 + $0x788] ss:$16 sps:$4 sm:$0xff]   ;;  %v8974_v51 = vld [vmem:[#allocation5 + $0x56c] ss:$16 sps:$4 sm:$0xff]  }
 0x247   :  { %6033 = vmatprep.subr.bf16.mxu1 %v8935_v11  ;;  %v8977_v11 = vld [vmem:[#allocation5 + $0x76c] ss:$16 sps:$4 sm:$0xff]  }
 0x249   :  { %5991 = vmatpush1.bf16.msra.mxu0 %v8930_v47  ;;  %v8972_v47 = vld [vmem:[#allocation5 + $0x568] ss:$16 sps:$4 sm:$0xff]  }
 0x24a   :  { %6034 = vmatpush1.bf16.msra.mxu1 %v8933_v14  ;;  %5992 = vmatprep.subr.bf16.mxu0 %v8938_v53  ;;  %v8975_v14 = vld [vmem:[#allocation5 + $0x768] ss:$16 sps:$4 sm:$0xff]   ;;  %v8980_v53 = vld [vmem:[#allocation5 + $0x54c] ss:$16 sps:$4 sm:$0xff]  }
 0x24b   :  { %6035 = vmatprep.subr.bf16.mxu1 %v8941_v16  ;;  %v8983_v16 = vld [vmem:[#allocation5 + $0x74c] ss:$16 sps:$4 sm:$0xff]  }
 0x24d   :  { %5993 = vmatpush1.bf16.msra.mxu0 %v8936_v45  ;;  %v8978_v45 = vld [vmem:[#allocation5 + $0x548] ss:$16 sps:$4 sm:$0xff]  }
 0x24e   :  { %6036 = vmatpush1.bf16.msra.mxu1 %v8939_v59  ;;  %5994 = vmatprep.subr.bf16.mxu0 %v8944_v18  ;;  %v8981_v59 = vld [vmem:[#allocation5 + $0x748] ss:$16 sps:$4 sm:$0xff]   ;;  %v8986_v18 = vld [vmem:[#allocation5 + $0x52c] ss:$16 sps:$4 sm:$0xff]  }
 0x24f   :  { %6037 = vmatprep.subr.bf16.mxu1 %v8947_v21  ;;  %v8989_v21 = vld [vmem:[#allocation5 + $0x72c] ss:$16 sps:$4 sm:$0xff]  }
 0x251   :  { %5995 = vmatpush1.bf16.msra.mxu0 %v8942_v55  ;;  %v8984_v55 = vld [vmem:[#allocation5 + $0x528] ss:$16 sps:$4 sm:$0xff]  }
 0x252   :  { %6038 = vmatpush1.bf16.msra.mxu1 %v8945_v63  ;;  %5996 = vmatprep.subr.bf16.mxu0 %v8950_v0  ;;  %v8987_v63 = vld [vmem:[#allocation5 + $0x728] ss:$16 sps:$4 sm:$0xff]   ;;  %v8992_v0 = vld [vmem:[#allocation5 + $0x50c] ss:$16 sps:$4 sm:$0xff]  }
 0x253   :  { %6039 = vmatprep.subr.bf16.mxu1 %v8953_v50  ;;  %v8995_v50 = vld [vmem:[#allocation5 + $0x70c] ss:$16 sps:$4 sm:$0xff]  }
 0x255   :  { %5997 = vmatpush2.bf16.msra.mxu0 %v8948_v5  ;;  %v8990_v5 = vld [vmem:[#allocation5 + $0x508] ss:$16 sps:$4 sm:$0xff]  }
 0x256   :  { %6040 = vmatpush2.bf16.msra.mxu1 %v8951_v60  ;;  %5998 = vmatprep.subr.bf16.mxu0 %v8956_v62  ;;  %v8993_v60 = vld [vmem:[#allocation5 + $0x708] ss:$16 sps:$4 sm:$0xff]   ;;  %v8998_v62 = vld [vmem:[#allocation5 + $0x8ec] ss:$16 sps:$4 sm:$0xff]  }
 0x257   :  { %6041 = vmatprep.subr.bf16.mxu1 %v8959_v34  ;;  %v9001_v34 = vld [vmem:[#allocation5 + $0xaec] ss:$16 sps:$4 sm:$0xff]  }
 0x259   :  { %5999 = vmatpush2.bf16.msra.mxu0 %v8954_v35  ;;  %v8996_v35 = vld [vmem:[#allocation5 + $0x8e8] ss:$16 sps:$4 sm:$0xff]  }
 0x25a   :  { %6042 = vmatpush2.bf16.msra.mxu1 %v8957_v10  ;;  %6000 = vmatprep.subr.bf16.mxu0 %v8962_v3  ;;  %v8999_v10 = vld [vmem:[#allocation5 + $0xae8] ss:$16 sps:$4 sm:$0xff]   ;;  %v10157_v3 = vpop.f32.mrf.mxu0 }
 0x25b   :  { %6043 = vmatprep.subr.bf16.mxu1 %v8965_v9  ;;  %v10159_v9 = vpop.f32.mrf.mxu1 }
 0x25d   :  { %6001 = vmatpush2.bf16.msra.mxu0 %v8960_v26  ;;  %v9004_v26 = vld [vmem:[#allocation5 + $0x8cc] ss:$16 sps:$4 sm:$0xff]  }
 0x25e   :  { %6044 = vmatpush2.bf16.msra.mxu1 %v8963_v29  ;;  %6002 = vmatprep.subr.bf16.mxu0 %v8968_v36  ;;  %v9007_v29 = vld [vmem:[#allocation5 + $0xacc] ss:$16 sps:$4 sm:$0xff]   ;;  %v9002_v36 = vld [vmem:[#allocation5 + $0x8c8] ss:$16 sps:$4 sm:$0xff]  }
 0x25f   :  { %6045 = vmatprep.subr.bf16.mxu1 %v8971_v39  ;;  %v9005_v39 = vld [vmem:[#allocation5 + $0xac8] ss:$16 sps:$4 sm:$0xff]  }
 0x261   :  { %6003 = vmatpush2.bf16.msra.mxu0 %v8966_v44 }
 0x262   :  { %6046 = vmatpush2.bf16.msra.mxu1 %v8969_v42  ;;  %6004 = vmatprep.subr.bf16.mxu0 %v8974_v51 }
 0x263   :  { %6047 = vmatprep.subr.bf16.mxu1 %v8977_v11 }
 0x265   :  { %6005 = vmatpush2.bf16.msra.mxu0 %v8972_v47 }
 0x266   :  { %6048 = vmatpush2.bf16.msra.mxu1 %v8975_v14  ;;  %6006 = vmatprep.subr.bf16.mxu0 %v8980_v53  ;;  %v9010_v14 = vld [vmem:[#allocation5 + $0x8ac] ss:$16 sps:$4 sm:$0xff]  }
 0x267   :  { %6049 = vmatprep.subr.bf16.mxu1 %v8983_v16  ;;  %v9013_v53 = vld [vmem:[#allocation5 + $0xaac] ss:$16 sps:$4 sm:$0xff]  }
 0x269   :  { %6007 = vmatpush2.bf16.msra.mxu0 %v8978_v45  ;;  %v9008_v45 = vld [vmem:[#allocation5 + $0x8a8] ss:$16 sps:$4 sm:$0xff]  }
 0x26a   :  { %6050 = vmatpush2.bf16.msra.mxu1 %v8981_v59  ;;  %6008 = vmatprep.subr.bf16.mxu0 %v8986_v18  ;;  %v9011_v59 = vld [vmem:[#allocation5 + $0xaa8] ss:$16 sps:$4 sm:$0xff]   ;;  %v9016_v18 = vld [vmem:[#allocation5 + $0x88c] ss:$16 sps:$4 sm:$0xff]  }
 0x26b   :  { %6051 = vmatprep.subr.bf16.mxu1 %v8989_v21  ;;  %v9019_v21 = vld [vmem:[#allocation5 + $0xa8c] ss:$16 sps:$4 sm:$0xff]  }
 0x26d   :  { %6009 = vmatpush2.bf16.msra.mxu0 %v8984_v55 }
 0x26e   :  { %6052 = vmatpush2.bf16.msra.mxu1 %v8987_v63  ;;  %6010 = vmatprep.subr.bf16.mxu0 %v8992_v0  ;;  %v9014_v63 = vld [vmem:[#allocation5 + $0x888] ss:$16 sps:$4 sm:$0xff]  }
 0x26f   :  { %6053 = vmatprep.subr.bf16.mxu1 %v8995_v50  ;;  %v9017_v0 = vld [vmem:[#allocation5 + $0xa88] ss:$16 sps:$4 sm:$0xff]  }
 0x270   :  { %v9023_v50 = vld [vmem:[#allocation5 + $0xa68] ss:$16 sps:$4 sm:$0xff]  }
 0x271   :  { %6011 = vmatpush2.bf16.msra.mxu0 %v8990_v5  ;;  %v9028_v5 = vld [vmem:[#allocation5 + $0x84c] ss:$16 sps:$4 sm:$0xff]  }
 0x272   :  { %6054 = vmatpush2.bf16.msra.mxu1 %v8993_v60  ;;  %6066 = vmatprep.subr.bf16.mxu0 %v8998_v62  ;;  %v9031_v60 = vld [vmem:[#allocation5 + $0xa4c] ss:$16 sps:$4 sm:$0xff]   ;;  %v9026_v62 = vld [vmem:[#allocation5 + $0x848] ss:$16 sps:$4 sm:$0xff]  }
 0x273   :  { %6109 = vmatprep.subr.bf16.mxu1 %v9001_v34  ;;  %v9029_v34 = vld [vmem:[#allocation5 + $0xa48] ss:$16 sps:$4 sm:$0xff]  }
 0x274   :  { %v5756_v44 = vpop.f32.mrf.mxu0  ;;  %6013 = vmatmul.mubr.bf16.vlgmr.msra.gmra.mxu0 %v9884_v6 }
 0x275   :  { %v5799_v42 = vpop.f32.mrf.mxu1  ;;  %6056 = vmatmul.mubr.bf16.vlgmr.msra.gmra.mxu1 %v9886_v7  ;;  %v5757_v51 = vadd.f32 %v5756_v44, %v10150_v13  ;;  %6067 = vmatpush1.bf16.msra.mxu0 %v8996_v35  ;;  %v9034_v35 = vld [vmem:[#allocation5 + $0x82c] ss:$16 sps:$4 sm:$0xff]   ;;  %v9038_v44 = vld [vmem:[#allocation5 + $0x808] ss:$16 sps:$4 sm:$0xff]  }
 0x276   :  { %6110 = vmatpush1.bf16.msra.mxu1 %v8999_v10  ;;  %v10164_v11 = vpop.f32.mrf.mxu0  ;;  %6068 = vmatprep.subr.bf16.mxu0 %v9004_v26  ;;  %v9037_v10 = vld [vmem:[#allocation5 + $0xa2c] ss:$16 sps:$4 sm:$0xff]   ;;  %v9032_v26 = vld [vmem:[#allocation5 + $0x828] ss:$16 sps:$4 sm:$0xff]  }
 0x277   :  { %v10166_v47 = vpop.f32.mrf.mxu1  ;;  %6111 = vmatprep.subr.bf16.mxu1 %v9007_v29  ;;  %v10168_v16 = vadd.f32 %v5799_v42, %v5757_v51  ;;  %6098 = vmatprep.mubr.bf16.mxu0 %v9920_v58  ;;  %v9022_v58 = vld [vmem:[#allocation5 + $0x86c] ss:$16 sps:$4 sm:$0xff]   ;;  %v9035_v29 = vld [vmem:[#allocation5 + $0xa28] ss:$16 sps:$4 sm:$0xff]  }
 0x278   :  { %6141 = vmatprep.mubr.bf16.mxu1 %v9925_v61  ;;  %v5760_v6 = vpop.f32.mrf.mxu0  ;;  %v9025_v61 = vld [vmem:[#allocation5 + $0xa6c] ss:$16 sps:$4 sm:$0xff]   ;;  %v9041_v42 = vld [vmem:[#allocation5 + $0xa08] ss:$16 sps:$4 sm:$0xff]  }
 0x279   :  { %v5761_v7 = vadd.f32 %v5760_v6, %v10155_v24  ;;  %6069 = vmatpush1.bf16.msra.mxu0 %v9002_v36  ;;  %v5803_v13 = vpop.f32.mrf.mxu1  ;;  %v9020_v24 = vld [vmem:[#allocation5 + $0x868] ss:$16 sps:$4 sm:$0xff]   ;;  %v9040_v36 = vld [vmem:[#allocation5 + $0x80c] ss:$16 sps:$4 sm:$0xff]  }
 0x27a   :  { %6112 = vmatpush1.bf16.msra.mxu1 %v9005_v39  ;;  %6070 = vmatprep.subr.bf16.mxu0 %v9010_v14  ;;  %v9043_v39 = vld [vmem:[#allocation5 + $0xa0c] ss:$16 sps:$4 sm:$0xff]  }
 0x27b   :  { %6113 = vmatprep.subr.bf16.mxu1 %v9013_v53  ;;  %v10173_v55 = vadd.f32 %v5803_v13, %v5761_v7  ;;  %v9046_v51 = vld [vmem:[#allocation5 + $0x9ec] ss:$16 sps:$4 sm:$0xff]   ;;  %v9044_v53 = vld [vmem:[#allocation5 + $0x9e8] ss:$16 sps:$4 sm:$0xff]  }
 0x27c   :  { %v9049_v14 = vld [vmem:[#allocation5 + $0xbec] ss:$16 sps:$4 sm:$0xff]   ;;  %v9050_v7 = vld [vmem:[#allocation5 + $0x9c8] ss:$16 sps:$4 sm:$0xff]  }
 0x27d   :  { %6071 = vmatpush1.bf16.msra.mxu0 %v9008_v45  ;;  %v9047_v45 = vld [vmem:[#allocation5 + $0xbe8] ss:$16 sps:$4 sm:$0xff]   ;;  %v9055_v6 = vld [vmem:[#allocation5 + $0xbcc] ss:$16 sps:$4 sm:$0xff]  }
 0x27e   :  { %6114 = vmatpush1.bf16.msra.mxu1 %v9011_v59  ;;  %6072 = vmatprep.subr.bf16.mxu0 %v9016_v18  ;;  %v9052_v59 = vld [vmem:[#allocation5 + $0x9cc] ss:$16 sps:$4 sm:$0xff]   ;;  %v9053_v13 = vld [vmem:[#allocation5 + $0xbc8] ss:$16 sps:$4 sm:$0xff]  }
 0x27f   :  { %6115 = vmatprep.subr.bf16.mxu1 %v9019_v21  ;;  %v9058_v18 = vld [vmem:[#allocation5 + $0x9ac] ss:$16 sps:$4 sm:$0xff]  }
 0x280   :  { %v9061_v21 = vld [vmem:[#allocation5 + $0xbac] ss:$16 sps:$4 sm:$0xff]  }
 0x281   :  { %6073 = vmatpush1.bf16.msra.mxu0 %v9014_v63  ;;  %v9056_v63 = vld [vmem:[#allocation5 + $0x9a8] ss:$16 sps:$4 sm:$0xff]  }
 0x282   :  { %6116 = vmatpush1.bf16.msra.mxu1 %v9017_v0  ;;  %6074 = vmatprep.subr.bf16.mxu0 %v9022_v58  ;;  %v9059_v0 = vld [vmem:[#allocation5 + $0xba8] ss:$16 sps:$4 sm:$0xff]   ;;  %v9064_v58 = vld [vmem:[#allocation5 + $0x98c] ss:$16 sps:$4 sm:$0xff]  }
 0x283   :  { %6117 = vmatprep.subr.bf16.mxu1 %v9025_v61  ;;  %v9067_v61 = vld [vmem:[#allocation5 + $0xb8c] ss:$16 sps:$4 sm:$0xff]  }
 0x285   :  { %6075 = vmatpush1.bf16.msra.mxu0 %v9020_v24  ;;  %v9062_v24 = vld [vmem:[#allocation5 + $0x988] ss:$16 sps:$4 sm:$0xff]  }
 0x286   :  { %6118 = vmatpush1.bf16.msra.mxu1 %v9023_v50  ;;  %6076 = vmatprep.subr.bf16.mxu0 %v9028_v5  ;;  %v9065_v50 = vld [vmem:[#allocation5 + $0xb88] ss:$16 sps:$4 sm:$0xff]   ;;  %v9070_v5 = vld [vmem:[#allocation5 + $0x96c] ss:$16 sps:$4 sm:$0xff]  }
 0x287   :  { %6119 = vmatprep.subr.bf16.mxu1 %v9031_v60  ;;  %v9073_v60 = vld [vmem:[#allocation5 + $0xb6c] ss:$16 sps:$4 sm:$0xff]  }
 0x289   :  { %6077 = vmatpush1.bf16.msra.mxu0 %v9026_v62  ;;  %v9068_v62 = vld [vmem:[#allocation5 + $0x968] ss:$16 sps:$4 sm:$0xff]  }
 0x28a   :  { %6120 = vmatpush1.bf16.msra.mxu1 %v9029_v34  ;;  %6078 = vmatprep.subr.bf16.mxu0 %v9034_v35  ;;  %v9071_v34 = vld [vmem:[#allocation5 + $0xb68] ss:$16 sps:$4 sm:$0xff]   ;;  %v9076_v35 = vld [vmem:[#allocation5 + $0x94c] ss:$16 sps:$4 sm:$0xff]  }
 0x28b   :  { %6121 = vmatprep.subr.bf16.mxu1 %v9037_v10  ;;  %v9079_v10 = vld [vmem:[#allocation5 + $0xb4c] ss:$16 sps:$4 sm:$0xff]  }
 0x28d   :  { %6079 = vmatpush1.bf16.msra.mxu0 %v9032_v26  ;;  %v9074_v26 = vld [vmem:[#allocation5 + $0x948] ss:$16 sps:$4 sm:$0xff]  }
 0x28e   :  { %6122 = vmatpush1.bf16.msra.mxu1 %v9035_v29  ;;  %6080 = vmatprep.subr.bf16.mxu0 %v9040_v36  ;;  %v9077_v29 = vld [vmem:[#allocation5 + $0xb48] ss:$16 sps:$4 sm:$0xff]   ;;  %v9082_v36 = vld [vmem:[#allocation5 + $0x92c] ss:$16 sps:$4 sm:$0xff]  }
 0x28f   :  { %6123 = vmatprep.subr.bf16.mxu1 %v9043_v39  ;;  %v9085_v39 = vld [vmem:[#allocation5 + $0xb2c] ss:$16 sps:$4 sm:$0xff]  }
 0x291   :  { %6081 = vmatpush1.bf16.msra.mxu0 %v9038_v44  ;;  %v9080_v44 = vld [vmem:[#allocation5 + $0x928] ss:$16 sps:$4 sm:$0xff]  }
 0x292   :  { %6124 = vmatpush1.bf16.msra.mxu1 %v9041_v42  ;;  %6082 = vmatprep.subr.bf16.mxu0 %v9046_v51  ;;  %v9083_v42 = vld [vmem:[#allocation5 + $0xb28] ss:$16 sps:$4 sm:$0xff]   ;;  %v9088_v51 = vld [vmem:[#allocation5 + $0x90c] ss:$16 sps:$4 sm:$0xff]  }
 0x293   :  { %6125 = vmatprep.subr.bf16.mxu1 %v9049_v14  ;;  %v9091_v14 = vld [vmem:[#allocation5 + $0xb0c] ss:$16 sps:$4 sm:$0xff]  }
 0x295   :  { %6083 = vmatpush2.bf16.msra.mxu0 %v9044_v53  ;;  %v9086_v53 = vld [vmem:[#allocation5 + $0x908] ss:$16 sps:$4 sm:$0xff]  }
 0x296   :  { %6126 = vmatpush2.bf16.msra.mxu1 %v9047_v45  ;;  %6084 = vmatprep.subr.bf16.mxu0 %v9052_v59  ;;  %v9089_v45 = vld [vmem:[#allocation5 + $0xb08] ss:$16 sps:$4 sm:$0xff]   ;;  %v9094_v59 = vld [vmem:[#allocation5 + $0xcec] ss:$16 sps:$4 sm:$0xff]  }
 0x297   :  { %6127 = vmatprep.subr.bf16.mxu1 %v9055_v6  ;;  %v9097_v6 = vld [vmem:[#allocation5 + $0xeec] ss:$16 sps:$4 sm:$0xff]  }
 0x299   :  { %6085 = vmatpush2.bf16.msra.mxu0 %v9050_v7  ;;  %v9092_v7 = vld [vmem:[#allocation5 + $0xce8] ss:$16 sps:$4 sm:$0xff]  }
 0x29a   :  { %6128 = vmatpush2.bf16.msra.mxu1 %v9053_v13  ;;  %6086 = vmatprep.subr.bf16.mxu0 %v9058_v18  ;;  %v9095_v13 = vld [vmem:[#allocation5 + $0xee8] ss:$16 sps:$4 sm:$0xff]   ;;  %v10175_v18 = vpop.f32.mrf.mxu0 }
 0x29b   :  { %6129 = vmatprep.subr.bf16.mxu1 %v9061_v21  ;;  %v10177_v21 = vpop.f32.mrf.mxu1 }
 0x29d   :  { %6087 = vmatpush2.bf16.msra.mxu0 %v9056_v63  ;;  %v9100_v63 = vld [vmem:[#allocation5 + $0xccc] ss:$16 sps:$4 sm:$0xff]  }
 0x29e   :  { %6130 = vmatpush2.bf16.msra.mxu1 %v9059_v0  ;;  %6088 = vmatprep.subr.bf16.mxu0 %v9064_v58  ;;  %v9103_v0 = vld [vmem:[#allocation5 + $0xecc] ss:$16 sps:$4 sm:$0xff]  }
 0x29f   :  { %6131 = vmatprep.subr.bf16.mxu1 %v9067_v61 }
 0x2a1   :  { %6089 = vmatpush2.bf16.msra.mxu0 %v9062_v24 }
 0x2a2   :  { %6132 = vmatpush2.bf16.msra.mxu1 %v9065_v50  ;;  %6090 = vmatprep.subr.bf16.mxu0 %v9070_v5  ;;  %v9098_v50 = vld [vmem:[#allocation5 + $0xcc8] ss:$16 sps:$4 sm:$0xff]  }
 0x2a3   :  { %6133 = vmatprep.subr.bf16.mxu1 %v9073_v60  ;;  %v9101_v5 = vld [vmem:[#allocation5 + $0xec8] ss:$16 sps:$4 sm:$0xff]  }
 0x2a5   :  { %6091 = vmatpush2.bf16.msra.mxu0 %v9068_v62 }
 0x2a6   :  { %6134 = vmatpush2.bf16.msra.mxu1 %v9071_v34  ;;  %6092 = vmatprep.subr.bf16.mxu0 %v9076_v35  ;;  %v9106_v34 = vld [vmem:[#allocation5 + $0xcac] ss:$16 sps:$4 sm:$0xff]  }
 0x2a7   :  { %6135 = vmatprep.subr.bf16.mxu1 %v9079_v10  ;;  %v9109_v35 = vld [vmem:[#allocation5 + $0xeac] ss:$16 sps:$4 sm:$0xff]  }
 0x2a9   :  { %6093 = vmatpush2.bf16.msra.mxu0 %v9074_v26  ;;  %v9107_v26 = vld [vmem:[#allocation5 + $0xea8] ss:$16 sps:$4 sm:$0xff]  }
 0x2aa   :  { %6136 = vmatpush2.bf16.msra.mxu1 %v9077_v29  ;;  %6094 = vmatprep.subr.bf16.mxu0 %v9082_v36  ;;  %v9112_v36 = vld [vmem:[#allocation5 + $0xc8c] ss:$16 sps:$4 sm:$0xff]  }
 0x2ab   :  { %6137 = vmatprep.subr.bf16.mxu1 %v9085_v39  ;;  %v9115_v39 = vld [vmem:[#allocation5 + $0xe8c] ss:$16 sps:$4 sm:$0xff]  }
 0x2ad   :  { %6095 = vmatpush2.bf16.msra.mxu0 %v9080_v44 }
 0x2ae   :  { %6138 = vmatpush2.bf16.msra.mxu1 %v9083_v42  ;;  %6096 = vmatprep.subr.bf16.mxu0 %v9088_v51 }
 0x2af   :  { %6139 = vmatprep.subr.bf16.mxu1 %v9091_v14  ;;  %v9113_v14 = vld [vmem:[#allocation5 + $0xe88] ss:$16 sps:$4 sm:$0xff]  }
 0x2b1   :  { %6097 = vmatpush2.bf16.msra.mxu0 %v9086_v53 }
 0x2b2   :  { %6140 = vmatpush2.bf16.msra.mxu1 %v9089_v45  ;;  %6152 = vmatprep.subr.bf16.mxu0 %v9094_v59  ;;  %v9116_v45 = vld [vmem:[#allocation5 + $0xc68] ss:$16 sps:$4 sm:$0xff]  }
 0x2b3   :  { %6195 = vmatprep.subr.bf16.mxu1 %v9097_v6  ;;  %v9119_v59 = vld [vmem:[#allocation5 + $0xe68] ss:$16 sps:$4 sm:$0xff]   ;;  %v9124_v6 = vld [vmem:[#allocation5 + $0xc4c] ss:$16 sps:$4 sm:$0xff]  }
 0x2b4   :  { %v5842_v58 = vpop.f32.mrf.mxu0  ;;  %6099 = vmatmul.mubr.bf16.vlgmr.msra.gmra.mxu0 %v9936_v2 }
 0x2b5   :  { %v5885_v61 = vpop.f32.mrf.mxu1  ;;  %6142 = vmatmul.mubr.bf16.vlgmr.msra.gmra.mxu1 %v9938_v43  ;;  %v5843_v24 = vadd.f32 %v5842_v58, %v10168_v16  ;;  %6153 = vmatpush1.bf16.msra.mxu0 %v9092_v7  ;;  %v9104_v16 = vld [vmem:[#allocation5 + $0xca8] ss:$16 sps:$4 sm:$0xff]   ;;  %v9127_v7 = vld [vmem:[#allocation5 + $0xe4c] ss:$16 sps:$4 sm:$0xff]  }
 0x2b6   :  { %6196 = vmatpush1.bf16.msra.mxu1 %v9095_v13  ;;  %v10182_v60 = vpop.f32.mrf.mxu0  ;;  %6154 = vmatprep.subr.bf16.mxu0 %v9100_v63  ;;  %v9122_v13 = vld [vmem:[#allocation5 + $0xc48] ss:$16 sps:$4 sm:$0xff]   ;;  %v9133_v58 = vld [vmem:[#allocation5 + $0xe2c] ss:$16 sps:$4 sm:$0xff]  }
 0x2b7   :  { %v10184_v62 = vpop.f32.mrf.mxu1  ;;  %6197 = vmatprep.subr.bf16.mxu1 %v9103_v0  ;;  %v5886_v10 = vadd.f32 %v5885_v61, %v5843_v24  ;;  %6184 = vmatprep.mubr.bf16.mxu0 %v9972_v20  ;;  %v9110_v20 = vld [vmem:[#allocation5 + $0xc88] ss:$16 sps:$4 sm:$0xff]   ;;  %v9130_v0 = vld [vmem:[#allocation5 + $0xc2c] ss:$16 sps:$4 sm:$0xff]  }
 0x2b8   :  { %6227 = vmatprep.mubr.bf16.mxu1 %v9977_v25  ;;  %v5846_v2 = vpop.f32.mrf.mxu0  ;;  %v9118_v25 = vld [vmem:[#allocation5 + $0xc6c] ss:$16 sps:$4 sm:$0xff]   ;;  %v9125_v63 = vld [vmem:[#allocation5 + $0xe48] ss:$16 sps:$4 sm:$0xff]  }
 0x2b9   :  { %v5847_v43 = vadd.f32 %v5846_v2, %v10173_v55  ;;  %6155 = vmatpush1.bf16.msra.mxu0 %v9098_v50  ;;  %v5889_v29 = vpop.f32.mrf.mxu1  ;;  %v6410_v42 = vmax.f32 %v5886_v10, 0.0  ;;  %v9121_v55 = vld [vmem:[#allocation5 + $0xe6c] ss:$16 sps:$4 sm:$0xff]   ;;  %v9128_v61 = vld [vmem:[#allocation5 + $0xc28] ss:$16 sps:$4 sm:$0xff]  }
 0x2ba   :  { %6198 = vmatpush1.bf16.msra.mxu1 %v9101_v5  ;;  %6156 = vmatprep.subr.bf16.mxu0 %v9106_v34  ;;  %v9131_v24 = vld [vmem:[#allocation5 + $0xe28] ss:$16 sps:$4 sm:$0xff]   ;;  %v9136_v50 = vld [vmem:[#allocation5 + $0xc0c] ss:$16 sps:$4 sm:$0xff]  }
 0x2bb   :  { %6199 = vmatprep.subr.bf16.mxu1 %v9109_v35  ;;  %v5890_v44 = vadd.f32 %v5889_v29, %v5847_v43  ;;  %v9139_v5 = vld [vmem:[#allocation5 + $0xe0c] ss:$16 sps:$4 sm:$0xff]   ;;  %v9134_v34 = vld [vmem:[#allocation5 + $0xc08] ss:$16 sps:$4 sm:$0xff]  }
 0x2bc   :  { %v9137_v35 = vld [vmem:[#allocation5 + $0xe08] ss:$16 sps:$4 sm:$0xff]   ;;  %v9142_v10 = vld [vmem:[#allocation5 + $0xdec] ss:$16 sps:$4 sm:$0xff]  }
 0x2bd   :  { %v6414_v51 = vmax.f32 %v5890_v44, 0.0  ;;  %6157 = vmatpush1.bf16.msra.mxu0 %v9104_v16  ;;  %v9145_v2 = vld [vmem:[#allocation5 + $0xfec] ss:$16 sps:$4 sm:$0xff]   ;;  %v9140_v43 = vld [vmem:[#allocation5 + $0xde8] ss:$16 sps:$4 sm:$0xff]  }
 0x2be   :  { %6200 = vmatpush1.bf16.msra.mxu1 %v9107_v26  ;;  %6158 = vmatprep.subr.bf16.mxu0 %v9112_v36  ;;  %v9143_v16 = vld [vmem:[#allocation5 + $0xfe8] ss:$16 sps:$4 sm:$0xff]   ;;  %v9148_v26 = vld [vmem:[#allocation5 + $0xdcc] ss:$16 sps:$4 sm:$0xff]  }
 0x2bf   :  { %6201 = vmatprep.subr.bf16.mxu1 %v9115_v39  ;;  %v10189_v53 = vpack.c.bf16 %v6414_v51, %v6410_v42  ;;  %v9151_v29 = vld [vmem:[#allocation5 + $0xfcc] ss:$16 sps:$4 sm:$0xff]   ;;  %v9146_v36 = vld [vmem:[#allocation5 + $0xdc8] ss:$16 sps:$4 sm:$0xff]  }
 0x2c0   :  { %v9149_v39 = vld [vmem:[#allocation5 + $0xfc8] ss:$16 sps:$4 sm:$0xff]   ;;  %v9154_v44 = vld [vmem:[#allocation5 + $0xdac] ss:$16 sps:$4 sm:$0xff]  }
 0x2c1   :  { %6159 = vmatpush1.bf16.msra.mxu0 %v9110_v20  ;;  %v9157_v42 = vld [vmem:[#allocation5 + $0xfac] ss:$16 sps:$4 sm:$0xff]   ;;  %v9152_v51 = vld [vmem:[#allocation5 + $0xda8] ss:$16 sps:$4 sm:$0xff]  }
 0x2c2   :  { %6202 = vmatpush1.bf16.msra.mxu1 %v9113_v14  ;;  %6160 = vmatprep.subr.bf16.mxu0 %v9118_v25  ;;  %v9155_v20 = vld [vmem:[#allocation5 + $0xfa8] ss:$16 sps:$4 sm:$0xff]   ;;  %v9160_v14 = vld [vmem:[#allocation5 + $0xd8c] ss:$16 sps:$4 sm:$0xff]  }
 0x2c3   :  { %6203 = vmatprep.subr.bf16.mxu1 %v9121_v55  ;;  %v9163_v25 = vld [vmem:[#allocation5 + $0xf8c] ss:$16 sps:$4 sm:$0xff]   ;;  %v9158_v55 = vld [vmem:[#allocation5 + $0xd88] ss:$16 sps:$4 sm:$0xff]  }
 0x2c5   :  { %6161 = vmatpush1.bf16.msra.mxu0 %v9116_v45  ;;  %v9161_v45 = vld [vmem:[#allocation5 + $0xf88] ss:$16 sps:$4 sm:$0xff]  }
 0x2c6   :  { %6204 = vmatpush1.bf16.msra.mxu1 %v9119_v59  ;;  %6162 = vmatprep.subr.bf16.mxu0 %v9124_v6  ;;  %v9166_v59 = vld [vmem:[#allocation5 + $0xd6c] ss:$16 sps:$4 sm:$0xff]  }
 0x2c7   :  { %6205 = vmatprep.subr.bf16.mxu1 %v9127_v7  ;;  %v9169_v6 = vld [vmem:[#allocation5 + $0xf6c] ss:$16 sps:$4 sm:$0xff]   ;;  %v9164_v7 = vld [vmem:[#allocation5 + $0xd68] ss:$16 sps:$4 sm:$0xff]  }
 0x2c9   :  { %6163 = vmatpush1.bf16.msra.mxu0 %v9122_v13  ;;  %v9167_v13 = vld [vmem:[#allocation5 + $0xf68] ss:$16 sps:$4 sm:$0xff]  }
 0x2ca   :  { %6206 = vmatpush1.bf16.msra.mxu1 %v9125_v63  ;;  %6164 = vmatprep.subr.bf16.mxu0 %v9130_v0  ;;  %v9172_v63 = vld [vmem:[#allocation5 + $0xd4c] ss:$16 sps:$4 sm:$0xff]  }
 0x2cb   :  { %6207 = vmatprep.subr.bf16.mxu1 %v9133_v58  ;;  %v9175_v0 = vld [vmem:[#allocation5 + $0xf4c] ss:$16 sps:$4 sm:$0xff]   ;;  %v9170_v58 = vld [vmem:[#allocation5 + $0xd48] ss:$16 sps:$4 sm:$0xff]  }
 0x2cd   :  { %6165 = vmatpush1.bf16.msra.mxu0 %v9128_v61  ;;  %v9173_v61 = vld [vmem:[#allocation5 + $0xf48] ss:$16 sps:$4 sm:$0xff]  }
 0x2ce   :  { %6208 = vmatpush1.bf16.msra.mxu1 %v9131_v24  ;;  %6166 = vmatprep.subr.bf16.mxu0 %v9136_v50  ;;  %v9178_v24 = vld [vmem:[#allocation5 + $0xd2c] ss:$16 sps:$4 sm:$0xff]  }
 0x2cf   :  { %6209 = vmatprep.subr.bf16.mxu1 %v9139_v5  ;;  %v9181_v50 = vld [vmem:[#allocation5 + $0xf2c] ss:$16 sps:$4 sm:$0xff]   ;;  %v9176_v5 = vld [vmem:[#allocation5 + $0xd28] ss:$16 sps:$4 sm:$0xff]  }
 0x2d1   :  { %6167 = vmatpush1.bf16.msra.mxu0 %v9134_v34  ;;  %v9179_v34 = vld [vmem:[#allocation5 + $0xf28] ss:$16 sps:$4 sm:$0xff]  }
 0x2d2   :  { %6210 = vmatpush1.bf16.msra.mxu1 %v9137_v35  ;;  %6168 = vmatprep.subr.bf16.mxu0 %v9142_v10  ;;  %v9184_v35 = vld [vmem:[#allocation5 + $0xd0c] ss:$16 sps:$4 sm:$0xff]  }
 0x2d3   :  { %6211 = vmatprep.subr.bf16.mxu1 %v9145_v2  ;;  %v9187_v10 = vld [vmem:[#allocation5 + $0xf0c] ss:$16 sps:$4 sm:$0xff]   ;;  %v9182_v2 = vld [vmem:[#allocation5 + $0xd08] ss:$16 sps:$4 sm:$0xff]  }
 0x2d5   :  { %6169 = vmatpush2.bf16.msra.mxu0 %v9140_v43  ;;  %v9185_v43 = vld [vmem:[#allocation5 + $0xf08] ss:$16 sps:$4 sm:$0xff]  }
 0x2d6   :  { %6212 = vmatpush2.bf16.msra.mxu1 %v9143_v16  ;;  %6170 = vmatprep.subr.bf16.mxu0 %v9148_v26  ;;  %v9190_v16 = vld [vmem:[#allocation5 + $0x10ec] ss:$16 sps:$4 sm:$0xff]  }
 0x2d7   :  { %6213 = vmatprep.subr.bf16.mxu1 %v9151_v29  ;;  %v9193_v26 = vld [vmem:[#allocation5 + $0x12ec] ss:$16 sps:$4 sm:$0xff]   ;;  %v9188_v29 = vld [vmem:[#allocation5 + $0x10e8] ss:$16 sps:$4 sm:$0xff]  }
 0x2d9   :  { %6171 = vmatpush2.bf16.msra.mxu0 %v9146_v36  ;;  %v9191_v36 = vld [vmem:[#allocation5 + $0x12e8] ss:$16 sps:$4 sm:$0xff]  }
 0x2da   :  { %6214 = vmatpush2.bf16.msra.mxu1 %v9149_v39  ;;  %6172 = vmatprep.subr.bf16.mxu0 %v9154_v44  ;;  %v9196_v39 = vld [vmem:[#allocation5 + $0x10cc] ss:$16 sps:$4 sm:$0xff]  }
 0x2db   :  { %6215 = vmatprep.subr.bf16.mxu1 %v9157_v42  ;;  %v9199_v44 = vld [vmem:[#allocation5 + $0x12cc] ss:$16 sps:$4 sm:$0xff]   ;;  %v9194_v42 = vld [vmem:[#allocation5 + $0x10c8] ss:$16 sps:$4 sm:$0xff]  }
 0x2dd   :  { %6173 = vmatpush2.bf16.msra.mxu0 %v9152_v51  ;;  %v9197_v51 = vld [vmem:[#allocation5 + $0x12c8] ss:$16 sps:$4 sm:$0xff]  }
 0x2de   :  { %6216 = vmatpush2.bf16.msra.mxu1 %v9155_v20  ;;  %6174 = vmatprep.subr.bf16.mxu0 %v9160_v14  ;;  %v9202_v20 = vld [vmem:[#allocation5 + $0x10ac] ss:$16 sps:$4 sm:$0xff]  }
 0x2df   :  { %6217 = vmatprep.subr.bf16.mxu1 %v9163_v25  ;;  %v9205_v14 = vld [vmem:[#allocation5 + $0x12ac] ss:$16 sps:$4 sm:$0xff]   ;;  %v9200_v25 = vld [vmem:[#allocation5 + $0x10a8] ss:$16 sps:$4 sm:$0xff]  }
 0x2e1   :  { %6175 = vmatpush2.bf16.msra.mxu0 %v9158_v55  ;;  %v9203_v55 = vld [vmem:[#allocation5 + $0x12a8] ss:$16 sps:$4 sm:$0xff]  }
 0x2e2   :  { %6218 = vmatpush2.bf16.msra.mxu1 %v9161_v45  ;;  %6176 = vmatprep.subr.bf16.mxu0 %v9166_v59  ;;  %v9206_v45 = vld [vmem:[#allocation5 + $0x1088] ss:$16 sps:$4 sm:$0xff]  }
 0x2e3   :  { %6219 = vmatprep.subr.bf16.mxu1 %v9169_v6  ;;  %v9209_v59 = vld [vmem:[#allocation5 + $0x1288] ss:$16 sps:$4 sm:$0xff]   ;;  %v9214_v6 = vld [vmem:[#allocation5 + $0x106c] ss:$16 sps:$4 sm:$0xff]  }
 0x2e5   :  { %6177 = vmatpush2.bf16.msra.mxu0 %v9164_v7  ;;  %v9217_v7 = vld [vmem:[#allocation5 + $0x126c] ss:$16 sps:$4 sm:$0xff]  }
 0x2e6   :  { %6220 = vmatpush2.bf16.msra.mxu1 %v9167_v13  ;;  %6178 = vmatprep.subr.bf16.mxu0 %v9172_v63  ;;  %v9220_v13 = vld [vmem:[#allocation5 + $0x104c] ss:$16 sps:$4 sm:$0xff]  }
 0x2e7   :  { %6221 = vmatprep.subr.bf16.mxu1 %v9175_v0  ;;  %v9223_v63 = vld [vmem:[#allocation5 + $0x124c] ss:$16 sps:$4 sm:$0xff]   ;;  %v9218_v0 = vld [vmem:[#allocation5 + $0x1048] ss:$16 sps:$4 sm:$0xff]  }
 0x2e9   :  { %6179 = vmatpush2.bf16.msra.mxu0 %v9170_v58  ;;  %v9221_v58 = vld [vmem:[#allocation5 + $0x1248] ss:$16 sps:$4 sm:$0xff]  }
 0x2ea   :  { %6222 = vmatpush2.bf16.msra.mxu1 %v9173_v61  ;;  %6180 = vmatprep.subr.bf16.mxu0 %v9178_v24  ;;  %v9226_v61 = vld [vmem:[#allocation5 + $0x102c] ss:$16 sps:$4 sm:$0xff]  }
 0x2eb   :  { %6223 = vmatprep.subr.bf16.mxu1 %v9181_v50  ;;  %v9229_v24 = vld [vmem:[#allocation5 + $0x122c] ss:$16 sps:$4 sm:$0xff]   ;;  %v9224_v50 = vld [vmem:[#allocation5 + $0x1028] ss:$16 sps:$4 sm:$0xff]  }
 0x2ed   :  { %6181 = vmatpush2.bf16.msra.mxu0 %v9176_v5  ;;  %v9227_v5 = vld [vmem:[#allocation5 + $0x1228] ss:$16 sps:$4 sm:$0xff]  }
 0x2ee   :  { %6224 = vmatpush2.bf16.msra.mxu1 %v9179_v34  ;;  %6182 = vmatprep.subr.bf16.mxu0 %v9184_v35  ;;  %v9232_v34 = vld [vmem:[#allocation5 + $0x100c] ss:$16 sps:$4 sm:$0xff]  }
 0x2ef   :  { %6225 = vmatprep.subr.bf16.mxu1 %v9187_v10  ;;  %v9235_v35 = vld [vmem:[#allocation5 + $0x120c] ss:$16 sps:$4 sm:$0xff]   ;;  %v9230_v10 = vld [vmem:[#allocation5 + $0x1008] ss:$16 sps:$4 sm:$0xff]  }
 0x2f1   :  { %6183 = vmatpush2.bf16.msra.mxu0 %v9182_v2  ;;  %v9233_v2 = vld [vmem:[#allocation5 + $0x1208] ss:$16 sps:$4 sm:$0xff]  }
 0x2f2   :  { %6226 = vmatpush2.bf16.msra.mxu1 %v9185_v43  ;;  %6238 = vmatprep.subr.bf16.mxu0 %v9190_v16  ;;  %v9238_v43 = vld [vmem:[#allocation5 + $0x11ec] ss:$16 sps:$4 sm:$0xff]  }
 0x2f3   :  { %6281 = vmatprep.subr.bf16.mxu1 %v9193_v26  ;;  %v9241_v16 = vld [vmem:[#allocation5 + $0x13ec] ss:$16 sps:$4 sm:$0xff]   ;;  %v9236_v26 = vld [vmem:[#allocation5 + $0x11e8] ss:$16 sps:$4 sm:$0xff]  }
 0x2f4   :  { %6185 = vmatmul.mubr.bf16.vlgmr.msra.gmra.mxu0 %v10021_v8  ;;  %v9208_v8 = vld [vmem:[#allocation5 + $0x108c] ss:$16 sps:$4 sm:$0xff]  }
 0x2f5   :  { %6228 = vmatmul.mubr.bf16.vlgmr.msra.gmra.mxu1 %v10023_v12  ;;  %6239 = vmatpush1.bf16.msra.mxu0 %v9188_v29  ;;  %v9211_v12 = vld [vmem:[#allocation5 + $0x128c] ss:$16 sps:$4 sm:$0xff]   ;;  %v9239_v29 = vld [vmem:[#allocation5 + $0x13e8] ss:$16 sps:$4 sm:$0xff]  }
 0x2f6   :  { %6282 = vmatpush1.bf16.msra.mxu1 %v9191_v36  ;;  %6240 = vmatprep.subr.bf16.mxu0 %v9196_v39  ;;  %v9244_v36 = vld [vmem:[#allocation5 + $0x11cc] ss:$16 sps:$4 sm:$0xff]  }
 0x2f7   :  { %6283 = vmatprep.subr.bf16.mxu1 %v9199_v44  ;;  %6270 = vmatprep.mubr.bf16.mxu0 %v10027_v27  ;;  %v9212_v27 = vld [vmem:[#allocation5 + $0x1068] ss:$16 sps:$4 sm:$0xff]   ;;  %v9247_v39 = vld [vmem:[#allocation5 + $0x13cc] ss:$16 sps:$4 sm:$0xff]  }
 0x2f8   :  { %6313 = vmatprep.mubr.bf16.mxu1 %v10029_v28  ;;  %v9215_v28 = vld [vmem:[#allocation5 + $0x1268] ss:$16 sps:$4 sm:$0xff]  }
 0x2f9   :  { %6241 = vmatpush1.bf16.msra.mxu0 %v9194_v42  ;;  %v9242_v44 = vld [vmem:[#allocation5 + $0x11c8] ss:$16 sps:$4 sm:$0xff]  }
 0x2fa   :  { %6284 = vmatpush1.bf16.msra.mxu1 %v9197_v51  ;;  %6242 = vmatprep.subr.bf16.mxu0 %v9202_v20  ;;  %v9245_v42 = vld [vmem:[#allocation5 + $0x13c8] ss:$16 sps:$4 sm:$0xff]   ;;  %v9250_v51 = vld [vmem:[#allocation5 + $0x11ac] ss:$16 sps:$4 sm:$0xff]  }
 0x2fb   :  { %6285 = vmatprep.subr.bf16.mxu1 %v9205_v14  ;;  %v9253_v20 = vld [vmem:[#allocation5 + $0x13ac] ss:$16 sps:$4 sm:$0xff]   ;;  %v9248_v14 = vld [vmem:[#allocation5 + $0x11a8] ss:$16 sps:$4 sm:$0xff]  }
 0x2fd   :  { %6243 = vmatpush1.bf16.msra.mxu0 %v9200_v25  ;;  %v9251_v25 = vld [vmem:[#allocation5 + $0x13a8] ss:$16 sps:$4 sm:$0xff]  }
 0x2fe   :  { %6286 = vmatpush1.bf16.msra.mxu1 %v9203_v55  ;;  %6244 = vmatprep.subr.bf16.mxu0 %v9208_v8  ;;  %v9256_v55 = vld [vmem:[#allocation5 + $0x118c] ss:$16 sps:$4 sm:$0xff]  }
 0x2ff   :  { %6287 = vmatprep.subr.bf16.mxu1 %v9211_v12  ;;  %v9259_v8 = vld [vmem:[#allocation5 + $0x138c] ss:$16 sps:$4 sm:$0xff]   ;;  %v9254_v12 = vld [vmem:[#allocation5 + $0x1188] ss:$16 sps:$4 sm:$0xff]  }
 0x301   :  { %6245 = vmatpush1.bf16.msra.mxu0 %v9206_v45  ;;  %v9257_v45 = vld [vmem:[#allocation5 + $0x1388] ss:$16 sps:$4 sm:$0xff]  }
 0x302   :  { %6288 = vmatpush1.bf16.msra.mxu1 %v9209_v59  ;;  %6246 = vmatprep.subr.bf16.mxu0 %v9214_v6  ;;  %v9262_v59 = vld [vmem:[#allocation5 + $0x116c] ss:$16 sps:$4 sm:$0xff]  }
 0x303   :  { %6289 = vmatprep.subr.bf16.mxu1 %v9217_v7  ;;  %v9265_v6 = vld [vmem:[#allocation5 + $0x136c] ss:$16 sps:$4 sm:$0xff]   ;;  %v9260_v7 = vld [vmem:[#allocation5 + $0x1168] ss:$16 sps:$4 sm:$0xff]  }
 0x305   :  { %6247 = vmatpush1.bf16.msra.mxu0 %v9212_v27  ;;  %v9263_v27 = vld [vmem:[#allocation5 + $0x1368] ss:$16 sps:$4 sm:$0xff]  }
 0x306   :  { %6290 = vmatpush1.bf16.msra.mxu1 %v9215_v28  ;;  %6248 = vmatprep.subr.bf16.mxu0 %v9220_v13  ;;  %v9268_v28 = vld [vmem:[#allocation5 + $0x114c] ss:$16 sps:$4 sm:$0xff]  }
 0x307   :  { %6291 = vmatprep.subr.bf16.mxu1 %v9223_v63  ;;  %v9271_v13 = vld [vmem:[#allocation5 + $0x134c] ss:$16 sps:$4 sm:$0xff]   ;;  %v9266_v63 = vld [vmem:[#allocation5 + $0x1148] ss:$16 sps:$4 sm:$0xff]  }
 0x309   :  { %6249 = vmatpush1.bf16.msra.mxu0 %v9218_v0  ;;  %v9269_v0 = vld [vmem:[#allocation5 + $0x1348] ss:$16 sps:$4 sm:$0xff]  }
 0x30a   :  { %6292 = vmatpush1.bf16.msra.mxu1 %v9221_v58  ;;  %6250 = vmatprep.subr.bf16.mxu0 %v9226_v61  ;;  %v9274_v58 = vld [vmem:[#allocation5 + $0x112c] ss:$16 sps:$4 sm:$0xff]  }
 0x30b   :  { %6293 = vmatprep.subr.bf16.mxu1 %v9229_v24  ;;  %v9277_v61 = vld [vmem:[#allocation5 + $0x132c] ss:$16 sps:$4 sm:$0xff]   ;;  %v9272_v24 = vld [vmem:[#allocation5 + $0x1128] ss:$16 sps:$4 sm:$0xff]  }
 0x30d   :  { %6251 = vmatpush1.bf16.msra.mxu0 %v9224_v50  ;;  %v9275_v50 = vld [vmem:[#allocation5 + $0x1328] ss:$16 sps:$4 sm:$0xff]  }
 0x30e   :  { %6294 = vmatpush1.bf16.msra.mxu1 %v9227_v5  ;;  %6252 = vmatprep.subr.bf16.mxu0 %v9232_v34  ;;  %v9280_v5 = vld [vmem:[#allocation5 + $0x110c] ss:$16 sps:$4 sm:$0xff]  }
 0x30f   :  { %6295 = vmatprep.subr.bf16.mxu1 %v9235_v35  ;;  %v9283_v34 = vld [vmem:[#allocation5 + $0x130c] ss:$16 sps:$4 sm:$0xff]   ;;  %v9278_v35 = vld [vmem:[#allocation5 + $0x1108] ss:$16 sps:$4 sm:$0xff]  }
 0x311   :  { %6253 = vmatpush1.bf16.msra.mxu0 %v9230_v10  ;;  %v9281_v10 = vld [vmem:[#allocation5 + $0x1308] ss:$16 sps:$4 sm:$0xff]  }
 0x312   :  { %6296 = vmatpush1.bf16.msra.mxu1 %v9233_v2  ;;  %6254 = vmatprep.subr.bf16.mxu0 %v9238_v43  ;;  %v9286_v2 = vld [vmem:[#allocation5 + $0x14ec] ss:$16 sps:$4 sm:$0xff]  }
 0x313   :  { %6297 = vmatprep.subr.bf16.mxu1 %v9241_v16  ;;  %v9289_v43 = vld [vmem:[#allocation5 + $0x16ec] ss:$16 sps:$4 sm:$0xff]   ;;  %v9284_v16 = vld [vmem:[#allocation5 + $0x14e8] ss:$16 sps:$4 sm:$0xff]  }
 0x315   :  { %6255 = vmatpush2.bf16.msra.mxu0 %v9236_v26  ;;  %v9287_v26 = vld [vmem:[#allocation5 + $0x16e8] ss:$16 sps:$4 sm:$0xff]  }
 0x316   :  { %6298 = vmatpush2.bf16.msra.mxu1 %v9239_v29  ;;  %6256 = vmatprep.subr.bf16.mxu0 %v9244_v36  ;;  %v9292_v29 = vld [vmem:[#allocation5 + $0x14cc] ss:$16 sps:$4 sm:$0xff]  }
 0x317   :  { %6299 = vmatprep.subr.bf16.mxu1 %v9247_v39  ;;  %v9295_v36 = vld [vmem:[#allocation5 + $0x16cc] ss:$16 sps:$4 sm:$0xff]   ;;  %v9290_v39 = vld [vmem:[#allocation5 + $0x14c8] ss:$16 sps:$4 sm:$0xff]  }
 0x319   :  { %6257 = vmatpush2.bf16.msra.mxu0 %v9242_v44  ;;  %v9293_v44 = vld [vmem:[#allocation5 + $0x16c8] ss:$16 sps:$4 sm:$0xff]  }
 0x31a   :  { %6300 = vmatpush2.bf16.msra.mxu1 %v9245_v42  ;;  %6258 = vmatprep.subr.bf16.mxu0 %v9250_v51  ;;  %v9298_v42 = vld [vmem:[#allocation5 + $0x14ac] ss:$16 sps:$4 sm:$0xff]  }
 0x31b   :  { %6301 = vmatprep.subr.bf16.mxu1 %v9253_v20  ;;  %v9301_v51 = vld [vmem:[#allocation5 + $0x16ac] ss:$16 sps:$4 sm:$0xff]   ;;  %v9296_v20 = vld [vmem:[#allocation5 + $0x14a8] ss:$16 sps:$4 sm:$0xff]  }
 0x31d   :  { %6259 = vmatpush2.bf16.msra.mxu0 %v9248_v14  ;;  %v9299_v14 = vld [vmem:[#allocation5 + $0x16a8] ss:$16 sps:$4 sm:$0xff]  }
 0x31e   :  { %6302 = vmatpush2.bf16.msra.mxu1 %v9251_v25  ;;  %6260 = vmatprep.subr.bf16.mxu0 %v9256_v55  ;;  %v9302_v25 = vld [vmem:[#allocation5 + $0x1488] ss:$16 sps:$4 sm:$0xff]  }
 0x31f   :  { %6303 = vmatprep.subr.bf16.mxu1 %v9259_v8  ;;  %v9305_v55 = vld [vmem:[#allocation5 + $0x1688] ss:$16 sps:$4 sm:$0xff]   ;;  %v9310_v8 = vld [vmem:[#allocation5 + $0x146c] ss:$16 sps:$4 sm:$0xff]  }
 0x321   :  { %6261 = vmatpush2.bf16.msra.mxu0 %v9254_v12  ;;  %v9313_v12 = vld [vmem:[#allocation5 + $0x166c] ss:$16 sps:$4 sm:$0xff]  }
 0x322   :  { %6304 = vmatpush2.bf16.msra.mxu1 %v9257_v45  ;;  %6262 = vmatprep.subr.bf16.mxu0 %v9262_v59  ;;  %v9316_v45 = vld [vmem:[#allocation5 + $0x144c] ss:$16 sps:$4 sm:$0xff]  }
 0x323   :  { %6305 = vmatprep.subr.bf16.mxu1 %v9265_v6  ;;  %v9319_v59 = vld [vmem:[#allocation5 + $0x164c] ss:$16 sps:$4 sm:$0xff]   ;;  %v1524_v6 = vsub.s32 1, %v9813_v48 }
 0x325   :  { %6263 = vmatpush2.bf16.msra.mxu0 %v9260_v7  ;;  %v9314_v7 = vld [vmem:[#allocation5 + $0x1448] ss:$16 sps:$4 sm:$0xff]  }
 0x326   :  { %6306 = vmatpush2.bf16.msra.mxu1 %v9263_v27  ;;  %6264 = vmatprep.subr.bf16.mxu0 %v9268_v28  ;;  %v9317_v27 = vld [vmem:[#allocation5 + $0x1648] ss:$16 sps:$4 sm:$0xff]   ;;  %v9322_v28 = vld [vmem:[#allocation5 + $0x142c] ss:$16 sps:$4 sm:$0xff]  }
 0x327   :  { %6307 = vmatprep.subr.bf16.mxu1 %v9271_v13  ;;  %v9325_v13 = vld [vmem:[#allocation5 + $0x162c] ss:$16 sps:$4 sm:$0xff]  }
 0x329   :  { %6265 = vmatpush2.bf16.msra.mxu0 %v9266_v63  ;;  %v10200_v63 = vld [vmem:[#allocation7] sm:$0xf] }
 0x32a   :  { %6308 = vmatpush2.bf16.msra.mxu1 %v9269_v0  ;;  %6266 = vmatprep.subr.bf16.mxu0 %v9274_v58  ;;  %v1525_v0 = vrot.slane %v10200_v63, %v1524_v6 }
 0x32b   :  { %6309 = vmatprep.subr.bf16.mxu1 %v9277_v61  ;;  %v9320_v61 = vld [vmem:[#allocation5 + $0x1428] ss:$16 sps:$4 sm:$0xff]  }
 0x32c   :  { %v5419_v58 = vadd.f32 %v10087_v52, %v1525_v0  ;;  %v9337_v52 = vld [vmem:[#allocation5 + $0x17ec] ss:$16 sps:$4 sm:$0xff]  }
 0x32d   :  { %6267 = vmatpush2.bf16.msra.mxu0 %v9272_v24  ;;  %v9323_v24 = vld [vmem:[#allocation5 + $0x1628] ss:$16 sps:$4 sm:$0xff]  }
 0x32e   :  { %6310 = vmatpush2.bf16.msra.mxu1 %v9275_v50  ;;  %6268 = vmatprep.subr.bf16.mxu0 %v9280_v5  ;;  %v9328_v50 = vld [vmem:[#allocation5 + $0x140c] ss:$16 sps:$4 sm:$0xff]  }
 0x32f   :  { %6311 = vmatprep.subr.bf16.mxu1 %v9283_v34  ;;  %v9331_v5 = vld [vmem:[#allocation5 + $0x160c] ss:$16 sps:$4 sm:$0xff]   ;;  %v5415_v34 = vadd.f32 %v10033_v40, %v1525_v0  ;;  %v9335_v40 = vld [vmem:[#allocation5 + $0x17e8] ss:$16 sps:$4 sm:$0xff]  }
 0x330   :  { %v9365_v0 = vld [vmem:[#allocation5 + $0x1748] ss:$16 sps:$4 sm:$0xff]  }
 0x331   :  { %6269 = vmatpush2.bf16.msra.mxu0 %v9278_v35  ;;  %v5462_v35 = vadd.f32 %v10089_v4, %v5419_v58  ;;  %v9340_v4 = vld [vmem:[#allocation5 + $0x15cc] ss:$16 sps:$4 sm:$0xff]  }
 0x332   :  { %6312 = vmatpush2.bf16.msra.mxu1 %v9281_v10  ;;  %6324 = vmatprep.subr.bf16.mxu0 %v9286_v2  ;;  %v9326_v10 = vld [vmem:[#allocation5 + $0x1408] ss:$16 sps:$4 sm:$0xff]  }
 0x333   :  { %6367 = vmatprep.subr.bf16.mxu1 %v9289_v43  ;;  %v9329_v2 = vld [vmem:[#allocation5 + $0x1608] ss:$16 sps:$4 sm:$0xff]   ;;  %v9334_v43 = vld [vmem:[#allocation5 + $0x15ec] ss:$16 sps:$4 sm:$0xff]  }
 0x334   :  { %6271 = vmatmul.mubr.bf16.vlgmr.msra.gmra.mxu0 %v10083_v1  ;;  %v9304_v1 = vld [vmem:[#allocation5 + $0x148c] ss:$16 sps:$4 sm:$0xff]  }
 0x335   :  { %6314 = vmatmul.mubr.bf16.vlgmr.msra.gmra.mxu1 %v10085_v37  ;;  %6325 = vmatpush1.bf16.msra.mxu0 %v9284_v16  ;;  %v9307_v37 = vld [vmem:[#allocation5 + $0x168c] ss:$16 sps:$4 sm:$0xff]   ;;  %v5458_v16 = vadd.f32 %v10035_v41, %v5415_v34  ;;  %v9338_v41 = vld [vmem:[#allocation5 + $0x15c8] ss:$16 sps:$4 sm:$0xff]  }
 0x336   :  { %6368 = vmatpush1.bf16.msra.mxu1 %v9287_v26  ;;  %6326 = vmatprep.subr.bf16.mxu0 %v9292_v29  ;;  %v5505_v26 = vadd.f32 %v10121_v56, %v5462_v35  ;;  %v9341_v56 = vld [vmem:[#allocation5 + $0x17c8] ss:$16 sps:$4 sm:$0xff]   ;;  %v9379_v34 = vld [vmem:[#allocation5 + $0x170c] ss:$16 sps:$4 sm:$0xff]  }
 0x337   :  { %6369 = vmatprep.subr.bf16.mxu1 %v9295_v36  ;;  %6356 = vmatprep.mubr.bf16.mxu0 %v10091_v15  ;;  %v9308_v15 = vld [vmem:[#allocation5 + $0x1468] ss:$16 sps:$4 sm:$0xff]   ;;  %v5501_v29 = vadd.f32 %v10098_v32, %v5458_v16  ;;  %v9346_v32 = vld [vmem:[#allocation5 + $0x15ac] ss:$16 sps:$4 sm:$0xff]  }
 0x338   :  { %6399 = vmatprep.mubr.bf16.mxu1 %v10093_v23  ;;  %v9311_v23 = vld [vmem:[#allocation5 + $0x1668] ss:$16 sps:$4 sm:$0xff]   ;;  %v9380_v16 = vld [vmem:[#allocation8 + $0x70] ss:$8 sps:$4 sm:$0xff]  }
 0x339   :  { %6327 = vmatpush1.bf16.msra.mxu0 %v9290_v39  ;;  %v9332_v36 = vld [vmem:[#allocation5 + $0x15e8] ss:$16 sps:$4 sm:$0xff]   ;;  %v9343_v39 = vld [vmem:[#allocation5 + $0x17cc] ss:$16 sps:$4 sm:$0xff]  }
 0x33a   :  { %6370 = vmatpush1.bf16.msra.mxu1 %v9293_v44  ;;  %6328 = vmatprep.subr.bf16.mxu0 %v9298_v42  ;;  %v5548_v44 = vadd.f32 %v10123_v57, %v5505_v26  ;;  %v5544_v42 = vadd.f32 %v10100_v38, %v5501_v29  ;;  %v9347_v57 = vld [vmem:[#allocation5 + $0x17a8] ss:$16 sps:$4 sm:$0xff]   ;;  %v9352_v38 = vld [vmem:[#allocation5 + $0x158c] ss:$16 sps:$4 sm:$0xff]  }
 0x33b   :  { %6371 = vmatprep.subr.bf16.mxu1 %v9301_v51  ;;  %v9385_v26 = vld [vmem:[#allocation8 + $0x64] ss:$8 sps:$4 sm:$0xff]  }
 0x33c   :  { %v5591_v51 = vadd.f32 %v10139_v19, %v5548_v44  ;;  %v9355_v19 = vld [vmem:[#allocation5 + $0x178c] ss:$16 sps:$4 sm:$0xff]  }
 0x33d   :  { %6329 = vmatpush1.bf16.msra.mxu0 %v9296_v20  ;;  %v9349_v20 = vld [vmem:[#allocation5 + $0x17ac] ss:$16 sps:$4 sm:$0xff]  }
 0x33e   :  { %6372 = vmatpush1.bf16.msra.mxu1 %v9299_v14  ;;  %6330 = vmatprep.subr.bf16.mxu0 %v9304_v1  ;;  %v5587_v14 = vadd.f32 %v10128_v30, %v5544_v42  ;;  %v5634_v1 = vadd.f32 %v10141_v22, %v5591_v51  ;;  %v9353_v30 = vld [vmem:[#allocation5 + $0x1788] ss:$16 sps:$4 sm:$0xff]   ;;  %v9358_v22 = vld [vmem:[#allocation5 + $0x156c] ss:$16 sps:$4 sm:$0xff]  }
 0x33f   :  { %6373 = vmatprep.subr.bf16.mxu1 %v9307_v37  ;;  %v9344_v37 = vld [vmem:[#allocation5 + $0x15a8] ss:$16 sps:$4 sm:$0xff]   ;;  %v9428_v44 = vld [vmem:[#allocation8 + $0x170] ss:$8 sps:$4 sm:$0xff]  }
 0x340   :  { %v9430_v42 = vld [vmem:[#allocation8 + $0x174] ss:$8 sps:$4 sm:$0xff]  }
 0x341   :  { %6331 = vmatpush1.bf16.msra.mxu0 %v9302_v25  ;;  %v5630_v25 = vadd.f32 %v10130_v31, %v5587_v14  ;;  %v9356_v31 = vld [vmem:[#allocation5 + $0x1568] ss:$16 sps:$4 sm:$0xff]   ;;  %v9395_v14 = vld [vmem:[#allocation8 + $0x20] ss:$8 sps:$4 sm:$0xff]  }
 0x342   :  { %6374 = vmatpush1.bf16.msra.mxu1 %v9305_v55  ;;  %6332 = vmatprep.subr.bf16.mxu0 %v9310_v8  ;;  %v5677_v55 = vadd.f32 %v10157_v3, %v5634_v1  ;;  %v9359_v3 = vld [vmem:[#allocation5 + $0x1768] ss:$16 sps:$4 sm:$0xff]  }
 0x343   :  { %6375 = vmatprep.subr.bf16.mxu1 %v9313_v12  ;;  %v5673_v8 = vadd.f32 %v10146_v33, %v5630_v25  ;;  %v9350_v12 = vld [vmem:[#allocation5 + $0x1588] ss:$16 sps:$4 sm:$0xff]   ;;  %v9364_v33 = vld [vmem:[#allocation5 + $0x154c] ss:$16 sps:$4 sm:$0xff]  }
 0x344   :  { %v9394_v51 = vld [vmem:[#allocation8 + $0x34] ss:$8 sps:$4 sm:$0xff]   ;;  %v9439_v1 = vld [vmem:[#allocation8 + $0x144] ss:$8 sps:$4 sm:$0xff]  }
 0x345   :  { %6333 = vmatpush1.bf16.msra.mxu0 %v9308_v15  ;;  %v9361_v15 = vld [vmem:[#allocation5 + $0x176c] ss:$16 sps:$4 sm:$0xff]   ;;  %v9403_v25 = vld [vmem:[#allocation8 + $0x4] ss:$8 sps:$4 sm:$0xff]  }
 0x346   :  { %6376 = vmatpush1.bf16.msra.mxu1 %v9311_v23  ;;  %6334 = vmatprep.subr.bf16.mxu0 %v9316_v45  ;;  %v5720_v23 = vadd.f32 %v10159_v9, %v5677_v55  ;;  %v5716_v45 = vadd.f32 %v10148_v49, %v5673_v8  ;;  %v9362_v9 = vld [vmem:[#allocation5 + $0x1548] ss:$16 sps:$4 sm:$0xff]   ;;  %v9370_v49 = vld [vmem:[#allocation5 + $0x152c] ss:$16 sps:$4 sm:$0xff]  }
 0x347   :  { %6377 = vmatprep.subr.bf16.mxu1 %v9319_v59  ;;  %v9440_v55 = vld [vmem:[#allocation8 + $0x130] ss:$8 sps:$4 sm:$0xff]   ;;  %v9401_v8 = vld [vmem:[#allocation8] ss:$8 sps:$4 sm:$0xff]  }
 0x348   :  { %v5763_v59 = vadd.f32 %v10175_v18, %v5720_v23  ;;  %v9373_v18 = vld [vmem:[#allocation5 + $0x172c] ss:$16 sps:$4 sm:$0xff]   ;;  %v9448_v23 = vld [vmem:[#allocation8 + $0x114] ss:$8 sps:$4 sm:$0xff]  }
 0x349   :  { %6335 = vmatpush1.bf16.msra.mxu0 %v9314_v7  ;;  %v9367_v7 = vld [vmem:[#allocation5 + $0x174c] ss:$16 sps:$4 sm:$0xff]  }
 0x34a   :  { %6378 = vmatpush1.bf16.msra.mxu1 %v9317_v27  ;;  %6336 = vmatprep.subr.bf16.mxu0 %v9322_v28  ;;  %v5759_v27 = vadd.f32 %v10164_v11, %v5716_v45  ;;  %v5848_v28 = vpop.f32.mrf.mxu0  ;;  %v9371_v11 = vld [vmem:[#allocation5 + $0x1728] ss:$16 sps:$4 sm:$0xff]  }
 0x34b   :  { %6379 = vmatprep.subr.bf16.mxu1 %v9325_v13  ;;  %v5806_v13 = vadd.f32 %v10177_v21, %v5763_v59  ;;  %v9376_v21 = vld [vmem:[#allocation5 + $0x150c] ss:$16 sps:$4 sm:$0xff]   ;;  %v9409_v45 = vld [vmem:[#allocation8 + $0xe4] ss:$8 sps:$4 sm:$0xff]  }
 0x34c   :  { %v5802_v58 = vadd.f32 %v10166_v47, %v5759_v27  ;;  %v9382_v47 = vld [vmem:[#allocation8 + $0x74] ss:$8 sps:$4 sm:$0xff]   ;;  %v9446_v59 = vld [vmem:[#allocation8 + $0x110] ss:$8 sps:$4 sm:$0xff]  }
 0x34d   :  { %6337 = vmatpush1.bf16.msra.mxu0 %v9320_v61  ;;  %v5849_v61 = vadd.f32 %v5848_v28, %v5806_v13  ;;  %v9410_v27 = vld [vmem:[#allocation8 + $0xd0] ss:$8 sps:$4 sm:$0xff]   ;;  %v9454_v28 = vld [vmem:[#allocation8 + $0x1f4] ss:$8 sps:$4 sm:$0xff]   ;;  %v9415_v13 = vld [vmem:[#allocation8 + $0xc4] ss:$8 sps:$4 sm:$0xff]  }
 0x34e   :  { %6380 = vmatpush1.bf16.msra.mxu1 %v9323_v24  ;;  %6338 = vmatprep.subr.bf16.mxu0 %v9328_v50  ;;  %v5845_v24 = vadd.f32 %v10182_v60, %v5802_v58  ;;  %v9368_v50 = vld [vmem:[#allocation5 + $0x1528] ss:$16 sps:$4 sm:$0xff]   ;;  %v9455_v58 = vld [vmem:[#allocation8 + $0x1e0] ss:$8 sps:$4 sm:$0xff]  }
 0x34f   :  { %6381 = vmatprep.subr.bf16.mxu1 %v9331_v5  ;;  %v5891_v5 = vpop.f32.mrf.mxu1 }
 0x350   :  { %v5892_v35 = vadd.f32 %v5891_v5, %v5849_v61  ;;  %v9416_v61 = vld [vmem:[#allocation8 + $0xb0] ss:$8 sps:$4 sm:$0xff]   ;;  %v9419_v5 = vld [vmem:[#allocation8 + $0xa0] ss:$8 sps:$4 sm:$0xff]  }
 0x351   :  { %6339 = vmatpush1.bf16.msra.mxu0 %v9326_v10  ;;  %v5888_v10 = vadd.f32 %v10184_v62, %v5845_v24  ;;  %v9383_v62 = vld [vmem:[#allocation8 + $0x60] ss:$8 sps:$4 sm:$0xff]   ;;  %v9460_v24 = vld [vmem:[#allocation8 + $0x1d4] ss:$8 sps:$4 sm:$0xff]  }
 0x352   :  { %6382 = vmatpush1.bf16.msra.mxu1 %v9329_v2  ;;  %6340 = vmatprep.subr.bf16.mxu0 %v9334_v43  ;;  %v9374_v2 = vld [vmem:[#allocation5 + $0x1508] ss:$16 sps:$4 sm:$0xff]   ;;  %v6415_v60 = vmax.f32 %v5892_v35, 0.0  ;;  %v9461_v35 = vld [vmem:[#allocation8 + $0x1c0] ss:$8 sps:$4 sm:$0xff]  }
 0x353   :  { %6383 = vmatprep.subr.bf16.mxu1 %v9337_v52  ;;  %v9377_v43 = vld [vmem:[#allocation5 + $0x1708] ss:$16 sps:$4 sm:$0xff]   ;;  %v6411_v52 = vmax.f32 %v5888_v10, 0.0  ;;  %v9422_v10 = vld [vmem:[#allocation8 + $0x90] ss:$8 sps:$4 sm:$0xff]  }
 0x355   :  { %6341 = vmatpush2.bf16.msra.mxu0 %v9332_v36  ;;  %v6419_v29 = vpack.c.bf16 %v6415_v60, %v6411_v52  ;;  %v9388_v36 = vld [vmem:[#allocation8 + $0x54] ss:$8 sps:$4 sm:$0xff]   ;;  %v9464_v60 = vld [vmem:[#allocation8 + $0x1b0] ss:$8 sps:$4 sm:$0xff]   ;;  %v9469_v52 = vld [vmem:[#allocation8 + $0x1a4] ss:$8 sps:$4 sm:$0xff]  }
 0x356   :  { %6384 = vmatpush2.bf16.msra.mxu1 %v9335_v40  ;;  %6342 = vmatprep.subr.bf16.mxu0 %v9340_v4  ;;  %v9386_v40 = vld [vmem:[#allocation8 + $0x50] ss:$8 sps:$4 sm:$0xff]   ;;  %v9391_v4 = vld [vmem:[#allocation8 + $0x44] ss:$8 sps:$4 sm:$0xff]  }
 0x357   :  { %6385 = vmatprep.subr.bf16.mxu1 %v9343_v39  ;;  %v9389_v39 = vld [vmem:[#allocation8 + $0x40] ss:$8 sps:$4 sm:$0xff]  }
 0x359   :  { %6343 = vmatpush2.bf16.msra.mxu0 %v9338_v41  ;;  %v9433_v41 = vld [vmem:[#allocation8 + $0x164] ss:$8 sps:$4 sm:$0xff]  }
 0x35a   :  { %6386 = vmatpush2.bf16.msra.mxu1 %v9341_v56  ;;  %6344 = vmatprep.subr.bf16.mxu0 %v9346_v32  ;;  %v9436_v56 = vld [vmem:[#allocation8 + $0x154] ss:$8 sps:$4 sm:$0xff]   ;;  %v9397_v32 = vld [vmem:[#allocation8 + $0x24] ss:$8 sps:$4 sm:$0xff]  }
 0x35b   :  { %6387 = vmatprep.subr.bf16.mxu1 %v9349_v20  ;;  %v9434_v20 = vld [vmem:[#allocation8 + $0x150] ss:$8 sps:$4 sm:$0xff]  }
 0x35d   :  { %6345 = vmatpush2.bf16.msra.mxu0 %v9344_v37  ;;  %v9400_v37 = vld [vmem:[#allocation8 + $0x14] ss:$8 sps:$4 sm:$0xff]  }
 0x35e   :  { %6388 = vmatpush2.bf16.msra.mxu1 %v9347_v57  ;;  %6346 = vmatprep.subr.bf16.mxu0 %v9352_v38  ;;  %v9437_v57 = vld [vmem:[#allocation8 + $0x140] ss:$8 sps:$4 sm:$0xff]   ;;  %v9398_v38 = vld [vmem:[#allocation8 + $0x10] ss:$8 sps:$4 sm:$0xff]  }
 0x35f   :  { %6389 = vmatprep.subr.bf16.mxu1 %v9355_v19  ;;  %v9442_v19 = vld [vmem:[#allocation8 + $0x134] ss:$8 sps:$4 sm:$0xff]  }
 0x361   :  { %6347 = vmatpush2.bf16.msra.mxu0 %v9350_v12  ;;  %v9445_v12 = vld [vmem:[#allocation8 + $0x124] ss:$8 sps:$4 sm:$0xff]  }
 0x362   :  { %6390 = vmatpush2.bf16.msra.mxu1 %v9353_v30  ;;  %6348 = vmatprep.subr.bf16.mxu0 %v9358_v22  ;;  %v9406_v30 = vld [vmem:[#allocation8 + $0xf4] ss:$8 sps:$4 sm:$0xff]   ;;  %v9443_v22 = vld [vmem:[#allocation8 + $0x120] ss:$8 sps:$4 sm:$0xff]  }
 0x363   :  { %6391 = vmatprep.subr.bf16.mxu1 %v9361_v15  ;;  %v9404_v15 = vld [vmem:[#allocation8 + $0xf0] ss:$8 sps:$4 sm:$0xff]  }
 0x365   :  { %6349 = vmatpush2.bf16.msra.mxu0 %v9356_v31  ;;  %v9407_v31 = vld [vmem:[#allocation8 + $0xe0] ss:$8 sps:$4 sm:$0xff]  }
 0x366   :  { %6392 = vmatpush2.bf16.msra.mxu1 %v9359_v3  ;;  %6350 = vmatprep.subr.bf16.mxu0 %v9364_v33  ;;  %v9451_v3 = vld [vmem:[#allocation8 + $0x104] ss:$8 sps:$4 sm:$0xff]   ;;  %v9412_v33 = vld [vmem:[#allocation8 + $0xd4] ss:$8 sps:$4 sm:$0xff]  }
 0x367   :  { %6393 = vmatprep.subr.bf16.mxu1 %v9367_v7  ;;  %v9449_v7 = vld [vmem:[#allocation8 + $0x100] ss:$8 sps:$4 sm:$0xff]  }
 0x369   :  { %6351 = vmatpush2.bf16.msra.mxu0 %v9362_v9  ;;  %v9452_v9 = vld [vmem:[#allocation8 + $0x1f0] ss:$8 sps:$4 sm:$0xff]  }
 0x36a   :  { %6394 = vmatpush2.bf16.msra.mxu1 %v9365_v0  ;;  %6352 = vmatprep.subr.bf16.mxu0 %v9370_v49  ;;  %v9413_v0 = vld [vmem:[#allocation8 + $0xc0] ss:$8 sps:$4 sm:$0xff]   ;;  %v9457_v49 = vld [vmem:[#allocation8 + $0x1e4] ss:$8 sps:$4 sm:$0xff]  }
 0x36b   :  { %6395 = vmatprep.subr.bf16.mxu1 %v9373_v18  ;;  %v9418_v18 = vld [vmem:[#allocation8 + $0xb4] ss:$8 sps:$4 sm:$0xff]  }
 0x36d   :  { %6353 = vmatpush2.bf16.msra.mxu0 %v9368_v50  ;;  %v9421_v50 = vld [vmem:[#allocation8 + $0xa4] ss:$8 sps:$4 sm:$0xff]  }
 0x36e   :  { %6396 = vmatpush2.bf16.msra.mxu1 %v9371_v11  ;;  %6354 = vmatprep.subr.bf16.mxu0 %v9376_v21  ;;  %v9458_v11 = vld [vmem:[#allocation8 + $0x1d0] ss:$8 sps:$4 sm:$0xff]   ;;  %v9463_v21 = vld [vmem:[#allocation8 + $0x1c4] ss:$8 sps:$4 sm:$0xff]  }
 0x36f   :  { %6397 = vmatprep.subr.bf16.mxu1 %v9379_v34  ;;  %v9424_v34 = vld [vmem:[#allocation8 + $0x94] ss:$8 sps:$4 sm:$0xff]  }
 0x371   :  { %6355 = vmatpush2.bf16.msra.mxu0 %v9374_v2  ;;  %v9427_v2 = vld [vmem:[#allocation8 + $0x84] ss:$8 sps:$4 sm:$0xff]  }
 0x372   :  { %6398 = vmatpush2.bf16.msra.mxu1 %v9377_v43  ;;  %6818 = vmatprep.subr.bf16.mxu0 %v9382_v47  ;;  %v9425_v43 = vld [vmem:[#allocation8 + $0x80] ss:$8 sps:$4 sm:$0xff]   ;;  %v9466_v47 = vld [vmem:[#allocation8 + $0x1b4] ss:$8 sps:$4 sm:$0xff]  }
 0x373   :  { %6861 = vmatprep.subr.bf16.mxu1 %v9430_v42 }
 0x374   :  { %6357 = vmatmul.mubr.bf16.vlgmr.msra.gmra.mxu0 %v10117_v46  ;;  %v9431_v46 = vld [vmem:[#allocation8 + $0x160] ss:$8 sps:$4 sm:$0xff]  }
 0x375   :  { %6400 = vmatmul.mubr.bf16.vlgmr.msra.gmra.mxu1 %v10119_v54  ;;  %6819 = vmatpush1.bf16.msra.mxu0 %v9380_v16  ;;  %v9392_v54 = vld [vmem:[#allocation8 + $0x30] ss:$8 sps:$4 sm:$0xff]   ;;  %v9467_v16 = vld [vmem:[#allocation8 + $0x1a0] ss:$8 sps:$4 sm:$0xff]  }
 0x376   :  { %6850 = vmatprep.mubr.bf16.mxu0 %v6419_v29  ;;  %6820 = vmatprep.subr.bf16.mxu0 %v9385_v26  ;;  %v9472_v26 = vld [vmem:[#allocation8 + $0x194] ss:$8 sps:$4 sm:$0xff]   ;;  %v9470_v29 = vld [vmem:[#allocation8 + $0x190] ss:$8 sps:$4 sm:$0xff]  }
 0x377   :  { %6862 = vmatpush1.bf16.msra.mxu1 %v9428_v44 }
 0x378   :  { %6863 = vmatprep.subr.bf16.mxu1 %v9433_v41 }
 0x379   :  { %6821 = vmatpush1.bf16.msra.mxu0 %v9383_v62  ;;  %v9475_v62 = vld [vmem:[#allocation8 + $0x184] ss:$8 sps:$4 sm:$0xff]  }
 0x37a   :  { %6822 = vmatprep.subr.bf16.mxu0 %v9388_v36  ;;  %v9473_v36 = vld [vmem:[#allocation8 + $0x180] ss:$8 sps:$4 sm:$0xff]  }
 0x37b   :  { %6864 = vmatpush1.bf16.msra.mxu1 %v9431_v46  ;;  %v9476_v46 = vld [vmem:[#allocation11 + $0x78] sm:$0xff]  }
 0x37c   :  { %6865 = vmatprep.subr.bf16.mxu1 %v9436_v56  ;;  %v9478_v56 = vld [vmem:[#allocation11 + $0x70] sm:$0xff]  }
 0x37d   :  { %6823 = vmatpush1.bf16.msra.mxu0 %v9386_v40  ;;  %v5928_v40 = vpop.f32.mrf.mxu0 }
 0x37e   :  { %6824 = vmatprep.subr.bf16.mxu0 %v9391_v4  ;;  %v5971_v4 = vpop.f32.mrf.mxu1 }
 0x37f   :  { %6866 = vmatpush1.bf16.msra.mxu1 %v9434_v20 }
 0x380   :  { %6867 = vmatprep.subr.bf16.mxu1 %v9439_v1  ;;  %v5973_v44 = vpop.f32.mrf.mxu1  ;;  %v9480_v1 = vld [vmem:[#allocation11 + $0x68] sm:$0xff]  }
 0x381   :  { %6825 = vmatpush1.bf16.msra.mxu0 %v9389_v39  ;;  %v5930_v39 = vpop.f32.mrf.mxu0 }
 0x382   :  { %6826 = vmatprep.subr.bf16.mxu0 %v9394_v51 }
 0x383   :  { %6868 = vmatpush1.bf16.msra.mxu1 %v9437_v57  ;;  %v5932_v42 = vpop.f32.mrf.mxu0 }
 0x384   :  { %6869 = vmatprep.subr.bf16.mxu1 %v9442_v19  ;;  %v9482_v19 = vld [vmem:[#allocation11 + $0x60] sm:$0xff]  }
 0x385   :  { %6827 = vmatpush1.bf16.msra.mxu0 %v9392_v54  ;;  %v5934_v51 = vpop.f32.mrf.mxu0  ;;  %v9477_v54 = vld [vmem:[#allocation11 + $0x38] sm:$0xff]  }
 0x386   :  { %6828 = vmatprep.subr.bf16.mxu0 %v9397_v32 }
 0x387   :  { %6870 = vmatpush1.bf16.msra.mxu1 %v9440_v55  ;;  %v6014_v32 = vpop.f32.mrf.mxu0 }
 0x388   :  { %6871 = vmatprep.subr.bf16.mxu1 %v9445_v12  ;;  %v9484_v12 = vld [vmem:[#allocation11 + $0x58] sm:$0xff]  }
 0x389   :  { %6829 = vmatpush1.bf16.msra.mxu0 %v9395_v14  ;;  %v9479_v14 = vld [vmem:[#allocation11 + $0x30] sm:$0xff]  }
 0x38a   :  { %6830 = vmatprep.subr.bf16.mxu0 %v9400_v37  ;;  %v6016_v37 = vpop.f32.mrf.mxu0 }
 0x38b   :  { %6872 = vmatpush1.bf16.msra.mxu1 %v9443_v22 }
 0x38c   :  { %6873 = vmatprep.subr.bf16.mxu1 %v9448_v23 }
 0x38d   :  { %6831 = vmatpush1.bf16.msra.mxu0 %v9398_v38  ;;  %v9481_v38 = vld [vmem:[#allocation11 + $0x28] sm:$0xff]  }
 0x38e   :  { %6832 = vmatprep.subr.bf16.mxu0 %v9403_v25  ;;  %v6018_v25 = vpop.f32.mrf.mxu0 }
 0x38f   :  { %6874 = vmatpush1.bf16.msra.mxu1 %v9446_v59 }
 0x390   :  { %6875 = vmatprep.subr.bf16.mxu1 %v9451_v3  ;;  %v1532_v3 = vsub.s32 3, %v9813_v48 }
 0x391   :  { %6833 = vmatpush1.bf16.msra.mxu0 %v9401_v8  ;;  %v9483_v8 = vld [vmem:[#allocation11 + $0x20] sm:$0xff]  }
 0x392   :  { %6834 = vmatprep.subr.bf16.mxu0 %v9406_v30  ;;  %v6020_v30 = vpop.f32.mrf.mxu0 }
 0x393   :  { %6876 = vmatpush1.bf16.msra.mxu1 %v9449_v7 }
 0x394   :  { %6877 = vmatprep.subr.bf16.mxu1 %v9454_v28  ;;  %v1533_v28 = vrot.slane %v10200_v63, %v1532_v3 }
 0x395   :  { %6835 = vmatpush2.bf16.msra.mxu0 %v9404_v15  ;;  %v6100_v15 = vpop.f32.mrf.mxu0 }
 0x396   :  { %6836 = vmatprep.subr.bf16.mxu0 %v9409_v45  ;;  %v9485_v45 = vld [vmem:[#allocation11 + $0x18] sm:$0xff]  }
 0x397   :  { %6878 = vmatpush2.bf16.msra.mxu1 %v9452_v9  ;;  %v6102_v59 = vpop.f32.mrf.mxu0 }
 0x398   :  { %6879 = vmatprep.subr.bf16.mxu1 %v9457_v49 }
 0x399   :  { %6837 = vmatpush2.bf16.msra.mxu0 %v9407_v31  ;;  %v6104_v7 = vpop.f32.mrf.mxu0 }
 0x39a   :  { %6838 = vmatprep.subr.bf16.mxu0 %v9412_v33  ;;  %v1528_v33 = vsub.s32 2, %v9813_v48 }
 0x39b   :  { %6880 = vmatpush2.bf16.msra.mxu1 %v9455_v58  ;;  %v6106_v9 = vpop.f32.mrf.mxu0  ;;  %v5931_v58 = vadd.f32 %v5930_v39, %v1533_v28 }
 0x39c   :  { %6881 = vmatprep.subr.bf16.mxu1 %v9460_v24 }
 0x39d   :  { %6839 = vmatpush2.bf16.msra.mxu0 %v9410_v27 }
 0x39e   :  { %6840 = vmatprep.subr.bf16.mxu0 %v9415_v13  ;;  %v1529_v13 = vrot.slane %v10200_v63, %v1528_v33 }
 0x39f   :  { %6882 = vmatpush2.bf16.msra.mxu1 %v9458_v11 }
 0x3a0   :  { %6883 = vmatprep.subr.bf16.mxu1 %v9463_v21  ;;  %v5933_v24 = vadd.f32 %v5932_v42, %v1529_v13  ;;  %v5935_v21 = vadd.f32 %v5934_v51, %v1533_v28 }
 0x3a1   :  { %6841 = vmatpush2.bf16.msra.mxu0 %v9413_v0 }
 0x3a2   :  { %6842 = vmatprep.subr.bf16.mxu0 %v9418_v18 }
 0x3a3   :  { %6884 = vmatpush2.bf16.msra.mxu1 %v9461_v35 }
 0x3a4   :  { %6885 = vmatprep.subr.bf16.mxu1 %v9466_v47 }
 0x3a5   :  { %6843 = vmatpush2.bf16.msra.mxu0 %v9416_v61  ;;  %v5929_v61 = vadd.f32 %v5928_v40, %v1529_v13 }
 0x3a6   :  { %6844 = vmatprep.subr.bf16.mxu0 %v9421_v50 }
 0x3a7   :  { %6886 = vmatpush2.bf16.msra.mxu1 %v9464_v60 }
 0x3a8   :  { %6887 = vmatprep.subr.bf16.mxu1 %v9469_v52 }
 0x3a9   :  { %6845 = vmatpush2.bf16.msra.mxu0 %v9419_v5  ;;  %v5974_v5 = vadd.f32 %v5973_v44, %v5931_v58 }
 0x3aa   :  { %6846 = vmatprep.subr.bf16.mxu0 %v9424_v34  ;;  %v5972_v34 = vadd.f32 %v5971_v4, %v5929_v61 }
 0x3ab   :  { %6888 = vmatpush2.bf16.msra.mxu1 %v9467_v16 }
 0x3ac   :  { %6889 = vmatprep.subr.bf16.mxu1 %v9472_v26 }
 0x3ad   :  { %6847 = vmatpush2.bf16.msra.mxu0 %v9422_v10  ;;  %v6017_v10 = vadd.f32 %v6016_v37, %v5974_v5 }
 0x3ae   :  { %6848 = vmatprep.subr.bf16.mxu0 %v9427_v2  ;;  %v6015_v2 = vadd.f32 %v6014_v32, %v5972_v34 }
 0x3af   :  { %6890 = vmatpush2.bf16.msra.mxu1 %v9470_v29 }
 0x3b0   :  { %6891 = vmatprep.subr.bf16.mxu1 %v9475_v62 }
 0x3b1   :  { %6849 = vmatpush2.bf16.msra.mxu0 %v9425_v43 }
 0x3b2   :  { %8082 = vmatprep.subr.bf16.mxu0 %v9476_v46 }
 0x3b3   :  { %6892 = vmatpush2.bf16.msra.mxu1 %v9473_v36 }
 0x3b4   :  { %6851 = vmatmul.mubr.bf16.vlgmr.msra.gmra.mxu0 %v10189_v53  ;;  %v5975_v53 = vpop.f32.mrf.mxu1  ;;  %v6186_v49 = vpop.f32.mrf.mxu0 }
 0x3b5   :  { %8083 = vmatpush3.bf16.msra.mxu0 %v9477_v54  ;;  %v5976_v35 = vadd.f32 %v5975_v53, %v5933_v24 }
 0x3b6   :  { %v5977_v41 = vpop.f32.mrf.mxu1  ;;  %8084 = vmatprep.subr.bf16.mxu0 %v9478_v56  ;;  %v6188_v50 = vpop.f32.mrf.mxu0 }
 0x3b7   :  { %v5978_v60 = vadd.f32 %v5977_v41, %v5935_v21  ;;  %v6019_v52 = vadd.f32 %v6018_v25, %v5976_v35 }
 0x3b8   :  { %v6057_v20 = vpop.f32.mrf.mxu1  ;;  %v6190_v43 = vpop.f32.mrf.mxu0 }
 0x3b9   :  { %8085 = vmatpush3.bf16.msra.mxu0 %v9479_v14  ;;  %v6021_v16 = vadd.f32 %v6020_v30, %v5978_v60  ;;  %v6058_v26 = vadd.f32 %v6057_v20, %v6015_v2 }
 0x3ba   :  { %v6059_v57 = vpop.f32.mrf.mxu1  ;;  %8086 = vmatprep.subr.bf16.mxu0 %v9480_v1  ;;  %v6192_v29 = vpop.f32.mrf.mxu0 }
 0x3bb   :  { %v6060_v63 = vadd.f32 %v6059_v57, %v6017_v10  ;;  %v6101_v39 = vadd.f32 %v6100_v15, %v6058_v26  ;;  %v9488_v26 = vld [vmem:[#allocation11 + $0x48] sm:$0xff]  }
 0x3bc   :  { %v6061_v55 = vpop.f32.mrf.mxu1 }
 0x3bd   :  { %8087 = vmatpush3.bf16.msra.mxu0 %v9481_v38  ;;  %v6062_v36 = vadd.f32 %v6061_v55, %v6019_v52  ;;  %v6103_v40 = vadd.f32 %v6102_v59, %v6060_v63  ;;  %v9486_v63 = vld [vmem:[#allocation11 + $0x50] sm:$0xff]  }
 0x3be   :  { %8088 = vmatprep.subr.bf16.mxu0 %v9482_v19  ;;  %v6063_v22 = vpop.f32.mrf.mxu1 }
 0x3bf   :  { %v6064_v44 = vadd.f32 %v6063_v22, %v6021_v16  ;;  %v6105_v51 = vadd.f32 %v6104_v7, %v6062_v36  ;;  %v9487_v16 = vld [vmem:[#allocation11 + $0x10] sm:$0xff]   ;;  %v9491_v36 = vld [vmem:[#allocation11] sm:$0xff]  }
 0x3c0   :  { %v6143_v23 = vpop.f32.mrf.mxu1 }
 0x3c1   :  { %8089 = vmatpush3.bf16.msra.mxu0 %v9483_v8  ;;  %v6107_v53 = vadd.f32 %v6106_v9, %v6064_v44  ;;  %v6144_v54 = vadd.f32 %v6143_v23, %v6101_v39  ;;  %v9731_v39 = vmov 0.0   ;;  %v9495_v44 = vld [vmem:[#allocation14 + $0x20] sm:$0xff]  }
 0x3c2   :  { %8090 = vmatprep.subr.bf16.mxu0 %v9484_v12  ;;  %v6145_v31 = vpop.f32.mrf.mxu1  ;;  %8113 = vmatprep.subr.bf16.mxu1 %v9731_v39 }
 0x3c3   :  { %v6146_v4 = vadd.f32 %v6145_v31, %v6103_v40  ;;  %v6187_v1 = vadd.f32 %v6186_v49, %v6144_v54  ;;  %v9492_v40 = vld [vmem:[#allocation14 + $0x38] sm:$0xff]  }
 0x3c4   :  { %v6147_v27 = vpop.f32.mrf.mxu1 }
 0x3c5   :  { %8091 = vmatpush3.bf16.msra.mxu0 %v9485_v45  ;;  %v6148_v14 = vadd.f32 %v6147_v27, %v6105_v51  ;;  %v6189_v41 = vadd.f32 %v6188_v50, %v6146_v4 }
 0x3c6   :  { %v6149_v0 = vpop.f32.mrf.mxu1  ;;  %8092 = vmatprep.subr.bf16.mxu0 %v9486_v63 }
 0x3c7   :  { %v6150_v37 = vadd.f32 %v6149_v0, %v6107_v53  ;;  %v6191_v57 = vadd.f32 %v6190_v43, %v6148_v14  ;;  %v6486_v53 = vld [vmem:[#allocation10] sm:$0x3] }
 0x3c8   :  { %v6229_v18 = vpop.f32.mrf.mxu1 }
 0x3c9   :  { %v6193_v25 = vadd.f32 %v6192_v29, %v6150_v37  ;;  %v6230_v55 = vadd.f32 %v6229_v18, %v6187_v1  ;;  %8093 = vmatpush3.bf16.msra.mxu0 %v9487_v16  ;;  %v9489_v29 = vld [vmem:[#allocation11 + $0x8] sm:$0xff]  }
 0x3ca   :  { %v6231_v11 = vpop.f32.mrf.mxu1  ;;  %8094 = vmatprep.subr.bf16.mxu0 %v9488_v26 }
 0x3cb   :  { %v6232_v19 = vadd.f32 %v6231_v11, %v6189_v41 }
 0x3cc   :  { %v6233_v47 = vpop.f32.mrf.mxu1 }
 0x3cd   :  { %v6234_v8 = vadd.f32 %v6233_v47, %v6191_v57  ;;  %8095 = vmatpush3.bf16.msra.mxu0 %v9489_v29 }
 0x3ce   :  { %v6235_v62 = vpop.f32.mrf.mxu1 }
 0x3cf   :  { %v6236_v45 = vadd.f32 %v6235_v62, %v6193_v25  ;;  %v9490_v62 = vld [vmem:[#allocation11 + $0x40] sm:$0xff]  }
 0x3d0   :  { %8096 = vmatprep.subr.bf16.mxu0 %v9490_v62 }
 0x3d1   :  { %8097 = vmatpush3.bf16.msra.mxu0 %v9491_v36 }
 0x3f4   :  { %v6272_v42 = vpop.f32.mrf.mxu0 }
 0x3f5   :  { %v6315_v46 = vpop.f32.mrf.mxu1  ;;  %v6273_v30 = vadd.f32 %v6272_v42, %v6230_v55  ;;  %v9493_v42 = vld [vmem:[#allocation14 + $0x30] sm:$0xff]  }
 0x3f6   :  { %v6274_v56 = vpop.f32.mrf.mxu0 }
 0x3f7   :  { %v6317_v32 = vpop.f32.mrf.mxu1  ;;  %v6275_v12 = vadd.f32 %v6274_v56, %v6232_v19  ;;  %v6316_v7 = vadd.f32 %v6315_v46, %v6273_v30  ;;  %v9494_v46 = vld [vmem:[#allocation14 + $0x28] sm:$0xff]   ;;  %v6495_v56 = vrot.slane %v6486_v53, %v1524_v6 }
 0x3f8   :  { %v6276_v20 = vpop.f32.mrf.mxu0 }
 0x3f9   :  { %v6319_v38 = vpop.f32.mrf.mxu1  ;;  %v6277_v59 = vadd.f32 %v6276_v20, %v6234_v8  ;;  %v6318_v3 = vadd.f32 %v6317_v32, %v6275_v12  ;;  %v6491_v32 = vrot.slane %v6486_v53, %v1520_v17  ;;  %v9496_v17 = vld [vmem:[#allocation14 + $0x18] sm:$0xff]  }
 0x3fa   :  { %v6278_v22 = vpop.f32.mrf.mxu0 }
 0x3fb   :  { %v6321_v15 = vpop.f32.mrf.mxu1  ;;  %v6279_v33 = vadd.f32 %v6278_v22, %v6236_v45  ;;  %v6320_v13 = vadd.f32 %v6319_v38, %v6277_v59 }
 0x3fd   :  { %v6322_v18 = vadd.f32 %v6321_v15, %v6279_v33 }
 0x434   :  { %v6358_v23 = vpop.f32.mrf.mxu0 }
 0x435   :  { %v6401_v31 = vpop.f32.mrf.mxu1  ;;  %v6359_v0 = vadd.f32 %v6358_v23, %v6316_v7  ;;  %v9497_v23 = vld [vmem:[#allocation14 + $0x10] sm:$0xff]  }
 0x436   :  { %v6360_v27 = vpop.f32.mrf.mxu0 }
 0x437   :  { %v6403_v28 = vpop.f32.mrf.mxu1  ;;  %v6361_v9 = vadd.f32 %v6360_v27, %v6318_v3  ;;  %v6402_v21 = vadd.f32 %v6401_v31, %v6359_v0  ;;  %v9498_v31 = vld [vmem:[#allocation14 + $0x8] sm:$0xff]   ;;  %v9499_v3 = vld [vmem:[#allocation14] sm:$0xff]  }
 0x438   :  { %v6362_v49 = vpop.f32.mrf.mxu0 }
 0x439   :  { %v6405_v58 = vpop.f32.mrf.mxu1  ;;  %v6363_v61 = vadd.f32 %v6362_v49, %v6320_v13  ;;  %v6404_v50 = vadd.f32 %v6403_v28, %v6361_v9  ;;  %v6412_v47 = vmax.f32 %v6402_v21, 0.0  ;;  %v8056_v28 = vld [vmem:[#allocation13] ss:$0 sm:$0xff] }
 0x43a   :  { %v6364_v24 = vpop.f32.mrf.mxu0 }
 0x43b   :  { %v6406_v11 = vadd.f32 %v6405_v58, %v6363_v61  ;;  %v6365_v5 = vadd.f32 %v6364_v24, %v6322_v18  ;;  %v6407_v34 = vpop.f32.mrf.mxu1  ;;  %v6413_v2 = vmax.f32 %v6404_v50, 0.0  ;;  %v8073_v50 = vld [vmem:[#allocation16] ss:$0 sm:$0xff] }
 0x43d   :  { %v6408_v35 = vadd.f32 %v6407_v34, %v6365_v5  ;;  %v6416_v10 = vmax.f32 %v6406_v11, 0.0 }
 0x43f   :  { %v6417_v43 = vmax.f32 %v6408_v35, 0.0  ;;  %v6420_v52 = vpack.c.bf16 %v6416_v10, %v6412_v47 }
 0x441   :  { %v6421_v60 = vpack.c.bf16 %v6417_v43, %v6413_v2 }
 0x443   :  { %6893 = vmatprep.mubr.bf16.mxu1 %v6421_v60 }
 0x444   :  { %6894 = vmatmul.mubr.bf16.vlgmr.msra.gmra.mxu1 %v6420_v52 }
 0x445   :  { %8114 = vmatpush3.bf16.msra.mxu1 %v9492_v40  ;;  %8129 = vmatprep.mubr.msk.bf16.mxu1 %vm9732_vm0, %v9731_v39 }
 0x446   :  { %8115 = vmatprep.subr.bf16.mxu1 %v9731_v39 }
 0x449   :  { %8116 = vmatpush3.bf16.msra.mxu1 %v9493_v42 }
 0x44a   :  { %8117 = vmatprep.subr.bf16.mxu1 %v9731_v39 }
 0x44d   :  { %8118 = vmatpush3.bf16.msra.mxu1 %v9494_v46 }
 0x44e   :  { %8119 = vmatprep.subr.bf16.mxu1 %v9731_v39 }
 0x451   :  { %8120 = vmatpush3.bf16.msra.mxu1 %v9495_v44 }
 0x452   :  { %8121 = vmatprep.subr.bf16.mxu1 %v9731_v39 }
 0x455   :  { %8122 = vmatpush3.bf16.msra.mxu1 %v9496_v17 }
 0x456   :  { %8123 = vmatprep.subr.bf16.mxu1 %v9731_v39 }
 0x459   :  { %8124 = vmatpush3.bf16.msra.mxu1 %v9497_v23 }
 0x45a   :  { %8125 = vmatprep.subr.bf16.mxu1 %v9731_v39 }
 0x45d   :  { %8126 = vmatpush3.bf16.msra.mxu1 %v9498_v31 }
 0x45e   :  { %8127 = vmatprep.subr.bf16.mxu1 %v9731_v39 }
 0x461   :  { %8128 = vmatpush3.bf16.msra.mxu1 %v9499_v3 }
 0x474   :  { %v6852_v51 = vpop.f32.mrf.mxu0 }
 0x475   :  { %v6853_v20 = vadd.f32 %v6852_v51, %v6491_v32 }
 0x476   :  { %v6854_v4 = vpop.f32.mrf.mxu0 }
 0x477   :  { %v6855_v37 = vadd.f32 %v6854_v4, %v6495_v56 }
 0x478   :  { %v6856_v54 = vpop.f32.mrf.mxu0 }
 0x479   :  { %v6857_v57 = vadd.f32 %v6856_v54, %v6491_v32 }
 0x47a   :  { %v6858_v41 = vpop.f32.mrf.mxu0 }
 0x47b   :  { %v6859_v19 = vadd.f32 %v6858_v41, %v6495_v56 }
 0x504   :  { %v6895_v14 = vpop.f32.mrf.mxu1 }
 0x505   :  { %v6896_v8 = vadd.f32 %v6895_v14, %v6853_v20 }
 0x506   :  { %v6897_v1 = vpop.f32.mrf.mxu1 }
 0x507   :  { %v6898_v25 = vadd.f32 %v6897_v1, %v6855_v37  ;;  %v6904_v6 = vmax.f32 %v6896_v8, 0.0 }
 0x508   :  { %v6899_v38 = vpop.f32.mrf.mxu1 }
 0x509   :  { %v6900_v55 = vadd.f32 %v6899_v38, %v6857_v57  ;;  %v6905_v15 = vmax.f32 %v6898_v25, 0.0 }
 0x50a   :  { %v6901_v12 = vpop.f32.mrf.mxu1 }
 0x50b   :  { %v6902_v30 = vadd.f32 %v6901_v12, %v6859_v19  ;;  %v6906_v22 = vmax.f32 %v6900_v55, 0.0 }
 0x50d   :  { %v6907_v45 = vmax.f32 %v6902_v30, 0.0  ;;  %v6908_v48 = vpack.c.bf16 %v6906_v22, %v6904_v6 }
 0x50f   :  { %v6909_v59 = vpack.c.bf16 %v6907_v45, %v6905_v15 }
 0x511   :  { %7077 = vmatprep.mubr.bf16.mxu0 %v6909_v59 }
 0x512   :  { %7078 = vmatmul.mubr.bf16.vlgmr.msra.gmra.mxu0 %v6908_v48 }
 0x5d2   :  { %v8098_v33 = vpop.f32.mrf.mxu0 }
 0x5d4   :  { %v8099_v7 = vpop.f32.mrf.mxu0 }
 0x5d5   :  { %v8100_v27 = vadd.f32 %v8099_v7, %v8098_v33 }
 0x5d6   :  { %v8101_v13 = vpop.f32.mrf.mxu0 }
 0x5d7   :  { %v7080_v0 = vadd.f32 %v8100_v27, %v8056_v28 }
 0x5d8   :  { %v8102_v9 = vpop.f32.mrf.mxu0 }
 0x5d9   :  { %v8103_v49 = vadd.f32 %v8102_v9, %v8101_v13  ;;  %v7086_v18 = vmax.f32 %v7080_v0, 0.0 }
 0x5db   :  { %v7083_v58 = vadd.f32 %v8103_v49, %v8056_v28 }
 0x5dd   :  { %v7087_v61 = vmax.f32 %v7083_v58, 0.0 }
 0x5df   :  { %v7088_v24 = vpack.c.bf16 %v7087_v61, %v7086_v18 }
 0x5e1   :  { %8130 = vmatmul.mubr.bf16.vlgmr.msra.gmra.mxu1 %v7088_v24 }
 0x6a1   :  { %v7194_v11 = vpop.f32.mrf.mxu1 }
 0x6a2   :  { %v7195_v5 = vadd.f32 %v8073_v50, %v7194_v11 }
 0x6a3   :  { %v8131_v21 = vpop.f32.mrf.mxu1 }
 0x6a4   :  { %7201 = vst [vmem:[#allocation17] sm:$0xff] %v7195_v5 }
 0x6a5   :  { %v7197_v34 = vpop.f32.mrf.mxu1 }
 0x6a6   :  { %v7198_v35 = vadd.f32 %v8073_v50, %v7197_v34 }
 0x6a7   :  { %v8132_v10 = vpop.f32.mrf.mxu1 }
 0x6a8   :  { %7202 = vst [vmem:[#allocation17 + $0x8] sm:$0xff] %v7198_v35 }
 0x6a9   :  { %7207 = vsyncadd [#allocation4], 224  ;;  %s9733_s6 = smov [#allocation17]  }
 0x6aa   :  { %s7208_s8 = sshll.u32 %s9733_s6, 4  ;;  %s7209_s8 = int_to_ptr.vmem [resolvable:$true] %s7208_s8 }
 0x6ab   :  { %s9681_s14 = scalar_lea.vmem %s7209_s8, 32  ;;  %s9685_s5 = scalar_lea.vmem %s7209_s8, 256 }
 0x6ac   :  { %p9682_p3 = scmp.ne.s32.totalorder %s7209_s8, %s9681_s14  ;;  %p9686_p4 = scmp.lt.s32.totalorder %s7209_s8, %s7209_s8 }
 0x6ad   :  { %p9687_p5 = scmp.lt.s32.totalorder %s9685_s5, %s9681_s14 }
 0x6af   :  { %p9688_p6 = por %p9687_p5, %p9686_p4 }
 0x6b1   :  { %p9689_p7 = pnand %p9688_p6, %p9682_p3 }
 0x6b3   :  { %9692 = shalt.err (!%p9689_p7)
}
 0x6b4   :  { %s9734_s15 = smov 32   ;;  %s9735_s16 = smov 2  }
 0x6b5   :  { %7214 = dma.vmem_to_hbm [thread:$0]  %s7209_s8, 32, %s10250_s9, [#allocation4], %s9734_s15, %s9734_s15, %s9735_s16  }
 0x6b6   :  { %9711 = dma.done.wait [#allocation4], 256  }
 0x6b7   :  { %9712 = vsyncadd [#allocation4], 4294967040 }
 0x6b8   :  { %7218 = vsyncpa [#allocation3], 1 }
 0x6b9   :  { %7219 = vsyncpa [#allocation6], 1 }
 0x6ba   :  { %7220 = vsyncpa [#allocation9], 1 }
 0x6bb   :  { %7221 = vsyncpa [#allocation12], 1 }
 0x6bc   :  { %7222 = vsyncpa [#allocation15], 1 }
 0x6bd   :  { %7223 = vsyncpa [#allocation4], 1 }

</bundles_post_ra>
